<compile_context>
chip_gen: v7x
topology: tpu7x:2x2x1
jax: 0.10.0
libtpu: 0.0.40
codegen_flags: <defaults>
</compile_context>

<pallas_src>
import jax
import jax.numpy as jnp
from jax import lax
from jax.experimental import pallas as pl
from jax.experimental.pallas import tpu as pltpu


# ----------------------------------------------------------------------------
# Fused kernel
#   x_ref     : (F_in, T*B, 1)  input arranged so the T2V projection is a pure
#                               lane/sublane broadcast MAC (no MXU, no reshape)
#   w_t2v_ref : (F_in, H)
#   b_t2v_ref : (T*B, H)        per-row Time2Vec bias (pre-broadcast over batch)
#   gamma_ref : (1, H)          LayerNorm affine
#   beta_ref  : (1, H)
#   wih_ref   : (L, H, 4H)      input->gates weights (PyTorch (4H,H) pre-transposed)
#   whh_ref   : (L, H, 4H)      hidden->gates weights
#   b_lstm_ref: (L, 1, 4H)      b_ih + b_hh
#   wl_ref    : (1, H)          final Linear(H,1) weight as a row
#   bl_ref    : (1, 1)
#   o_ref     : (T*B, 1)        predictions, flat row index = t*B + b
#   xn_scr    : VMEM (T*B, H)   normalized Time2Vec features (kept on-chip, never to HBM)
#   row_scr   : VMEM (B, H)     per-layer LSTM outputs (row per "sequence" step)
# ----------------------------------------------------------------------------
def temperal_fused_kernel(x_ref, w_t2v_ref, b_t2v_ref, gamma_ref, beta_ref,
                          wih_ref, whh_ref, b_lstm_ref, wl_ref, bl_ref,
                          o_ref, xn_scr, row_scr):
    F_ = x_ref.shape[0]
    TB = x_ref.shape[1]
    H_ = w_t2v_ref.shape[1]
    L_ = wih_ref.shape[0]
    B_ = row_scr.shape[0]
    T_ = TB // B_

    # ---- Time2Vector: v = x @ W + b done as F_in broadcast MACs on the VPU ----
    v = b_t2v_ref[...]                                   # (T*B, H)
    for f in range(F_):
        x_col = x_ref[f]                                 # (T*B, 1) -> lane broadcast
        w_row = w_t2v_ref[pl.ds(f, 1), :]                # (1, H)   -> sublane broadcast
        v = v + x_col * w_row
    col = lax.broadcasted_iota(jnp.int32, v.shape, 1)
    y = jnp.where(col == 0, v, jnp.sin(v))               # col 0 linear, rest periodic

    # ---- LayerNorm over the feature axis (eps=1e-5, biased variance) ----
    mu = jnp.mean(y, axis=-1, keepdims=True)
    var = jnp.mean(jnp.square(y - mu), axis=-1, keepdims=True)
    yn = (y - mu) * lax.rsqrt(var + 1e-5)
    xn_scr[...] = yn * gamma_ref[...] + beta_ref[...]

    wl = wl_ref[...]                                     # (1, H)
    bl = bl_ref[...]                                     # (1, 1)

    # ---- teacher-forced LSTM head --------------------------------------------------
    # Faithful to the PyTorch code: nn.LSTM(batch_first=True) is called on a 2-D (B,H)
    # tensor, i.e. an UNBATCHED sequence of length B -> the recurrence runs over the
    # batch axis with zero (h, c) at every call.  Gate order is PyTorch's (i, f, g, o).
    inp = xn_scr[pl.ds(0, B_), :]                        # input = x[:, 0, :]

    for i in range(T_):                                  # fully unrolled (T static, small)
        x_i = xn_scr[pl.ds(i * B_, B_), :]               # (B, H)
        cur = inp
        for layer in range(L_):
            # hoisted input->gates matmul: one (B,H)@(H,4H) per layer (off the serial path)
            pre = (jnp.dot(cur, wih_ref[layer], preferred_element_type=jnp.float32)
                   + b_lstm_ref[layer])                  # (B, 4H)
            h = None
            c = None
            for s in range(B_):
                if s == 0:
                    g = pre[0:1, :]                      # h0 = c0 = 0: no recurrent matmul
                else:
                    # TODO(synk): whh could be held resident in MXU weight regs
                    # (pltpu.matmul_push_rhs/acc_lhs/pop); plain dot kept for robustness.
                    g = pre[s:s + 1, :] + jnp.dot(h, whh_ref[layer],
                                                  preferred_element_type=jnp.float32)
                # full-width nonlinearities (one EUP pass over 4H), then slice gates
                sg = jax.nn.sigmoid(g)
                tg = jnp.tanh(g)
                i_g = sg[:, 0 * H_:1 * H_]
                f_g = sg[:, 1 * H_:2 * H_]
                g_g = tg[:, 2 * H_:3 * H_]
                o_g = sg[:, 3 * H_:4 * H_]
                c = i_g * g_g if s == 0 else f_g * c + i_g * g_g
                h = o_g * jnp.tanh(c)
                row_scr[pl.ds(s, 1), :] = h              # scratch row write (no concat)
            cur = row_scr[...]                           # (B, H) -> input of next layer
        # final Linear(H, 1) fused per timestep: VPU multiply + lane reduce (no MXU)
        pred_i = jnp.sum(cur * wl, axis=-1, keepdims=True) + bl   # (B, 1)
        o_ref[pl.ds(i * B_, B_), :] = pred_i
        # teacher forcing, ratio 0.5 (deterministic blend, exactly as the PyTorch code)
        inp = cur + (x_i - cur) * 0.5


# ----------------------------------------------------------------------------
# Parameter construction (deterministic, in-script)
# ----------------------------------------------------------------------------
def init_params(key, in_features, out_features, days, num_layers=3):
    H = out_features
    ks = jax.random.split(key, 10)

    # --- Time2Vector ---
    w0 = jax.random.normal(ks[0], (in_features, 1), jnp.float32) * 0.5
    b0 = jax.random.normal(ks[1], (days, 1), jnp.float32) * 0.5
    wp = jax.random.normal(ks[2], (in_features, H - 1), jnp.float32) * 0.5
    bp = jax.random.normal(ks[3], (days, H - 1), jnp.float32) * 0.5
    w_t2v = jnp.concatenate([w0, wp], axis=1)            # (F_in, H)
    b_t2v = jnp.concatenate([b0, bp], axis=1)            # (T, H)

    # --- LayerNorm (PyTorch default init) ---
    gamma = jnp.ones((1, H), jnp.float32)
    beta = jnp.zeros((1, H), jnp.float32)

    # --- 3-layer LSTM (input size == hidden size == H), PyTorch gate order i,f,g,o ---
    scale = 1.0 / (H ** 0.5)
    kih = jax.random.split(ks[4], num_layers)
    khh = jax.random.split(ks[5], num_layers)
    kbi = jax.random.split(ks[6], num_layers)
    kbh = jax.random.split(ks[7], num_layers)
    w_ih = jnp.stack([jax.random.uniform(kih[l], (H, 4 * H), jnp.float32, -scale, scale)
                      for l in range(num_layers)])       # (L, H, 4H)
    w_hh = jnp.stack([jax.random.uniform(khh[l], (H, 4 * H), jnp.float32, -scale, scale)
                      for l in range(num_layers)])       # (L, H, 4H)
    b_lstm = jnp.stack([
        (jax.random.uniform(kbi[l], (4 * H,), jnp.float32, -scale, scale)
         + jax.random.uniform(kbh[l], (4 * H,), jnp.float32, -scale, scale))[None, :]
        for l in range(num_layers)])                     # (L, 1, 4H)

    # --- final Linear(H, 1): kaiming_normal_(fan_in) weights, default uniform bias ---
    w_lin = jax.random.normal(ks[8], (H, 1), jnp.float32) * ((2.0 / H) ** 0.5)
    b_lin = jax.random.uniform(ks[9], (1, 1), jnp.float32, -scale, scale)

    return dict(w_t2v=w_t2v, b_t2v=b_t2v, gamma=gamma, beta=beta,
                w_ih=w_ih, w_hh=w_hh, b_lstm=b_lstm, w_lin=w_lin, b_lin=b_lin)


# ----------------------------------------------------------------------------
# Wrapper (single pallas_call; all layout plumbing done by XLA outside the kernel)
# ----------------------------------------------------------------------------
@jax.jit
def temperal_model_forward(x, params):
    # x: (B, F_in, T)  -- PyTorch forward does x.permute(0,2,1) -> (B, T, F_in)
    B, F, T = x.shape
    H = params["w_t2v"].shape[1]

    # (B,F,T) -> (F, T, B) -> (F, T*B, 1): per-feature column vectors, flat row = t*B + b
    x_t2v = jnp.transpose(x, (1, 2, 0)).reshape(F, T * B, 1)
    b_rows = jnp.repeat(params["b_t2v"], B, axis=0)      # (T*B, H), row t*B+b -> day t
    wl_row = params["w_lin"].reshape(1, H)

    vmem = pl.BlockSpec(memory_space=pltpu.MemorySpace.VMEM)

    pred_flat = pl.pallas_call(
        temperal_fused_kernel,
        out_shape=jax.ShapeDtypeStruct((T * B, 1), jnp.float32),
        in_specs=[vmem] * 10,
        out_specs=vmem,
        scratch_shapes=[pltpu.VMEM((T * B, H), jnp.float32),   # normalized T2V features
                        pltpu.VMEM((B, H), jnp.float32)],      # per-layer LSTM outputs
        compiler_params=pltpu.CompilerParams(vmem_limit_bytes=16 * 1024 * 1024),
    )(x_t2v, params["w_t2v"], b_rows, params["gamma"], params["beta"],
      params["w_ih"], params["w_hh"], params["b_lstm"], wl_row, params["b_lin"])

    # (T*B, 1) -> (T, B, 1) -> (B, T, 1)
    return jnp.transpose(pred_flat.reshape(T, B, 1), (1, 0, 2))


if __name__ == "__main__":
    # small shapes: bz=2, in_features=4, days=8, out_features=hidden_dim=out_dim=32
    B, F_IN, DAYS, H = 2, 4, 8, 32

    key = jax.random.PRNGKey(0)
    kx, kp = jax.random.split(key)
    x = jax.random.normal(kx, (B, F_IN, DAYS), jnp.float32)   # (B, F_in, T)
    params = init_params(kp, F_IN, H, DAYS)

    out = temperal_model_forward(x, params)                   # (B, T, 1)
    jax.block_until_ready(out)
    assert out.shape == (B, DAYS, 1)
    print("KERNEL_OK")
</pallas_src>

<mosaic_0001>
module attributes {stable_mosaic.version = 11 : i64} {
  func.func @temperal_fused_kernel(%arg0: memref<4x16x1xf32, #tpu.memory_space<vmem>>, %arg1: memref<4x32xf32, #tpu.memory_space<vmem>>, %arg2: memref<16x32xf32, #tpu.memory_space<vmem>>, %arg3: memref<1x32xf32, #tpu.memory_space<vmem>>, %arg4: memref<1x32xf32, #tpu.memory_space<vmem>>, %arg5: memref<3x32x128xf32, #tpu.memory_space<vmem>>, %arg6: memref<3x32x128xf32, #tpu.memory_space<vmem>>, %arg7: memref<3x1x128xf32, #tpu.memory_space<vmem>>, %arg8: memref<1x32xf32, #tpu.memory_space<vmem>>, %arg9: memref<1x1xf32, #tpu.memory_space<vmem>>, %arg10: memref<16x1xf32, #tpu.memory_space<vmem>>, %arg11: memref<16x32xf32, #tpu.memory_space<vmem>>, %arg12: memref<2x32xf32, #tpu.memory_space<vmem>>) attributes {dimension_semantics = [], scalar_prefetch = 0 : i64, scratch_operands = 2 : i64, tpu.core_type = #tpu.core_type<tc>} {
    %c0 = arith.constant 0 : index
    %c0_0 = arith.constant 0 : index
    %0 = vector.load %arg2[%c0, %c0_0] : memref<16x32xf32, #tpu.memory_space<vmem>>, vector<16x32xf32>
    %c0_1 = arith.constant 0 : index
    %c0_2 = arith.constant 0 : index
    %c0_3 = arith.constant 0 : index
    %1 = vector.load %arg0[%c0_1, %c0_2, %c0_3] : memref<4x16x1xf32, #tpu.memory_space<vmem>>, vector<1x16x1xf32>
    %2 = vector.shape_cast %1 : vector<1x16x1xf32> to vector<16x1xf32>
    %c0_4 = arith.constant 0 : index
    %c0_5 = arith.constant 0 : index
    %3 = vector.load %arg1[%c0_4, %c0_5] : memref<4x32xf32, #tpu.memory_space<vmem>>, vector<1x32xf32>
    %4 = vector.broadcast %2 : vector<16x1xf32> to vector<16x32xf32>
    %5 = vector.broadcast %3 : vector<1x32xf32> to vector<16x32xf32>
    %6 = arith.mulf %4, %5 : vector<16x32xf32>
    %7 = arith.addf %0, %6 : vector<16x32xf32>
    %c1 = arith.constant 1 : index
    %c0_6 = arith.constant 0 : index
    %c0_7 = arith.constant 0 : index
    %8 = vector.load %arg0[%c1, %c0_6, %c0_7] : memref<4x16x1xf32, #tpu.memory_space<vmem>>, vector<1x16x1xf32>
    %9 = vector.shape_cast %8 : vector<1x16x1xf32> to vector<16x1xf32>
    %c1_8 = arith.constant 1 : index
    %c0_9 = arith.constant 0 : index
    %10 = vector.load %arg1[%c1_8, %c0_9] : memref<4x32xf32, #tpu.memory_space<vmem>>, vector<1x32xf32>
    %11 = vector.broadcast %9 : vector<16x1xf32> to vector<16x32xf32>
    %12 = vector.broadcast %10 : vector<1x32xf32> to vector<16x32xf32>
    %13 = arith.mulf %11, %12 : vector<16x32xf32>
    %14 = arith.addf %7, %13 : vector<16x32xf32>
    %c2 = arith.constant 2 : index
    %c0_10 = arith.constant 0 : index
    %c0_11 = arith.constant 0 : index
    %15 = vector.load %arg0[%c2, %c0_10, %c0_11] : memref<4x16x1xf32, #tpu.memory_space<vmem>>, vector<1x16x1xf32>
    %16 = vector.shape_cast %15 : vector<1x16x1xf32> to vector<16x1xf32>
    %c2_12 = arith.constant 2 : index
    %c0_13 = arith.constant 0 : index
    %17 = vector.load %arg1[%c2_12, %c0_13] : memref<4x32xf32, #tpu.memory_space<vmem>>, vector<1x32xf32>
    %18 = vector.broadcast %16 : vector<16x1xf32> to vector<16x32xf32>
    %19 = vector.broadcast %17 : vector<1x32xf32> to vector<16x32xf32>
    %20 = arith.mulf %18, %19 : vector<16x32xf32>
    %21 = arith.addf %14, %20 : vector<16x32xf32>
    %c3 = arith.constant 3 : index
    %c0_14 = arith.constant 0 : index
    %c0_15 = arith.constant 0 : index
    %22 = vector.load %arg0[%c3, %c0_14, %c0_15] : memref<4x16x1xf32, #tpu.memory_space<vmem>>, vector<1x16x1xf32>
    %23 = vector.shape_cast %22 : vector<1x16x1xf32> to vector<16x1xf32>
    %c3_16 = arith.constant 3 : index
    %c0_17 = arith.constant 0 : index
    %24 = vector.load %arg1[%c3_16, %c0_17] : memref<4x32xf32, #tpu.memory_space<vmem>>, vector<1x32xf32>
    %25 = vector.broadcast %23 : vector<16x1xf32> to vector<16x32xf32>
    %26 = vector.broadcast %24 : vector<1x32xf32> to vector<16x32xf32>
    %27 = arith.mulf %25, %26 : vector<16x32xf32>
    %28 = arith.addf %21, %27 : vector<16x32xf32>
    %29 = tpu.iota {dimensions = array<i32: 1>} : vector<16x32xi32>
    %c0_i32 = arith.constant 0 : i32
    %30 = vector.broadcast %c0_i32 : i32 to vector<16x32xi32>
    %31 = arith.cmpi eq, %29, %30 : vector<16x32xi32>
    %32 = math.sin %28 : vector<16x32xf32>
    %33 = arith.select %31, %28, %32 : vector<16x32xi1>, vector<16x32xf32>
    %cst = arith.constant dense<0.000000e+00> : vector<16xf32>
    %34 = vector.multi_reduction <add>, %33, %cst [1] : vector<16x32xf32> to vector<16xf32>
    %35 = vector.shape_cast %34 : vector<16xf32> to vector<16x1xf32>
    %cst_18 = arith.constant 3.200000e+01 : f32
    %36 = vector.broadcast %cst_18 : f32 to vector<16x1xf32>
    %37 = arith.divf %35, %36 : vector<16x1xf32>
    %38 = vector.broadcast %37 : vector<16x1xf32> to vector<16x32xf32>
    %39 = arith.subf %33, %38 : vector<16x32xf32>
    %40 = arith.mulf %39, %39 : vector<16x32xf32>
    %cst_19 = arith.constant dense<0.000000e+00> : vector<16xf32>
    %41 = vector.multi_reduction <add>, %40, %cst_19 [1] : vector<16x32xf32> to vector<16xf32>
    %42 = vector.shape_cast %41 : vector<16xf32> to vector<16x1xf32>
    %cst_20 = arith.constant 3.200000e+01 : f32
    %43 = vector.broadcast %cst_20 : f32 to vector<16x1xf32>
    %44 = arith.divf %42, %43 : vector<16x1xf32>
    %45 = vector.broadcast %37 : vector<16x1xf32> to vector<16x32xf32>
    %46 = arith.subf %33, %45 : vector<16x32xf32>
    %cst_21 = arith.constant 9.99999974E-6 : f32
    %47 = vector.broadcast %cst_21 : f32 to vector<16x1xf32>
    %48 = arith.addf %44, %47 : vector<16x1xf32>
    %49 = math.rsqrt %48 : vector<16x1xf32>
    %50 = vector.broadcast %49 : vector<16x1xf32> to vector<16x32xf32>
    %51 = arith.mulf %46, %50 : vector<16x32xf32>
    %c0_22 = arith.constant 0 : index
    %c0_23 = arith.constant 0 : index
    %52 = vector.load %arg3[%c0_22, %c0_23] : memref<1x32xf32, #tpu.memory_space<vmem>>, vector<1x32xf32>
    %53 = vector.broadcast %52 : vector<1x32xf32> to vector<16x32xf32>
    %54 = arith.mulf %51, %53 : vector<16x32xf32>
    %c0_24 = arith.constant 0 : index
    %c0_25 = arith.constant 0 : index
    %55 = vector.load %arg4[%c0_24, %c0_25] : memref<1x32xf32, #tpu.memory_space<vmem>>, vector<1x32xf32>
    %56 = vector.broadcast %55 : vector<1x32xf32> to vector<16x32xf32>
    %57 = arith.addf %54, %56 : vector<16x32xf32>
    %c0_26 = arith.constant 0 : index
    %c0_27 = arith.constant 0 : index
    %58 = vector.load %arg11[%c0_26, %c0_27] : memref<16x32xf32, #tpu.memory_space<vmem>>, vector<16x32xf32>
    tpu.vector_store %arg11[%c0_26, %c0_27], %57 {strides = array<i32>} : memref<16x32xf32, #tpu.memory_space<vmem>>, vector<16x32xf32>,
    %c0_28 = arith.constant 0 : index
    %c0_29 = arith.constant 0 : index
    %59 = vector.load %arg8[%c0_28, %c0_29] : memref<1x32xf32, #tpu.memory_space<vmem>>, vector<1x32xf32>
    %c0_30 = arith.constant 0 : index
    %c0_31 = arith.constant 0 : index
    %60 = vector.load %arg9[%c0_30, %c0_31] : memref<1x1xf32, #tpu.memory_space<vmem>>, vector<1x1xf32>
    %c0_32 = arith.constant 0 : index
    %c0_33 = arith.constant 0 : index
    %61 = vector.load %arg11[%c0_32, %c0_33] : memref<16x32xf32, #tpu.memory_space<vmem>>, vector<2x32xf32>
    %c0_34 = arith.constant 0 : index
    %c0_35 = arith.constant 0 : index
    %62 = vector.load %arg11[%c0_34, %c0_35] : memref<16x32xf32, #tpu.memory_space<vmem>>, vector<2x32xf32>
    %c0_36 = arith.constant 0 : index
    %c0_37 = arith.constant 0 : index
    %c0_38 = arith.constant 0 : index
    %63 = vector.load %arg5[%c0_36, %c0_37, %c0_38] : memref<3x32x128xf32, #tpu.memory_space<vmem>>, vector<1x32x128xf32>
    %64 = vector.shape_cast %63 : vector<1x32x128xf32> to vector<32x128xf32>
    %cst_39 = arith.constant dense<0.000000e+00> : vector<2x128xf32>
    %65 = tpu.matmul %61, %64, %cst_39 {dimension_numbers = #tpu.dot_dimension_numbers<[1], [0], [0], [1], [0, 0, 1, 1], [], []>} : vector<2x32xf32>, vector<32x128xf32>, vector<2x128xf32> -> vector<2x128xf32>
    %c0_40 = arith.constant 0 : index
    %c0_41 = arith.constant 0 : index
    %c0_42 = arith.constant 0 : index
    %66 = vector.load %arg7[%c0_40, %c0_41, %c0_42] : memref<3x1x128xf32, #tpu.memory_space<vmem>>, vector<1x1x128xf32>
    %67 = vector.shape_cast %66 : vector<1x1x128xf32> to vector<1x128xf32>
    %68 = vector.broadcast %67 : vector<1x128xf32> to vector<2x128xf32>
    %69 = arith.addf %65, %68 : vector<2x128xf32>
    %70 = vector.extract_strided_slice %69 {offsets = [0, 0], sizes = [1, 128], strides = [1, 1]} : vector<2x128xf32> to vector<1x128xf32>
    %71 = arith.negf %70 : vector<1x128xf32>
    %72 = math.exp %71 : vector<1x128xf32>
    %cst_43 = arith.constant 1.000000e+00 : f32
    %73 = vector.broadcast %cst_43 : f32 to vector<1x128xf32>
    %74 = arith.addf %73, %72 : vector<1x128xf32>
    %75 = arith.divf %73, %74 : vector<1x128xf32>
    %76 = math.tanh %70 : vector<1x128xf32>
    %77 = vector.extract_strided_slice %75 {offsets = [0, 0], sizes = [1, 32], strides = [1, 1]} : vector<1x128xf32> to vector<1x32xf32>
    %78 = vector.extract_strided_slice %76 {offsets = [0, 64], sizes = [1, 32], strides = [1, 1]} : vector<1x128xf32> to vector<1x32xf32>
    %79 = vector.extract_strided_slice %75 {offsets = [0, 96], sizes = [1, 32], strides = [1, 1]} : vector<1x128xf32> to vector<1x32xf32>
    %80 = arith.mulf %77, %78 : vector<1x32xf32>
    %81 = math.tanh %80 : vector<1x32xf32>
    %82 = arith.mulf %79, %81 : vector<1x32xf32>
    %c0_44 = arith.constant 0 : index
    %c0_45 = arith.constant 0 : index
    %83 = vector.load %arg12[%c0_44, %c0_45] : memref<2x32xf32, #tpu.memory_space<vmem>>, vector<1x32xf32>
    tpu.vector_store %arg12[%c0_44, %c0_45], %82 {strides = array<i32>} : memref<2x32xf32, #tpu.memory_space<vmem>>, vector<1x32xf32>,
    %84 = vector.extract_strided_slice %69 {offsets = [1, 0], sizes = [1, 128], strides = [1, 1]} : vector<2x128xf32> to vector<1x128xf32>
    %c0_46 = arith.constant 0 : index
    %c0_47 = arith.constant 0 : index
    %c0_48 = arith.constant 0 : index
    %85 = vector.load %arg6[%c0_46, %c0_47, %c0_48] : memref<3x32x128xf32, #tpu.memory_space<vmem>>, vector<1x32x128xf32>
    %86 = vector.shape_cast %85 : vector<1x32x128xf32> to vector<32x128xf32>
    %cst_49 = arith.constant dense<0.000000e+00> : vector<1x128xf32>
    %87 = tpu.matmul %82, %86, %cst_49 {dimension_numbers = #tpu.dot_dimension_numbers<[1], [0], [0], [1], [0, 0, 1, 1], [], []>} : vector<1x32xf32>, vector<32x128xf32>, vector<1x128xf32> -> vector<1x128xf32>
    %88 = arith.addf %84, %87 : vector<1x128xf32>
    %89 = arith.negf %88 : vector<1x128xf32>
    %90 = math.exp %89 : vector<1x128xf32>
    %cst_50 = arith.constant 1.000000e+00 : f32
    %91 = vector.broadcast %cst_50 : f32 to vector<1x128xf32>
    %92 = arith.addf %91, %90 : vector<1x128xf32>
    %93 = arith.divf %91, %92 : vector<1x128xf32>
    %94 = math.tanh %88 : vector<1x128xf32>
    %95 = vector.extract_strided_slice %93 {offsets = [0, 0], sizes = [1, 32], strides = [1, 1]} : vector<1x128xf32> to vector<1x32xf32>
    %96 = vector.extract_strided_slice %93 {offsets = [0, 32], sizes = [1, 32], strides = [1, 1]} : vector<1x128xf32> to vector<1x32xf32>
    %97 = vector.extract_strided_slice %94 {offsets = [0, 64], sizes = [1, 32], strides = [1, 1]} : vector<1x128xf32> to vector<1x32xf32>
    %98 = vector.extract_strided_slice %93 {offsets = [0, 96], sizes = [1, 32], strides = [1, 1]} : vector<1x128xf32> to vector<1x32xf32>
    %99 = arith.mulf %96, %80 : vector<1x32xf32>
    %100 = arith.mulf %95, %97 : vector<1x32xf32>
    %101 = arith.addf %99, %100 : vector<1x32xf32>
    %102 = math.tanh %101 : vector<1x32xf32>
    %103 = arith.mulf %98, %102 : vector<1x32xf32>
    %c1_51 = arith.constant 1 : index
    %c0_52 = arith.constant 0 : index
    %104 = vector.load %arg12[%c1_51, %c0_52] : memref<2x32xf32, #tpu.memory_space<vmem>>, vector<1x32xf32>
    tpu.vector_store %arg12[%c1_51, %c0_52], %103 {strides = array<i32>} : memref<2x32xf32, #tpu.memory_space<vmem>>, vector<1x32xf32>,
    %c0_53 = arith.constant 0 : index
    %c0_54 = arith.constant 0 : index
    %105 = vector.load %arg12[%c0_53, %c0_54] : memref<2x32xf32, #tpu.memory_space<vmem>>, vector<2x32xf32>
    %c1_55 = arith.constant 1 : index
    %c0_56 = arith.constant 0 : index
    %c0_57 = arith.constant 0 : index
    %106 = vector.load %arg5[%c1_55, %c0_56, %c0_57] : memref<3x32x128xf32, #tpu.memory_space<vmem>>, vector<1x32x128xf32>
    %107 = vector.shape_cast %106 : vector<1x32x128xf32> to vector<32x128xf32>
    %cst_58 = arith.constant dense<0.000000e+00> : vector<2x128xf32>
    %108 = tpu.matmul %105, %107, %cst_58 {dimension_numbers = #tpu.dot_dimension_numbers<[1], [0], [0], [1], [0, 0, 1, 1], [], []>} : vector<2x32xf32>, vector<32x128xf32>, vector<2x128xf32> -> vector<2x128xf32>
    %c1_59 = arith.constant 1 : index
    %c0_60 = arith.constant 0 : index
    %c0_61 = arith.constant 0 : index
    %109 = vector.load %arg7[%c1_59, %c0_60, %c0_61] : memref<3x1x128xf32, #tpu.memory_space<vmem>>, vector<1x1x128xf32>
    %110 = vector.shape_cast %109 : vector<1x1x128xf32> to vector<1x128xf32>
    %111 = vector.broadcast %110 : vector<1x128xf32> to vector<2x128xf32>
    %112 = arith.addf %108, %111 : vector<2x128xf32>
    %113 = vector.extract_strided_slice %112 {offsets = [0, 0], sizes = [1, 128], strides = [1, 1]} : vector<2x128xf32> to vector<1x128xf32>
    %114 = arith.negf %113 : vector<1x128xf32>
    %115 = math.exp %114 : vector<1x128xf32>
    %cst_62 = arith.constant 1.000000e+00 : f32
    %116 = vector.broadcast %cst_62 : f32 to vector<1x128xf32>
    %117 = arith.addf %116, %115 : vector<1x128xf32>
    %118 = arith.divf %116, %117 : vector<1x128xf32>
    %119 = math.tanh %113 : vector<1x128xf32>
    %120 = vector.extract_strided_slice %118 {offsets = [0, 0], sizes = [1, 32], strides = [1, 1]} : vector<1x128xf32> to vector<1x32xf32>
    %121 = vector.extract_strided_slice %119 {offsets = [0, 64], sizes = [1, 32], strides = [1, 1]} : vector<1x128xf32> to vector<1x32xf32>
    %122 = vector.extract_strided_slice %118 {offsets = [0, 96], sizes = [1, 32], strides = [1, 1]} : vector<1x128xf32> to vector<1x32xf32>
    %123 = arith.mulf %120, %121 : vector<1x32xf32>
    %124 = math.tanh %123 : vector<1x32xf32>
    %125 = arith.mulf %122, %124 : vector<1x32xf32>
    %c0_63 = arith.constant 0 : index
    %c0_64 = arith.constant 0 : index
    %126 = vector.load %arg12[%c0_63, %c0_64] : memref<2x32xf32, #tpu.memory_space<vmem>>, vector<1x32xf32>
    tpu.vector_store %arg12[%c0_63, %c0_64], %125 {strides = array<i32>} : memref<2x32xf32, #tpu.memory_space<vmem>>, vector<1x32xf32>,
    %127 = vector.extract_strided_slice %112 {offsets = [1, 0], sizes = [1, 128], strides = [1, 1]} : vector<2x128xf32> to vector<1x128xf32>
    %c1_65 = arith.constant 1 : index
    %c0_66 = arith.constant 0 : index
    %c0_67 = arith.constant 0 : index
    %128 = vector.load %arg6[%c1_65, %c0_66, %c0_67] : memref<3x32x128xf32, #tpu.memory_space<vmem>>, vector<1x32x128xf32>
    %129 = vector.shape_cast %128 : vector<1x32x128xf32> to vector<32x128xf32>
    %cst_68 = arith.constant dense<0.000000e+00> : vector<1x128xf32>
    %130 = tpu.matmul %125, %129, %cst_68 {dimension_numbers = #tpu.dot_dimension_numbers<[1], [0], [0], [1], [0, 0, 1, 1], [], []>} : vector<1x32xf32>, vector<32x128xf32>, vector<1x128xf32> -> vector<1x128xf32>
    %131 = arith.addf %127, %130 : vector<1x128xf32>
    %132 = arith.negf %131 : vector<1x128xf32>
    %133 = math.exp %132 : vector<1x128xf32>
    %cst_69 = arith.constant 1.000000e+00 : f32
    %134 = vector.broadcast %cst_69 : f32 to vector<1x128xf32>
    %135 = arith.addf %134, %133 : vector<1x128xf32>
    %136 = arith.divf %134, %135 : vector<1x128xf32>
    %137 = math.tanh %131 : vector<1x128xf32>
    %138 = vector.extract_strided_slice %136 {offsets = [0, 0], sizes = [1, 32], strides = [1, 1]} : vector<1x128xf32> to vector<1x32xf32>
    %139 = vector.extract_strided_slice %136 {offsets = [0, 32], sizes = [1, 32], strides = [1, 1]} : vector<1x128xf32> to vector<1x32xf32>
    %140 = vector.extract_strided_slice %137 {offsets = [0, 64], sizes = [1, 32], strides = [1, 1]} : vector<1x128xf32> to vector<1x32xf32>
    %141 = vector.extract_strided_slice %136 {offsets = [0, 96], sizes = [1, 32], strides = [1, 1]} : vector<1x128xf32> to vector<1x32xf32>
    %142 = arith.mulf %139, %123 : vector<1x32xf32>
    %143 = arith.mulf %138, %140 : vector<1x32xf32>
    %144 = arith.addf %142, %143 : vector<1x32xf32>
    %145 = math.tanh %144 : vector<1x32xf32>
    %146 = arith.mulf %141, %145 : vector<1x32xf32>
    %c1_70 = arith.constant 1 : index
    %c0_71 = arith.constant 0 : index
    %147 = vector.load %arg12[%c1_70, %c0_71] : memref<2x32xf32, #tpu.memory_space<vmem>>, vector<1x32xf32>
    tpu.vector_store %arg12[%c1_70, %c0_71], %146 {strides = array<i32>} : memref<2x32xf32, #tpu.memory_space<vmem>>, vector<1x32xf32>,
    %c0_72 = arith.constant 0 : index
    %c0_73 = arith.constant 0 : index
    %148 = vector.load %arg12[%c0_72, %c0_73] : memref<2x32xf32, #tpu.memory_space<vmem>>, vector<2x32xf32>
    %c2_74 = arith.constant 2 : index
    %c0_75 = arith.constant 0 : index
    %c0_76 = arith.constant 0 : index
    %149 = vector.load %arg5[%c2_74, %c0_75, %c0_76] : memref<3x32x128xf32, #tpu.memory_space<vmem>>, vector<1x32x128xf32>
    %150 = vector.shape_cast %149 : vector<1x32x128xf32> to vector<32x128xf32>
    %cst_77 = arith.constant dense<0.000000e+00> : vector<2x128xf32>
    %151 = tpu.matmul %148, %150, %cst_77 {dimension_numbers = #tpu.dot_dimension_numbers<[1], [0], [0], [1], [0, 0, 1, 1], [], []>} : vector<2x32xf32>, vector<32x128xf32>, vector<2x128xf32> -> vector<2x128xf32>
    %c2_78 = arith.constant 2 : index
    %c0_79 = arith.constant 0 : index
    %c0_80 = arith.constant 0 : index
    %152 = vector.load %arg7[%c2_78, %c0_79, %c0_80] : memref<3x1x128xf32, #tpu.memory_space<vmem>>, vector<1x1x128xf32>
    %153 = vector.shape_cast %152 : vector<1x1x128xf32> to vector<1x128xf32>
    %154 = vector.broadcast %153 : vector<1x128xf32> to vector<2x128xf32>
    %155 = arith.addf %151, %154 : vector<2x128xf32>
    %156 = vector.extract_strided_slice %155 {offsets = [0, 0], sizes = [1, 128], strides = [1, 1]} : vector<2x128xf32> to vector<1x128xf32>
    %157 = arith.negf %156 : vector<1x128xf32>
    %158 = math.exp %157 : vector<1x128xf32>
    %cst_81 = arith.constant 1.000000e+00 : f32
    %159 = vector.broadcast %cst_81 : f32 to vector<1x128xf32>
    %160 = arith.addf %159, %158 : vector<1x128xf32>
    %161 = arith.divf %159, %160 : vector<1x128xf32>
    %162 = math.tanh %156 : vector<1x128xf32>
    %163 = vector.extract_strided_slice %161 {offsets = [0, 0], sizes = [1, 32], strides = [1, 1]} : vector<1x128xf32> to vector<1x32xf32>
    %164 = vector.extract_strided_slice %162 {offsets = [0, 64], sizes = [1, 32], strides = [1, 1]} : vector<1x128xf32> to vector<1x32xf32>
    %165 = vector.extract_strided_slice %161 {offsets = [0, 96], sizes = [1, 32], strides = [1, 1]} : vector<1x128xf32> to vector<1x32xf32>
    %166 = arith.mulf %163, %164 : vector<1x32xf32>
    %167 = math.tanh %166 : vector<1x32xf32>
    %168 = arith.mulf %165, %167 : vector<1x32xf32>
    %c0_82 = arith.constant 0 : index
    %c0_83 = arith.constant 0 : index
    %169 = vector.load %arg12[%c0_82, %c0_83] : memref<2x32xf32, #tpu.memory_space<vmem>>, vector<1x32xf32>
    tpu.vector_store %arg12[%c0_82, %c0_83], %168 {strides = array<i32>} : memref<2x32xf32, #tpu.memory_space<vmem>>, vector<1x32xf32>,
    %170 = vector.extract_strided_slice %155 {offsets = [1, 0], sizes = [1, 128], strides = [1, 1]} : vector<2x128xf32> to vector<1x128xf32>
    %c2_84 = arith.constant 2 : index
    %c0_85 = arith.constant 0 : index
    %c0_86 = arith.constant 0 : index
    %171 = vector.load %arg6[%c2_84, %c0_85, %c0_86] : memref<3x32x128xf32, #tpu.memory_space<vmem>>, vector<1x32x128xf32>
    %172 = vector.shape_cast %171 : vector<1x32x128xf32> to vector<32x128xf32>
    %cst_87 = arith.constant dense<0.000000e+00> : vector<1x128xf32>
    %173 = tpu.matmul %168, %172, %cst_87 {dimension_numbers = #tpu.dot_dimension_numbers<[1], [0], [0], [1], [0, 0, 1, 1], [], []>} : vector<1x32xf32>, vector<32x128xf32>, vector<1x128xf32> -> vector<1x128xf32>
    %174 = arith.addf %170, %173 : vector<1x128xf32>
    %175 = arith.negf %174 : vector<1x128xf32>
    %176 = math.exp %175 : vector<1x128xf32>
    %cst_88 = arith.constant 1.000000e+00 : f32
    %177 = vector.broadcast %cst_88 : f32 to vector<1x128xf32>
    %178 = arith.addf %177, %176 : vector<1x128xf32>
    %179 = arith.divf %177, %178 : vector<1x128xf32>
    %180 = math.tanh %174 : vector<1x128xf32>
    %181 = vector.extract_strided_slice %179 {offsets = [0, 0], sizes = [1, 32], strides = [1, 1]} : vector<1x128xf32> to vector<1x32xf32>
    %182 = vector.extract_strided_slice %179 {offsets = [0, 32], sizes = [1, 32], strides = [1, 1]} : vector<1x128xf32> to vector<1x32xf32>
    %183 = vector.extract_strided_slice %180 {offsets = [0, 64], sizes = [1, 32], strides = [1, 1]} : vector<1x128xf32> to vector<1x32xf32>
    %184 = vector.extract_strided_slice %179 {offsets = [0, 96], sizes = [1, 32], strides = [1, 1]} : vector<1x128xf32> to vector<1x32xf32>
    %185 = arith.mulf %182, %166 : vector<1x32xf32>
    %186 = arith.mulf %181, %183 : vector<1x32xf32>
    %187 = arith.addf %185, %186 : vector<1x32xf32>
    %188 = math.tanh %187 : vector<1x32xf32>
    %189 = arith.mulf %184, %188 : vector<1x32xf32>
    %c1_89 = arith.constant 1 : index
    %c0_90 = arith.constant 0 : index
    %190 = vector.load %arg12[%c1_89, %c0_90] : memref<2x32xf32, #tpu.memory_space<vmem>>, vector<1x32xf32>
    tpu.vector_store %arg12[%c1_89, %c0_90], %189 {strides = array<i32>} : memref<2x32xf32, #tpu.memory_space<vmem>>, vector<1x32xf32>,
    %c0_91 = arith.constant 0 : index
    %c0_92 = arith.constant 0 : index
    %191 = vector.load %arg12[%c0_91, %c0_92] : memref<2x32xf32, #tpu.memory_space<vmem>>, vector<2x32xf32>
    %192 = vector.broadcast %59 : vector<1x32xf32> to vector<2x32xf32>
    %193 = arith.mulf %191, %192 : vector<2x32xf32>
    %cst_93 = arith.constant dense<0.000000e+00> : vector<2xf32>
    %194 = vector.multi_reduction <add>, %193, %cst_93 [1] : vector<2x32xf32> to vector<2xf32>
    %195 = vector.shape_cast %194 : vector<2xf32> to vector<2x1xf32>
    %196 = vector.broadcast %60 : vector<1x1xf32> to vector<2x1xf32>
    %197 = arith.addf %195, %196 : vector<2x1xf32>
    %c0_94 = arith.constant 0 : index
    %c0_95 = arith.constant 0 : index
    %198 = vector.load %arg10[%c0_94, %c0_95] : memref<16x1xf32, #tpu.memory_space<vmem>>, vector<2x1xf32>
    tpu.vector_store %arg10[%c0_94, %c0_95], %197 {strides = array<i32>} : memref<16x1xf32, #tpu.memory_space<vmem>>, vector<2x1xf32>,
    %199 = arith.subf %62, %191 : vector<2x32xf32>
    %cst_96 = arith.constant 5.000000e-01 : f32
    %200 = vector.broadcast %cst_96 : f32 to vector<2x32xf32>
    %201 = arith.mulf %199, %200 : vector<2x32xf32>
    %202 = arith.addf %191, %201 : vector<2x32xf32>
    %c2_97 = arith.constant 2 : index
    %c0_98 = arith.constant 0 : index
    %203 = vector.load %arg11[%c2_97, %c0_98] : memref<16x32xf32, #tpu.memory_space<vmem>>, vector<2x32xf32>
    %c0_99 = arith.constant 0 : index
    %c0_100 = arith.constant 0 : index
    %c0_101 = arith.constant 0 : index
    %204 = vector.load %arg5[%c0_99, %c0_100, %c0_101] : memref<3x32x128xf32, #tpu.memory_space<vmem>>, vector<1x32x128xf32>
    %205 = vector.shape_cast %204 : vector<1x32x128xf32> to vector<32x128xf32>
    %cst_102 = arith.constant dense<0.000000e+00> : vector<2x128xf32>
    %206 = tpu.matmul %202, %205, %cst_102 {dimension_numbers = #tpu.dot_dimension_numbers<[1], [0], [0], [1], [0, 0, 1, 1], [], []>} : vector<2x32xf32>, vector<32x128xf32>, vector<2x128xf32> -> vector<2x128xf32>
    %c0_103 = arith.constant 0 : index
    %c0_104 = arith.constant 0 : index
    %c0_105 = arith.constant 0 : index
    %207 = vector.load %arg7[%c0_103, %c0_104, %c0_105] : memref<3x1x128xf32, #tpu.memory_space<vmem>>, vector<1x1x128xf32>
    %208 = vector.shape_cast %207 : vector<1x1x128xf32> to vector<1x128xf32>
    %209 = vector.broadcast %208 : vector<1x128xf32> to vector<2x128xf32>
    %210 = arith.addf %206, %209 : vector<2x128xf32>
    %211 = vector.extract_strided_slice %210 {offsets = [0, 0], sizes = [1, 128], strides = [1, 1]} : vector<2x128xf32> to vector<1x128xf32>
    %212 = arith.negf %211 : vector<1x128xf32>
    %213 = math.exp %212 : vector<1x128xf32>
    %cst_106 = arith.constant 1.000000e+00 : f32
    %214 = vector.broadcast %cst_106 : f32 to vector<1x128xf32>
    %215 = arith.addf %214, %213 : vector<1x128xf32>
    %216 = arith.divf %214, %215 : vector<1x128xf32>
    %217 = math.tanh %211 : vector<1x128xf32>
    %218 = vector.extract_strided_slice %216 {offsets = [0, 0], sizes = [1, 32], strides = [1, 1]} : vector<1x128xf32> to vector<1x32xf32>
    %219 = vector.extract_strided_slice %217 {offsets = [0, 64], sizes = [1, 32], strides = [1, 1]} : vector<1x128xf32> to vector<1x32xf32>
    %220 = vector.extract_strided_slice %216 {offsets = [0, 96], sizes = [1, 32], strides = [1, 1]} : vector<1x128xf32> to vector<1x32xf32>
    %221 = arith.mulf %218, %219 : vector<1x32xf32>
    %222 = math.tanh %221 : vector<1x32xf32>
    %223 = arith.mulf %220, %222 : vector<1x32xf32>
    %c0_107 = arith.constant 0 : index
    %c0_108 = arith.constant 0 : index
    %224 = vector.load %arg12[%c0_107, %c0_108] : memref<2x32xf32, #tpu.memory_space<vmem>>, vector<1x32xf32>
    tpu.vector_store %arg12[%c0_107, %c0_108], %223 {strides = array<i32>} : memref<2x32xf32, #tpu.memory_space<vmem>>, vector<1x32xf32>,
    %225 = vector.extract_strided_slice %210 {offsets = [1, 0], sizes = [1, 128], strides = [1, 1]} : vector<2x128xf32> to vector<1x128xf32>
    %c0_109 = arith.constant 0 : index
    %c0_110 = arith.constant 0 : index
    %c0_111 = arith.constant 0 : index
    %226 = vector.load %arg6[%c0_109, %c0_110, %c0_111] : memref<3x32x128xf32, #tpu.memory_space<vmem>>, vector<1x32x128xf32>
    %227 = vector.shape_cast %226 : vector<1x32x128xf32> to vector<32x128xf32>
    %cst_112 = arith.constant dense<0.000000e+00> : vector<1x128xf32>
    %228 = tpu.matmul %223, %227, %cst_112 {dimension_numbers = #tpu.dot_dimension_numbers<[1], [0], [0], [1], [0, 0, 1, 1], [], []>} : vector<1x32xf32>, vector<32x128xf32>, vector<1x128xf32> -> vector<1x128xf32>
    %229 = arith.addf %225, %228 : vector<1x128xf32>
    %230 = arith.negf %229 : vector<1x128xf32>
    %231 = math.exp %230 : vector<1x128xf32>
    %cst_113 = arith.constant 1.000000e+00 : f32
    %232 = vector.broadcast %cst_113 : f32 to vector<1x128xf32>
    %233 = arith.addf %232, %231 : vector<1x128xf32>
    %234 = arith.divf %232, %233 : vector<1x128xf32>
    %235 = math.tanh %229 : vector<1x128xf32>
    %236 = vector.extract_strided_slice %234 {offsets = [0, 0], sizes = [1, 32], strides = [1, 1]} : vector<1x128xf32> to vector<1x32xf32>
    %237 = vector.extract_strided_slice %234 {offsets = [0, 32], sizes = [1, 32], strides = [1, 1]} : vector<1x128xf32> to vector<1x32xf32>
    %238 = vector.extract_strided_slice %235 {offsets = [0, 64], sizes = [1, 32], strides = [1, 1]} : vector<1x128xf32> to vector<1x32xf32>
    %239 = vector.extract_strided_slice %234 {offsets = [0, 96], sizes = [1, 32], strides = [1, 1]} : vector<1x128xf32> to vector<1x32xf32>
    %240 = arith.mulf %237, %221 : vector<1x32xf32>
    %241 = arith.mulf %236, %238 : vector<1x32xf32>
    %242 = arith.addf %240, %241 : vector<1x32xf32>
    %243 = math.tanh %242 : vector<1x32xf32>
    %244 = arith.mulf %239, %243 : vector<1x32xf32>
    %c1_114 = arith.constant 1 : index
    %c0_115 = arith.constant 0 : index
    %245 = vector.load %arg12[%c1_114, %c0_115] : memref<2x32xf32, #tpu.memory_space<vmem>>, vector<1x32xf32>
    tpu.vector_store %arg12[%c1_114, %c0_115], %244 {strides = array<i32>} : memref<2x32xf32, #tpu.memory_space<vmem>>, vector<1x32xf32>,
    %c0_116 = arith.constant 0 : index
    %c0_117 = arith.constant 0 : index
    %246 = vector.load %arg12[%c0_116, %c0_117] : memref<2x32xf32, #tpu.memory_space<vmem>>, vector<2x32xf32>
    %c1_118 = arith.constant 1 : index
    %c0_119 = arith.constant 0 : index
    %c0_120 = arith.constant 0 : index
    %247 = vector.load %arg5[%c1_118, %c0_119, %c0_120] : memref<3x32x128xf32, #tpu.memory_space<vmem>>, vector<1x32x128xf32>
    %248 = vector.shape_cast %247 : vector<1x32x128xf32> to vector<32x128xf32>
    %cst_121 = arith.constant dense<0.000000e+00> : vector<2x128xf32>
    %249 = tpu.matmul %246, %248, %cst_121 {dimension_numbers = #tpu.dot_dimension_numbers<[1], [0], [0], [1], [0, 0, 1, 1], [], []>} : vector<2x32xf32>, vector<32x128xf32>, vector<2x128xf32> -> vector<2x128xf32>
    %c1_122 = arith.constant 1 : index
    %c0_123 = arith.constant 0 : index
    %c0_124 = arith.constant 0 : index
    %250 = vector.load %arg7[%c1_122, %c0_123, %c0_124] : memref<3x1x128xf32, #tpu.memory_space<vmem>>, vector<1x1x128xf32>
    %251 = vector.shape_cast %250 : vector<1x1x128xf32> to vector<1x128xf32>
    %252 = vector.broadcast %251 : vector<1x128xf32> to vector<2x128xf32>
    %253 = arith.addf %249, %252 : vector<2x128xf32>
    %254 = vector.extract_strided_slice %253 {offsets = [0, 0], sizes = [1, 128], strides = [1, 1]} : vector<2x128xf32> to vector<1x128xf32>
    %255 = arith.negf %254 : vector<1x128xf32>
    %256 = math.exp %255 : vector<1x128xf32>
    %cst_125 = arith.constant 1.000000e+00 : f32
    %257 = vector.broadcast %cst_125 : f32 to vector<1x128xf32>
    %258 = arith.addf %257, %256 : vector<1x128xf32>
    %259 = arith.divf %257, %258 : vector<1x128xf32>
    %260 = math.tanh %254 : vector<1x128xf32>
    %261 = vector.extract_strided_slice %259 {offsets = [0, 0], sizes = [1, 32], strides = [1, 1]} : vector<1x128xf32> to vector<1x32xf32>
    %262 = vector.extract_strided_slice %260 {offsets = [0, 64], sizes = [1, 32], strides = [1, 1]} : vector<1x128xf32> to vector<1x32xf32>
    %263 = vector.extract_strided_slice %259 {offsets = [0, 96], sizes = [1, 32], strides = [1, 1]} : vector<1x128xf32> to vector<1x32xf32>
    %264 = arith.mulf %261, %262 : vector<1x32xf32>
    %265 = math.tanh %264 : vector<1x32xf32>
    %266 = arith.mulf %263, %265 : vector<1x32xf32>
    %c0_126 = arith.constant 0 : index
    %c0_127 = arith.constant 0 : index
    %267 = vector.load %arg12[%c0_126, %c0_127] : memref<2x32xf32, #tpu.memory_space<vmem>>, vector<1x32xf32>
    tpu.vector_store %arg12[%c0_126, %c0_127], %266 {strides = array<i32>} : memref<2x32xf32, #tpu.memory_space<vmem>>, vector<1x32xf32>,
    %268 = vector.extract_strided_slice %253 {offsets = [1, 0], sizes = [1, 128], strides = [1, 1]} : vector<2x128xf32> to vector<1x128xf32>
    %c1_128 = arith.constant 1 : index
    %c0_129 = arith.constant 0 : index
    %c0_130 = arith.constant 0 : index
    %269 = vector.load %arg6[%c1_128, %c0_129, %c0_130] : memref<3x32x128xf32, #tpu.memory_space<vmem>>, vector<1x32x128xf32>
    %270 = vector.shape_cast %269 : vector<1x32x128xf32> to vector<32x128xf32>
    %cst_131 = arith.constant dense<0.000000e+00> : vector<1x128xf32>
    %271 = tpu.matmul %266, %270, %cst_131 {dimension_numbers = #tpu.dot_dimension_numbers<[1], [0], [0], [1], [0, 0, 1, 1], [], []>} : vector<1x32xf32>, vector<32x128xf32>, vector<1x128xf32> -> vector<1x128xf32>
    %272 = arith.addf %268, %271 : vector<1x128xf32>
    %273 = arith.negf %272 : vector<1x128xf32>
    %274 = math.exp %273 : vector<1x128xf32>
    %cst_132 = arith.constant 1.000000e+00 : f32
    %275 = vector.broadcast %cst_132 : f32 to vector<1x128xf32>
    %276 = arith.addf %275, %274 : vector<1x128xf32>
    %277 = arith.divf %275, %276 : vector<1x128xf32>
    %278 = math.tanh %272 : vector<1x128xf32>
    %279 = vector.extract_strided_slice %277 {offsets = [0, 0], sizes = [1, 32], strides = [1, 1]} : vector<1x128xf32> to vector<1x32xf32>
    %280 = vector.extract_strided_slice %277 {offsets = [0, 32], sizes = [1, 32], strides = [1, 1]} : vector<1x128xf32> to vector<1x32xf32>
    %281 = vector.extract_strided_slice %278 {offsets = [0, 64], sizes = [1, 32], strides = [1, 1]} : vector<1x128xf32> to vector<1x32xf32>
    %282 = vector.extract_strided_slice %277 {offsets = [0, 96], sizes = [1, 32], strides = [1, 1]} : vector<1x128xf32> to vector<1x32xf32>
    %283 = arith.mulf %280, %264 : vector<1x32xf32>
    %284 = arith.mulf %279, %281 : vector<1x32xf32>
    %285 = arith.addf %283, %284 : vector<1x32xf32>
    %286 = math.tanh %285 : vector<1x32xf32>
    %287 = arith.mulf %282, %286 : vector<1x32xf32>
    %c1_133 = arith.constant 1 : index
    %c0_134 = arith.constant 0 : index
    %288 = vector.load %arg12[%c1_133, %c0_134] : memref<2x32xf32, #tpu.memory_space<vmem>>, vector<1x32xf32>
    tpu.vector_store %arg12[%c1_133, %c0_134], %287 {strides = array<i32>} : memref<2x32xf32, #tpu.memory_space<vmem>>, vector<1x32xf32>,
    %c0_135 = arith.constant 0 : index
    %c0_136 = arith.constant 0 : index
    %289 = vector.load %arg12[%c0_135, %c0_136] : memref<2x32xf32, #tpu.memory_space<vmem>>, vector<2x32xf32>
    %c2_137 = arith.constant 2 : index
    %c0_138 = arith.constant 0 : index
    %c0_139 = arith.constant 0 : index
    %290 = vector.load %arg5[%c2_137, %c0_138, %c0_139] : memref<3x32x128xf32, #tpu.memory_space<vmem>>, vector<1x32x128xf32>
    %291 = vector.shape_cast %290 : vector<1x32x128xf32> to vector<32x128xf32>
    %cst_140 = arith.constant dense<0.000000e+00> : vector<2x128xf32>
    %292 = tpu.matmul %289, %291, %cst_140 {dimension_numbers = #tpu.dot_dimension_numbers<[1], [0], [0], [1], [0, 0, 1, 1], [], []>} : vector<2x32xf32>, vector<32x128xf32>, vector<2x128xf32> -> vector<2x128xf32>
    %c2_141 = arith.constant 2 : index
    %c0_142 = arith.constant 0 : index
    %c0_143 = arith.constant 0 : index
    %293 = vector.load %arg7[%c2_141, %c0_142, %c0_143] : memref<3x1x128xf32, #tpu.memory_space<vmem>>, vector<1x1x128xf32>
    %294 = vector.shape_cast %293 : vector<1x1x128xf32> to vector<1x128xf32>
    %295 = vector.broadcast %294 : vector<1x128xf32> to vector<2x128xf32>
    %296 = arith.addf %292, %295 : vector<2x128xf32>
    %297 = vector.extract_strided_slice %296 {offsets = [0, 0], sizes = [1, 128], strides = [1, 1]} : vector<2x128xf32> to vector<1x128xf32>
    %298 = arith.negf %297 : vector<1x128xf32>
    %299 = math.exp %298 : vector<1x128xf32>
    %cst_144 = arith.constant 1.000000e+00 : f32
    %300 = vector.broadcast %cst_144 : f32 to vector<1x128xf32>
    %301 = arith.addf %300, %299 : vector<1x128xf32>
    %302 = arith.divf %300, %301 : vector<1x128xf32>
    %303 = math.tanh %297 : vector<1x128xf32>
    %304 = vector.extract_strided_slice %302 {offsets = [0, 0], sizes = [1, 32], strides = [1, 1]} : vector<1x128xf32> to vector<1x32xf32>
    %305 = vector.extract_strided_slice %303 {offsets = [0, 64], sizes = [1, 32], strides = [1, 1]} : vector<1x128xf32> to vector<1x32xf32>
    %306 = vector.extract_strided_slice %302 {offsets = [0, 96], sizes = [1, 32], strides = [1, 1]} : vector<1x128xf32> to vector<1x32xf32>
    %307 = arith.mulf %304, %305 : vector<1x32xf32>
    %308 = math.tanh %307 : vector<1x32xf32>
    %309 = arith.mulf %306, %308 : vector<1x32xf32>
    %c0_145 = arith.constant 0 : index
    %c0_146 = arith.constant 0 : index
    %310 = vector.load %arg12[%c0_145, %c0_146] : memref<2x32xf32, #tpu.memory_space<vmem>>, vector<1x32xf32>
    tpu.vector_store %arg12[%c0_145, %c0_146], %309 {strides = array<i32>} : memref<2x32xf32, #tpu.memory_space<vmem>>, vector<1x32xf32>,
    %311 = vector.extract_strided_slice %296 {offsets = [1, 0], sizes = [1, 128], strides = [1, 1]} : vector<2x128xf32> to vector<1x128xf32>
    %c2_147 = arith.constant 2 : index
    %c0_148 = arith.constant 0 : index
    %c0_149 = arith.constant 0 : index
    %312 = vector.load %arg6[%c2_147, %c0_148, %c0_149] : memref<3x32x128xf32, #tpu.memory_space<vmem>>, vector<1x32x128xf32>
    %313 = vector.shape_cast %312 : vector<1x32x128xf32> to vector<32x128xf32>
    %cst_150 = arith.constant dense<0.000000e+00> : vector<1x128xf32>
    %314 = tpu.matmul %309, %313, %cst_150 {dimension_numbers = #tpu.dot_dimension_numbers<[1], [0], [0], [1], [0, 0, 1, 1], [], []>} : vector<1x32xf32>, vector<32x128xf32>, vector<1x128xf32> -> vector<1x128xf32>
    %315 = arith.addf %311, %314 : vector<1x128xf32>
    %316 = arith.negf %315 : vector<1x128xf32>
    %317 = math.exp %316 : vector<1x128xf32>
    %cst_151 = arith.constant 1.000000e+00 : f32
    %318 = vector.broadcast %cst_151 : f32 to vector<1x128xf32>
    %319 = arith.addf %318, %317 : vector<1x128xf32>
    %320 = arith.divf %318, %319 : vector<1x128xf32>
    %321 = math.tanh %315 : vector<1x128xf32>
    %322 = vector.extract_strided_slice %320 {offsets = [0, 0], sizes = [1, 32], strides = [1, 1]} : vector<1x128xf32> to vector<1x32xf32>
    %323 = vector.extract_strided_slice %320 {offsets = [0, 32], sizes = [1, 32], strides = [1, 1]} : vector<1x128xf32> to vector<1x32xf32>
    %324 = vector.extract_strided_slice %321 {offsets = [0, 64], sizes = [1, 32], strides = [1, 1]} : vector<1x128xf32> to vector<1x32xf32>
    %325 = vector.extract_strided_slice %320 {offsets = [0, 96], sizes = [1, 32], strides = [1, 1]} : vector<1x128xf32> to vector<1x32xf32>
    %326 = arith.mulf %323, %307 : vector<1x32xf32>
    %327 = arith.mulf %322, %324 : vector<1x32xf32>
    %328 = arith.addf %326, %327 : vector<1x32xf32>
    %329 = math.tanh %328 : vector<1x32xf32>
    %330 = arith.mulf %325, %329 : vector<1x32xf32>
    %c1_152 = arith.constant 1 : index
    %c0_153 = arith.constant 0 : index
    %331 = vector.load %arg12[%c1_152, %c0_153] : memref<2x32xf32, #tpu.memory_space<vmem>>, vector<1x32xf32>
    tpu.vector_store %arg12[%c1_152, %c0_153], %330 {strides = array<i32>} : memref<2x32xf32, #tpu.memory_space<vmem>>, vector<1x32xf32>,
    %c0_154 = arith.constant 0 : index
    %c0_155 = arith.constant 0 : index
    %332 = vector.load %arg12[%c0_154, %c0_155] : memref<2x32xf32, #tpu.memory_space<vmem>>, vector<2x32xf32>
    %333 = vector.broadcast %59 : vector<1x32xf32> to vector<2x32xf32>
    %334 = arith.mulf %332, %333 : vector<2x32xf32>
    %cst_156 = arith.constant dense<0.000000e+00> : vector<2xf32>
    %335 = vector.multi_reduction <add>, %334, %cst_156 [1] : vector<2x32xf32> to vector<2xf32>
    %336 = vector.shape_cast %335 : vector<2xf32> to vector<2x1xf32>
    %337 = vector.broadcast %60 : vector<1x1xf32> to vector<2x1xf32>
    %338 = arith.addf %336, %337 : vector<2x1xf32>
    %c2_157 = arith.constant 2 : index
    %c0_158 = arith.constant 0 : index
    %339 = vector.load %arg10[%c2_157, %c0_158] : memref<16x1xf32, #tpu.memory_space<vmem>>, vector<2x1xf32>
    tpu.vector_store %arg10[%c2_157, %c0_158], %338 {strides = array<i32>} : memref<16x1xf32, #tpu.memory_space<vmem>>, vector<2x1xf32>,
    %340 = arith.subf %203, %332 : vector<2x32xf32>
    %cst_159 = arith.constant 5.000000e-01 : f32
    %341 = vector.broadcast %cst_159 : f32 to vector<2x32xf32>
    %342 = arith.mulf %340, %341 : vector<2x32xf32>
    %343 = arith.addf %332, %342 : vector<2x32xf32>
    %c4 = arith.constant 4 : index
    %c0_160 = arith.constant 0 : index
    %344 = vector.load %arg11[%c4, %c0_160] : memref<16x32xf32, #tpu.memory_space<vmem>>, vector<2x32xf32>
    %c0_161 = arith.constant 0 : index
    %c0_162 = arith.constant 0 : index
    %c0_163 = arith.constant 0 : index
    %345 = vector.load %arg5[%c0_161, %c0_162, %c0_163] : memref<3x32x128xf32, #tpu.memory_space<vmem>>, vector<1x32x128xf32>
    %346 = vector.shape_cast %345 : vector<1x32x128xf32> to vector<32x128xf32>
    %cst_164 = arith.constant dense<0.000000e+00> : vector<2x128xf32>
    %347 = tpu.matmul %343, %346, %cst_164 {dimension_numbers = #tpu.dot_dimension_numbers<[1], [0], [0], [1], [0, 0, 1, 1], [], []>} : vector<2x32xf32>, vector<32x128xf32>, vector<2x128xf32> -> vector<2x128xf32>
    %c0_165 = arith.constant 0 : index
    %c0_166 = arith.constant 0 : index
    %c0_167 = arith.constant 0 : index
    %348 = vector.load %arg7[%c0_165, %c0_166, %c0_167] : memref<3x1x128xf32, #tpu.memory_space<vmem>>, vector<1x1x128xf32>
    %349 = vector.shape_cast %348 : vector<1x1x128xf32> to vector<1x128xf32>
    %350 = vector.broadcast %349 : vector<1x128xf32> to vector<2x128xf32>
    %351 = arith.addf %347, %350 : vector<2x128xf32>
    %352 = vector.extract_strided_slice %351 {offsets = [0, 0], sizes = [1, 128], strides = [1, 1]} : vector<2x128xf32> to vector<1x128xf32>
    %353 = arith.negf %352 : vector<1x128xf32>
    %354 = math.exp %353 : vector<1x128xf32>
    %cst_168 = arith.constant 1.000000e+00 : f32
    %355 = vector.broadcast %cst_168 : f32 to vector<1x128xf32>
    %356 = arith.addf %355, %354 : vector<1x128xf32>
    %357 = arith.divf %355, %356 : vector<1x128xf32>
    %358 = math.tanh %352 : vector<1x128xf32>
    %359 = vector.extract_strided_slice %357 {offsets = [0, 0], sizes = [1, 32], strides = [1, 1]} : vector<1x128xf32> to vector<1x32xf32>
    %360 = vector.extract_strided_slice %358 {offsets = [0, 64], sizes = [1, 32], strides = [1, 1]} : vector<1x128xf32> to vector<1x32xf32>
    %361 = vector.extract_strided_slice %357 {offsets = [0, 96], sizes = [1, 32], strides = [1, 1]} : vector<1x128xf32> to vector<1x32xf32>
    %362 = arith.mulf %359, %360 : vector<1x32xf32>
    %363 = math.tanh %362 : vector<1x32xf32>
    %364 = arith.mulf %361, %363 : vector<1x32xf32>
    %c0_169 = arith.constant 0 : index
    %c0_170 = arith.constant 0 : index
    %365 = vector.load %arg12[%c0_169, %c0_170] : memref<2x32xf32, #tpu.memory_space<vmem>>, vector<1x32xf32>
    tpu.vector_store %arg12[%c0_169, %c0_170], %364 {strides = array<i32>} : memref<2x32xf32, #tpu.memory_space<vmem>>, vector<1x32xf32>,
    %366 = vector.extract_strided_slice %351 {offsets = [1, 0], sizes = [1, 128], strides = [1, 1]} : vector<2x128xf32> to vector<1x128xf32>
    %c0_171 = arith.constant 0 : index
    %c0_172 = arith.constant 0 : index
    %c0_173 = arith.constant 0 : index
    %367 = vector.load %arg6[%c0_171, %c0_172, %c0_173] : memref<3x32x128xf32, #tpu.memory_space<vmem>>, vector<1x32x128xf32>
    %368 = vector.shape_cast %367 : vector<1x32x128xf32> to vector<32x128xf32>
    %cst_174 = arith.constant dense<0.000000e+00> : vector<1x128xf32>
    %369 = tpu.matmul %364, %368, %cst_174 {dimension_numbers = #tpu.dot_dimension_numbers<[1], [0], [0], [1], [0, 0, 1, 1], [], []>} : vector<1x32xf32>, vector<32x128xf32>, vector<1x128xf32> -> vector<1x128xf32>
    %370 = arith.addf %366, %369 : vector<1x128xf32>
    %371 = arith.negf %370 : vector<1x128xf32>
    %372 = math.exp %371 : vector<1x128xf32>
    %cst_175 = arith.constant 1.000000e+00 : f32
    %373 = vector.broadcast %cst_175 : f32 to vector<1x128xf32>
    %374 = arith.addf %373, %372 : vector<1x128xf32>
    %375 = arith.divf %373, %374 : vector<1x128xf32>
    %376 = math.tanh %370 : vector<1x128xf32>
    %377 = vector.extract_strided_slice %375 {offsets = [0, 0], sizes = [1, 32], strides = [1, 1]} : vector<1x128xf32> to vector<1x32xf32>
    %378 = vector.extract_strided_slice %375 {offsets = [0, 32], sizes = [1, 32], strides = [1, 1]} : vector<1x128xf32> to vector<1x32xf32>
    %379 = vector.extract_strided_slice %376 {offsets = [0, 64], sizes = [1, 32], strides = [1, 1]} : vector<1x128xf32> to vector<1x32xf32>
    %380 = vector.extract_strided_slice %375 {offsets = [0, 96], sizes = [1, 32], strides = [1, 1]} : vector<1x128xf32> to vector<1x32xf32>
    %381 = arith.mulf %378, %362 : vector<1x32xf32>
    %382 = arith.mulf %377, %379 : vector<1x32xf32>
    %383 = arith.addf %381, %382 : vector<1x32xf32>
    %384 = math.tanh %383 : vector<1x32xf32>
    %385 = arith.mulf %380, %384 : vector<1x32xf32>
    %c1_176 = arith.constant 1 : index
    %c0_177 = arith.constant 0 : index
    %386 = vector.load %arg12[%c1_176, %c0_177] : memref<2x32xf32, #tpu.memory_space<vmem>>, vector<1x32xf32>
    tpu.vector_store %arg12[%c1_176, %c0_177], %385 {strides = array<i32>} : memref<2x32xf32, #tpu.memory_space<vmem>>, vector<1x32xf32>,
    %c0_178 = arith.constant 0 : index
    %c0_179 = arith.constant 0 : index
    %387 = vector.load %arg12[%c0_178, %c0_179] : memref<2x32xf32, #tpu.memory_space<vmem>>, vector<2x32xf32>
    %c1_180 = arith.constant 1 : index
    %c0_181 = arith.constant 0 : index
    %c0_182 = arith.constant 0 : index
    %388 = vector.load %arg5[%c1_180, %c0_181, %c0_182] : memref<3x32x128xf32, #tpu.memory_space<vmem>>, vector<1x32x128xf32>
    %389 = vector.shape_cast %388 : vector<1x32x128xf32> to vector<32x128xf32>
    %cst_183 = arith.constant dense<0.000000e+00> : vector<2x128xf32>
    %390 = tpu.matmul %387, %389, %cst_183 {dimension_numbers = #tpu.dot_dimension_numbers<[1], [0], [0], [1], [0, 0, 1, 1], [], []>} : vector<2x32xf32>, vector<32x128xf32>, vector<2x128xf32> -> vector<2x128xf32>
    %c1_184 = arith.constant 1 : index
    %c0_185 = arith.constant 0 : index
    %c0_186 = arith.constant 0 : index
    %391 = vector.load %arg7[%c1_184, %c0_185, %c0_186] : memref<3x1x128xf32, #tpu.memory_space<vmem>>, vector<1x1x128xf32>
    %392 = vector.shape_cast %391 : vector<1x1x128xf32> to vector<1x128xf32>
    %393 = vector.broadcast %392 : vector<1x128xf32> to vector<2x128xf32>
    %394 = arith.addf %390, %393 : vector<2x128xf32>
    %395 = vector.extract_strided_slice %394 {offsets = [0, 0], sizes = [1, 128], strides = [1, 1]} : vector<2x128xf32> to vector<1x128xf32>
    %396 = arith.negf %395 : vector<1x128xf32>
    %397 = math.exp %396 : vector<1x128xf32>
    %cst_187 = arith.constant 1.000000e+00 : f32
    %398 = vector.broadcast %cst_187 : f32 to vector<1x128xf32>
    %399 = arith.addf %398, %397 : vector<1x128xf32>
    %400 = arith.divf %398, %399 : vector<1x128xf32>
    %401 = math.tanh %395 : vector<1x128xf32>
    %402 = vector.extract_strided_slice %400 {offsets = [0, 0], sizes = [1, 32], strides = [1, 1]} : vector<1x128xf32> to vector<1x32xf32>
    %403 = vector.extract_strided_slice %401 {offsets = [0, 64], sizes = [1, 32], strides = [1, 1]} : vector<1x128xf32> to vector<1x32xf32>
    %404 = vector.extract_strided_slice %400 {offsets = [0, 96], sizes = [1, 32], strides = [1, 1]} : vector<1x128xf32> to vector<1x32xf32>
    %405 = arith.mulf %402, %403 : vector<1x32xf32>
    %406 = math.tanh %405 : vector<1x32xf32>
    %407 = arith.mulf %404, %406 : vector<1x32xf32>
    %c0_188 = arith.constant 0 : index
    %c0_189 = arith.constant 0 : index
    %408 = vector.load %arg12[%c0_188, %c0_189] : memref<2x32xf32, #tpu.memory_space<vmem>>, vector<1x32xf32>
    tpu.vector_store %arg12[%c0_188, %c0_189], %407 {strides = array<i32>} : memref<2x32xf32, #tpu.memory_space<vmem>>, vector<1x32xf32>,
    %409 = vector.extract_strided_slice %394 {offsets = [1, 0], sizes = [1, 128], strides = [1, 1]} : vector<2x128xf32> to vector<1x128xf32>
    %c1_190 = arith.constant 1 : index
    %c0_191 = arith.constant 0 : index
    %c0_192 = arith.constant 0 : index
    %410 = vector.load %arg6[%c1_190, %c0_191, %c0_192] : memref<3x32x128xf32, #tpu.memory_space<vmem>>, vector<1x32x128xf32>
    %411 = vector.shape_cast %410 : vector<1x32x128xf32> to vector<32x128xf32>
    %cst_193 = arith.constant dense<0.000000e+00> : vector<1x128xf32>
    %412 = tpu.matmul %407, %411, %cst_193 {dimension_numbers = #tpu.dot_dimension_numbers<[1], [0], [0], [1], [0, 0, 1, 1], [], []>} : vector<1x32xf32>, vector<32x128xf32>, vector<1x128xf32> -> vector<1x128xf32>
    %413 = arith.addf %409, %412 : vector<1x128xf32>
    %414 = arith.negf %413 : vector<1x128xf32>
    %415 = math.exp %414 : vector<1x128xf32>
    %cst_194 = arith.constant 1.000000e+00 : f32
    %416 = vector.broadcast %cst_194 : f32 to vector<1x128xf32>
    %417 = arith.addf %416, %415 : vector<1x128xf32>
    %418 = arith.divf %416, %417 : vector<1x128xf32>
    %419 = math.tanh %413 : vector<1x128xf32>
    %420 = vector.extract_strided_slice %418 {offsets = [0, 0], sizes = [1, 32], strides = [1, 1]} : vector<1x128xf32> to vector<1x32xf32>
    %421 = vector.extract_strided_slice %418 {offsets = [0, 32], sizes = [1, 32], strides = [1, 1]} : vector<1x128xf32> to vector<1x32xf32>
    %422 = vector.extract_strided_slice %419 {offsets = [0, 64], sizes = [1, 32], strides = [1, 1]} : vector<1x128xf32> to vector<1x32xf32>
    %423 = vector.extract_strided_slice %418 {offsets = [0, 96], sizes = [1, 32], strides = [1, 1]} : vector<1x128xf32> to vector<1x32xf32>
    %424 = arith.mulf %421, %405 : vector<1x32xf32>
    %425 = arith.mulf %420, %422 : vector<1x32xf32>
    %426 = arith.addf %424, %425 : vector<1x32xf32>
    %427 = math.tanh %426 : vector<1x32xf32>
    %428 = arith.mulf %423, %427 : vector<1x32xf32>
    %c1_195 = arith.constant 1 : index
    %c0_196 = arith.constant 0 : index
    %429 = vector.load %arg12[%c1_195, %c0_196] : memref<2x32xf32, #tpu.memory_space<vmem>>, vector<1x32xf32>
    tpu.vector_store %arg12[%c1_195, %c0_196], %428 {strides = array<i32>} : memref<2x32xf32, #tpu.memory_space<vmem>>, vector<1x32xf32>,
    %c0_197 = arith.constant 0 : index
    %c0_198 = arith.constant 0 : index
    %430 = vector.load %arg12[%c0_197, %c0_198] : memref<2x32xf32, #tpu.memory_space<vmem>>, vector<2x32xf32>
    %c2_199 = arith.constant 2 : index
    %c0_200 = arith.constant 0 : index
    %c0_201 = arith.constant 0 : index
    %431 = vector.load %arg5[%c2_199, %c0_200, %c0_201] : memref<3x32x128xf32, #tpu.memory_space<vmem>>, vector<1x32x128xf32>
    %432 = vector.shape_cast %431 : vector<1x32x128xf32> to vector<32x128xf32>
    %cst_202 = arith.constant dense<0.000000e+00> : vector<2x128xf32>
    %433 = tpu.matmul %430, %432, %cst_202 {dimension_numbers = #tpu.dot_dimension_numbers<[1], [0], [0], [1], [0, 0, 1, 1], [], []>} : vector<2x32xf32>, vector<32x128xf32>, vector<2x128xf32> -> vector<2x128xf32>
    %c2_203 = arith.constant 2 : index
    %c0_204 = arith.constant 0 : index
    %c0_205 = arith.constant 0 : index
    %434 = vector.load %arg7[%c2_203, %c0_204, %c0_205] : memref<3x1x128xf32, #tpu.memory_space<vmem>>, vector<1x1x128xf32>
    %435 = vector.shape_cast %434 : vector<1x1x128xf32> to vector<1x128xf32>
    %436 = vector.broadcast %435 : vector<1x128xf32> to vector<2x128xf32>
    %437 = arith.addf %433, %436 : vector<2x128xf32>
    %438 = vector.extract_strided_slice %437 {offsets = [0, 0], sizes = [1, 128], strides = [1, 1]} : vector<2x128xf32> to vector<1x128xf32>
    %439 = arith.negf %438 : vector<1x128xf32>
    %440 = math.exp %439 : vector<1x128xf32>
    %cst_206 = arith.constant 1.000000e+00 : f32
    %441 = vector.broadcast %cst_206 : f32 to vector<1x128xf32>
    %442 = arith.addf %441, %440 : vector<1x128xf32>
    %443 = arith.divf %441, %442 : vector<1x128xf32>
    %444 = math.tanh %438 : vector<1x128xf32>
    %445 = vector.extract_strided_slice %443 {offsets = [0, 0], sizes = [1, 32], strides = [1, 1]} : vector<1x128xf32> to vector<1x32xf32>
    %446 = vector.extract_strided_slice %444 {offsets = [0, 64], sizes = [1, 32], strides = [1, 1]} : vector<1x128xf32> to vector<1x32xf32>
    %447 = vector.extract_strided_slice %443 {offsets = [0, 96], sizes = [1, 32], strides = [1, 1]} : vector<1x128xf32> to vector<1x32xf32>
    %448 = arith.mulf %445, %446 : vector<1x32xf32>
    %449 = math.tanh %448 : vector<1x32xf32>
    %450 = arith.mulf %447, %449 : vector<1x32xf32>
    %c0_207 = arith.constant 0 : index
    %c0_208 = arith.constant 0 : index
    %451 = vector.load %arg12[%c0_207, %c0_208] : memref<2x32xf32, #tpu.memory_space<vmem>>, vector<1x32xf32>
    tpu.vector_store %arg12[%c0_207, %c0_208], %450 {strides = array<i32>} : memref<2x32xf32, #tpu.memory_space<vmem>>, vector<1x32xf32>,
    %452 = vector.extract_strided_slice %437 {offsets = [1, 0], sizes = [1, 128], strides = [1, 1]} : vector<2x128xf32> to vector<1x128xf32>
    %c2_209 = arith.constant 2 : index
    %c0_210 = arith.constant 0 : index
    %c0_211 = arith.constant 0 : index
    %453 = vector.load %arg6[%c2_209, %c0_210, %c0_211] : memref<3x32x128xf32, #tpu.memory_space<vmem>>, vector<1x32x128xf32>
    %454 = vector.shape_cast %453 : vector<1x32x128xf32> to vector<32x128xf32>
    %cst_212 = arith.constant dense<0.000000e+00> : vector<1x128xf32>
    %455 = tpu.matmul %450, %454, %cst_212 {dimension_numbers = #tpu.dot_dimension_numbers<[1], [0], [0], [1], [0, 0, 1, 1], [], []>} : vector<1x32xf32>, vector<32x128xf32>, vector<1x128xf32> -> vector<1x128xf32>
    %456 = arith.addf %452, %455 : vector<1x128xf32>
    %457 = arith.negf %456 : vector<1x128xf32>
    %458 = math.exp %457 : vector<1x128xf32>
    %cst_213 = arith.constant 1.000000e+00 : f32
    %459 = vector.broadcast %cst_213 : f32 to vector<1x128xf32>
    %460 = arith.addf %459, %458 : vector<1x128xf32>
    %461 = arith.divf %459, %460 : vector<1x128xf32>
    %462 = math.tanh %456 : vector<1x128xf32>
    %463 = vector.extract_strided_slice %461 {offsets = [0, 0], sizes = [1, 32], strides = [1, 1]} : vector<1x128xf32> to vector<1x32xf32>
    %464 = vector.extract_strided_slice %461 {offsets = [0, 32], sizes = [1, 32], strides = [1, 1]} : vector<1x128xf32> to vector<1x32xf32>
    %465 = vector.extract_strided_slice %462 {offsets = [0, 64], sizes = [1, 32], strides = [1, 1]} : vector<1x128xf32> to vector<1x32xf32>
    %466 = vector.extract_strided_slice %461 {offsets = [0, 96], sizes = [1, 32], strides = [1, 1]} : vector<1x128xf32> to vector<1x32xf32>
    %467 = arith.mulf %464, %448 : vector<1x32xf32>
    %468 = arith.mulf %463, %465 : vector<1x32xf32>
    %469 = arith.addf %467, %468 : vector<1x32xf32>
    %470 = math.tanh %469 : vector<1x32xf32>
    %471 = arith.mulf %466, %470 : vector<1x32xf32>
    %c1_214 = arith.constant 1 : index
    %c0_215 = arith.constant 0 : index
    %472 = vector.load %arg12[%c1_214, %c0_215] : memref<2x32xf32, #tpu.memory_space<vmem>>, vector<1x32xf32>
    tpu.vector_store %arg12[%c1_214, %c0_215], %471 {strides = array<i32>} : memref<2x32xf32, #tpu.memory_space<vmem>>, vector<1x32xf32>,
    %c0_216 = arith.constant 0 : index
    %c0_217 = arith.constant 0 : index
    %473 = vector.load %arg12[%c0_216, %c0_217] : memref<2x32xf32, #tpu.memory_space<vmem>>, vector<2x32xf32>
    %474 = vector.broadcast %59 : vector<1x32xf32> to vector<2x32xf32>
    %475 = arith.mulf %473, %474 : vector<2x32xf32>
    %cst_218 = arith.constant dense<0.000000e+00> : vector<2xf32>
    %476 = vector.multi_reduction <add>, %475, %cst_218 [1] : vector<2x32xf32> to vector<2xf32>
    %477 = vector.shape_cast %476 : vector<2xf32> to vector<2x1xf32>
    %478 = vector.broadcast %60 : vector<1x1xf32> to vector<2x1xf32>
    %479 = arith.addf %477, %478 : vector<2x1xf32>
    %c4_219 = arith.constant 4 : index
    %c0_220 = arith.constant 0 : index
    %480 = vector.load %arg10[%c4_219, %c0_220] : memref<16x1xf32, #tpu.memory_space<vmem>>, vector<2x1xf32>
    tpu.vector_store %arg10[%c4_219, %c0_220], %479 {strides = array<i32>} : memref<16x1xf32, #tpu.memory_space<vmem>>, vector<2x1xf32>,
    %481 = arith.subf %344, %473 : vector<2x32xf32>
    %cst_221 = arith.constant 5.000000e-01 : f32
    %482 = vector.broadcast %cst_221 : f32 to vector<2x32xf32>
    %483 = arith.mulf %481, %482 : vector<2x32xf32>
    %484 = arith.addf %473, %483 : vector<2x32xf32>
    %c6 = arith.constant 6 : index
    %c0_222 = arith.constant 0 : index
    %485 = vector.load %arg11[%c6, %c0_222] : memref<16x32xf32, #tpu.memory_space<vmem>>, vector<2x32xf32>
    %c0_223 = arith.constant 0 : index
    %c0_224 = arith.constant 0 : index
    %c0_225 = arith.constant 0 : index
    %486 = vector.load %arg5[%c0_223, %c0_224, %c0_225] : memref<3x32x128xf32, #tpu.memory_space<vmem>>, vector<1x32x128xf32>
    %487 = vector.shape_cast %486 : vector<1x32x128xf32> to vector<32x128xf32>
    %cst_226 = arith.constant dense<0.000000e+00> : vector<2x128xf32>
    %488 = tpu.matmul %484, %487, %cst_226 {dimension_numbers = #tpu.dot_dimension_numbers<[1], [0], [0], [1], [0, 0, 1, 1], [], []>} : vector<2x32xf32>, vector<32x128xf32>, vector<2x128xf32> -> vector<2x128xf32>
    %c0_227 = arith.constant 0 : index
    %c0_228 = arith.constant 0 : index
    %c0_229 = arith.constant 0 : index
    %489 = vector.load %arg7[%c0_227, %c0_228, %c0_229] : memref<3x1x128xf32, #tpu.memory_space<vmem>>, vector<1x1x128xf32>
    %490 = vector.shape_cast %489 : vector<1x1x128xf32> to vector<1x128xf32>
    %491 = vector.broadcast %490 : vector<1x128xf32> to vector<2x128xf32>
    %492 = arith.addf %488, %491 : vector<2x128xf32>
    %493 = vector.extract_strided_slice %492 {offsets = [0, 0], sizes = [1, 128], strides = [1, 1]} : vector<2x128xf32> to vector<1x128xf32>
    %494 = arith.negf %493 : vector<1x128xf32>
    %495 = math.exp %494 : vector<1x128xf32>
    %cst_230 = arith.constant 1.000000e+00 : f32
    %496 = vector.broadcast %cst_230 : f32 to vector<1x128xf32>
    %497 = arith.addf %496, %495 : vector<1x128xf32>
    %498 = arith.divf %496, %497 : vector<1x128xf32>
    %499 = math.tanh %493 : vector<1x128xf32>
    %500 = vector.extract_strided_slice %498 {offsets = [0, 0], sizes = [1, 32], strides = [1, 1]} : vector<1x128xf32> to vector<1x32xf32>
    %501 = vector.extract_strided_slice %499 {offsets = [0, 64], sizes = [1, 32], strides = [1, 1]} : vector<1x128xf32> to vector<1x32xf32>
    %502 = vector.extract_strided_slice %498 {offsets = [0, 96], sizes = [1, 32], strides = [1, 1]} : vector<1x128xf32> to vector<1x32xf32>
    %503 = arith.mulf %500, %501 : vector<1x32xf32>
    %504 = math.tanh %503 : vector<1x32xf32>
    %505 = arith.mulf %502, %504 : vector<1x32xf32>
    %c0_231 = arith.constant 0 : index
    %c0_232 = arith.constant 0 : index
    %506 = vector.load %arg12[%c0_231, %c0_232] : memref<2x32xf32, #tpu.memory_space<vmem>>, vector<1x32xf32>
    tpu.vector_store %arg12[%c0_231, %c0_232], %505 {strides = array<i32>} : memref<2x32xf32, #tpu.memory_space<vmem>>, vector<1x32xf32>,
    %507 = vector.extract_strided_slice %492 {offsets = [1, 0], sizes = [1, 128], strides = [1, 1]} : vector<2x128xf32> to vector<1x128xf32>
    %c0_233 = arith.constant 0 : index
    %c0_234 = arith.constant 0 : index
    %c0_235 = arith.constant 0 : index
    %508 = vector.load %arg6[%c0_233, %c0_234, %c0_235] : memref<3x32x128xf32, #tpu.memory_space<vmem>>, vector<1x32x128xf32>
    %509 = vector.shape_cast %508 : vector<1x32x128xf32> to vector<32x128xf32>
    %cst_236 = arith.constant dense<0.000000e+00> : vector<1x128xf32>
    %510 = tpu.matmul %505, %509, %cst_236 {dimension_numbers = #tpu.dot_dimension_numbers<[1], [0], [0], [1], [0, 0, 1, 1], [], []>} : vector<1x32xf32>, vector<32x128xf32>, vector<1x128xf32> -> vector<1x128xf32>
    %511 = arith.addf %507, %510 : vector<1x128xf32>
    %512 = arith.negf %511 : vector<1x128xf32>
    %513 = math.exp %512 : vector<1x128xf32>
    %cst_237 = arith.constant 1.000000e+00 : f32
    %514 = vector.broadcast %cst_237 : f32 to vector<1x128xf32>
    %515 = arith.addf %514, %513 : vector<1x128xf32>
    %516 = arith.divf %514, %515 : vector<1x128xf32>
    %517 = math.tanh %511 : vector<1x128xf32>
    %518 = vector.extract_strided_slice %516 {offsets = [0, 0], sizes = [1, 32], strides = [1, 1]} : vector<1x128xf32> to vector<1x32xf32>
    %519 = vector.extract_strided_slice %516 {offsets = [0, 32], sizes = [1, 32], strides = [1, 1]} : vector<1x128xf32> to vector<1x32xf32>
    %520 = vector.extract_strided_slice %517 {offsets = [0, 64], sizes = [1, 32], strides = [1, 1]} : vector<1x128xf32> to vector<1x32xf32>
    %521 = vector.extract_strided_slice %516 {offsets = [0, 96], sizes = [1, 32], strides = [1, 1]} : vector<1x128xf32> to vector<1x32xf32>
    %522 = arith.mulf %519, %503 : vector<1x32xf32>
    %523 = arith.mulf %518, %520 : vector<1x32xf32>
    %524 = arith.addf %522, %523 : vector<1x32xf32>
    %525 = math.tanh %524 : vector<1x32xf32>
    %526 = arith.mulf %521, %525 : vector<1x32xf32>
    %c1_238 = arith.constant 1 : index
    %c0_239 = arith.constant 0 : index
    %527 = vector.load %arg12[%c1_238, %c0_239] : memref<2x32xf32, #tpu.memory_space<vmem>>, vector<1x32xf32>
    tpu.vector_store %arg12[%c1_238, %c0_239], %526 {strides = array<i32>} : memref<2x32xf32, #tpu.memory_space<vmem>>, vector<1x32xf32>,
    %c0_240 = arith.constant 0 : index
    %c0_241 = arith.constant 0 : index
    %528 = vector.load %arg12[%c0_240, %c0_241] : memref<2x32xf32, #tpu.memory_space<vmem>>, vector<2x32xf32>
    %c1_242 = arith.constant 1 : index
    %c0_243 = arith.constant 0 : index
    %c0_244 = arith.constant 0 : index
    %529 = vector.load %arg5[%c1_242, %c0_243, %c0_244] : memref<3x32x128xf32, #tpu.memory_space<vmem>>, vector<1x32x128xf32>
    %530 = vector.shape_cast %529 : vector<1x32x128xf32> to vector<32x128xf32>
    %cst_245 = arith.constant dense<0.000000e+00> : vector<2x128xf32>
    %531 = tpu.matmul %528, %530, %cst_245 {dimension_numbers = #tpu.dot_dimension_numbers<[1], [0], [0], [1], [0, 0, 1, 1], [], []>} : vector<2x32xf32>, vector<32x128xf32>, vector<2x128xf32> -> vector<2x128xf32>
    %c1_246 = arith.constant 1 : index
    %c0_247 = arith.constant 0 : index
    %c0_248 = arith.constant 0 : index
    %532 = vector.load %arg7[%c1_246, %c0_247, %c0_248] : memref<3x1x128xf32, #tpu.memory_space<vmem>>, vector<1x1x128xf32>
    %533 = vector.shape_cast %532 : vector<1x1x128xf32> to vector<1x128xf32>
    %534 = vector.broadcast %533 : vector<1x128xf32> to vector<2x128xf32>
    %535 = arith.addf %531, %534 : vector<2x128xf32>
    %536 = vector.extract_strided_slice %535 {offsets = [0, 0], sizes = [1, 128], strides = [1, 1]} : vector<2x128xf32> to vector<1x128xf32>
    %537 = arith.negf %536 : vector<1x128xf32>
    %538 = math.exp %537 : vector<1x128xf32>
    %cst_249 = arith.constant 1.000000e+00 : f32
    %539 = vector.broadcast %cst_249 : f32 to vector<1x128xf32>
    %540 = arith.addf %539, %538 : vector<1x128xf32>
    %541 = arith.divf %539, %540 : vector<1x128xf32>
    %542 = math.tanh %536 : vector<1x128xf32>
    %543 = vector.extract_strided_slice %541 {offsets = [0, 0], sizes = [1, 32], strides = [1, 1]} : vector<1x128xf32> to vector<1x32xf32>
    %544 = vector.extract_strided_slice %542 {offsets = [0, 64], sizes = [1, 32], strides = [1, 1]} : vector<1x128xf32> to vector<1x32xf32>
    %545 = vector.extract_strided_slice %541 {offsets = [0, 96], sizes = [1, 32], strides = [1, 1]} : vector<1x128xf32> to vector<1x32xf32>
    %546 = arith.mulf %543, %544 : vector<1x32xf32>
    %547 = math.tanh %546 : vector<1x32xf32>
    %548 = arith.mulf %545, %547 : vector<1x32xf32>
    %c0_250 = arith.constant 0 : index
    %c0_251 = arith.constant 0 : index
    %549 = vector.load %arg12[%c0_250, %c0_251] : memref<2x32xf32, #tpu.memory_space<vmem>>, vector<1x32xf32>
    tpu.vector_store %arg12[%c0_250, %c0_251], %548 {strides = array<i32>} : memref<2x32xf32, #tpu.memory_space<vmem>>, vector<1x32xf32>,
    %550 = vector.extract_strided_slice %535 {offsets = [1, 0], sizes = [1, 128], strides = [1, 1]} : vector<2x128xf32> to vector<1x128xf32>
    %c1_252 = arith.constant 1 : index
    %c0_253 = arith.constant 0 : index
    %c0_254 = arith.constant 0 : index
    %551 = vector.load %arg6[%c1_252, %c0_253, %c0_254] : memref<3x32x128xf32, #tpu.memory_space<vmem>>, vector<1x32x128xf32>
    %552 = vector.shape_cast %551 : vector<1x32x128xf32> to vector<32x128xf32>
    %cst_255 = arith.constant dense<0.000000e+00> : vector<1x128xf32>
    %553 = tpu.matmul %548, %552, %cst_255 {dimension_numbers = #tpu.dot_dimension_numbers<[1], [0], [0], [1], [0, 0, 1, 1], [], []>} : vector<1x32xf32>, vector<32x128xf32>, vector<1x128xf32> -> vector<1x128xf32>
    %554 = arith.addf %550, %553 : vector<1x128xf32>
    %555 = arith.negf %554 : vector<1x128xf32>
    %556 = math.exp %555 : vector<1x128xf32>
    %cst_256 = arith.constant 1.000000e+00 : f32
    %557 = vector.broadcast %cst_256 : f32 to vector<1x128xf32>
    %558 = arith.addf %557, %556 : vector<1x128xf32>
    %559 = arith.divf %557, %558 : vector<1x128xf32>
    %560 = math.tanh %554 : vector<1x128xf32>
    %561 = vector.extract_strided_slice %559 {offsets = [0, 0], sizes = [1, 32], strides = [1, 1]} : vector<1x128xf32> to vector<1x32xf32>
    %562 = vector.extract_strided_slice %559 {offsets = [0, 32], sizes = [1, 32], strides = [1, 1]} : vector<1x128xf32> to vector<1x32xf32>
    %563 = vector.extract_strided_slice %560 {offsets = [0, 64], sizes = [1, 32], strides = [1, 1]} : vector<1x128xf32> to vector<1x32xf32>
    %564 = vector.extract_strided_slice %559 {offsets = [0, 96], sizes = [1, 32], strides = [1, 1]} : vector<1x128xf32> to vector<1x32xf32>
    %565 = arith.mulf %562, %546 : vector<1x32xf32>
    %566 = arith.mulf %561, %563 : vector<1x32xf32>
    %567 = arith.addf %565, %566 : vector<1x32xf32>
    %568 = math.tanh %567 : vector<1x32xf32>
    %569 = arith.mulf %564, %568 : vector<1x32xf32>
    %c1_257 = arith.constant 1 : index
    %c0_258 = arith.constant 0 : index
    %570 = vector.load %arg12[%c1_257, %c0_258] : memref<2x32xf32, #tpu.memory_space<vmem>>, vector<1x32xf32>
    tpu.vector_store %arg12[%c1_257, %c0_258], %569 {strides = array<i32>} : memref<2x32xf32, #tpu.memory_space<vmem>>, vector<1x32xf32>,
    %c0_259 = arith.constant 0 : index
    %c0_260 = arith.constant 0 : index
    %571 = vector.load %arg12[%c0_259, %c0_260] : memref<2x32xf32, #tpu.memory_space<vmem>>, vector<2x32xf32>
    %c2_261 = arith.constant 2 : index
    %c0_262 = arith.constant 0 : index
    %c0_263 = arith.constant 0 : index
    %572 = vector.load %arg5[%c2_261, %c0_262, %c0_263] : memref<3x32x128xf32, #tpu.memory_space<vmem>>, vector<1x32x128xf32>
    %573 = vector.shape_cast %572 : vector<1x32x128xf32> to vector<32x128xf32>
    %cst_264 = arith.constant dense<0.000000e+00> : vector<2x128xf32>
    %574 = tpu.matmul %571, %573, %cst_264 {dimension_numbers = #tpu.dot_dimension_numbers<[1], [0], [0], [1], [0, 0, 1, 1], [], []>} : vector<2x32xf32>, vector<32x128xf32>, vector<2x128xf32> -> vector<2x128xf32>
    %c2_265 = arith.constant 2 : index
    %c0_266 = arith.constant 0 : index
    %c0_267 = arith.constant 0 : index
    %575 = vector.load %arg7[%c2_265, %c0_266, %c0_267] : memref<3x1x128xf32, #tpu.memory_space<vmem>>, vector<1x1x128xf32>
    %576 = vector.shape_cast %575 : vector<1x1x128xf32> to vector<1x128xf32>
    %577 = vector.broadcast %576 : vector<1x128xf32> to vector<2x128xf32>
    %578 = arith.addf %574, %577 : vector<2x128xf32>
    %579 = vector.extract_strided_slice %578 {offsets = [0, 0], sizes = [1, 128], strides = [1, 1]} : vector<2x128xf32> to vector<1x128xf32>
    %580 = arith.negf %579 : vector<1x128xf32>
    %581 = math.exp %580 : vector<1x128xf32>
    %cst_268 = arith.constant 1.000000e+00 : f32
    %582 = vector.broadcast %cst_268 : f32 to vector<1x128xf32>
    %583 = arith.addf %582, %581 : vector<1x128xf32>
    %584 = arith.divf %582, %583 : vector<1x128xf32>
    %585 = math.tanh %579 : vector<1x128xf32>
    %586 = vector.extract_strided_slice %584 {offsets = [0, 0], sizes = [1, 32], strides = [1, 1]} : vector<1x128xf32> to vector<1x32xf32>
    %587 = vector.extract_strided_slice %585 {offsets = [0, 64], sizes = [1, 32], strides = [1, 1]} : vector<1x128xf32> to vector<1x32xf32>
    %588 = vector.extract_strided_slice %584 {offsets = [0, 96], sizes = [1, 32], strides = [1, 1]} : vector<1x128xf32> to vector<1x32xf32>
    %589 = arith.mulf %586, %587 : vector<1x32xf32>
    %590 = math.tanh %589 : vector<1x32xf32>
    %591 = arith.mulf %588, %590 : vector<1x32xf32>
    %c0_269 = arith.constant 0 : index
    %c0_270 = arith.constant 0 : index
    %592 = vector.load %arg12[%c0_269, %c0_270] : memref<2x32xf32, #tpu.memory_space<vmem>>, vector<1x32xf32>
    tpu.vector_store %arg12[%c0_269, %c0_270], %591 {strides = array<i32>} : memref<2x32xf32, #tpu.memory_space<vmem>>, vector<1x32xf32>,
    %593 = vector.extract_strided_slice %578 {offsets = [1, 0], sizes = [1, 128], strides = [1, 1]} : vector<2x128xf32> to vector<1x128xf32>
    %c2_271 = arith.constant 2 : index
    %c0_272 = arith.constant 0 : index
    %c0_273 = arith.constant 0 : index
    %594 = vector.load %arg6[%c2_271, %c0_272, %c0_273] : memref<3x32x128xf32, #tpu.memory_space<vmem>>, vector<1x32x128xf32>
    %595 = vector.shape_cast %594 : vector<1x32x128xf32> to vector<32x128xf32>
    %cst_274 = arith.constant dense<0.000000e+00> : vector<1x128xf32>
    %596 = tpu.matmul %591, %595, %cst_274 {dimension_numbers = #tpu.dot_dimension_numbers<[1], [0], [0], [1], [0, 0, 1, 1], [], []>} : vector<1x32xf32>, vector<32x128xf32>, vector<1x128xf32> -> vector<1x128xf32>
    %597 = arith.addf %593, %596 : vector<1x128xf32>
    %598 = arith.negf %597 : vector<1x128xf32>
    %599 = math.exp %598 : vector<1x128xf32>
    %cst_275 = arith.constant 1.000000e+00 : f32
    %600 = vector.broadcast %cst_275 : f32 to vector<1x128xf32>
    %601 = arith.addf %600, %599 : vector<1x128xf32>
    %602 = arith.divf %600, %601 : vector<1x128xf32>
    %603 = math.tanh %597 : vector<1x128xf32>
    %604 = vector.extract_strided_slice %602 {offsets = [0, 0], sizes = [1, 32], strides = [1, 1]} : vector<1x128xf32> to vector<1x32xf32>
    %605 = vector.extract_strided_slice %602 {offsets = [0, 32], sizes = [1, 32], strides = [1, 1]} : vector<1x128xf32> to vector<1x32xf32>
    %606 = vector.extract_strided_slice %603 {offsets = [0, 64], sizes = [1, 32], strides = [1, 1]} : vector<1x128xf32> to vector<1x32xf32>
    %607 = vector.extract_strided_slice %602 {offsets = [0, 96], sizes = [1, 32], strides = [1, 1]} : vector<1x128xf32> to vector<1x32xf32>
    %608 = arith.mulf %605, %589 : vector<1x32xf32>
    %609 = arith.mulf %604, %606 : vector<1x32xf32>
    %610 = arith.addf %608, %609 : vector<1x32xf32>
    %611 = math.tanh %610 : vector<1x32xf32>
    %612 = arith.mulf %607, %611 : vector<1x32xf32>
    %c1_276 = arith.constant 1 : index
    %c0_277 = arith.constant 0 : index
    %613 = vector.load %arg12[%c1_276, %c0_277] : memref<2x32xf32, #tpu.memory_space<vmem>>, vector<1x32xf32>
    tpu.vector_store %arg12[%c1_276, %c0_277], %612 {strides = array<i32>} : memref<2x32xf32, #tpu.memory_space<vmem>>, vector<1x32xf32>,
    %c0_278 = arith.constant 0 : index
    %c0_279 = arith.constant 0 : index
    %614 = vector.load %arg12[%c0_278, %c0_279] : memref<2x32xf32, #tpu.memory_space<vmem>>, vector<2x32xf32>
    %615 = vector.broadcast %59 : vector<1x32xf32> to vector<2x32xf32>
    %616 = arith.mulf %614, %615 : vector<2x32xf32>
    %cst_280 = arith.constant dense<0.000000e+00> : vector<2xf32>
    %617 = vector.multi_reduction <add>, %616, %cst_280 [1] : vector<2x32xf32> to vector<2xf32>
    %618 = vector.shape_cast %617 : vector<2xf32> to vector<2x1xf32>
    %619 = vector.broadcast %60 : vector<1x1xf32> to vector<2x1xf32>
    %620 = arith.addf %618, %619 : vector<2x1xf32>
    %c6_281 = arith.constant 6 : index
    %c0_282 = arith.constant 0 : index
    %621 = vector.load %arg10[%c6_281, %c0_282] : memref<16x1xf32, #tpu.memory_space<vmem>>, vector<2x1xf32>
    tpu.vector_store %arg10[%c6_281, %c0_282], %620 {strides = array<i32>} : memref<16x1xf32, #tpu.memory_space<vmem>>, vector<2x1xf32>,
    %622 = arith.subf %485, %614 : vector<2x32xf32>
    %cst_283 = arith.constant 5.000000e-01 : f32
    %623 = vector.broadcast %cst_283 : f32 to vector<2x32xf32>
    %624 = arith.mulf %622, %623 : vector<2x32xf32>
    %625 = arith.addf %614, %624 : vector<2x32xf32>
    %c8 = arith.constant 8 : index
    %c0_284 = arith.constant 0 : index
    %626 = vector.load %arg11[%c8, %c0_284] : memref<16x32xf32, #tpu.memory_space<vmem>>, vector<2x32xf32>
    %c0_285 = arith.constant 0 : index
    %c0_286 = arith.constant 0 : index
    %c0_287 = arith.constant 0 : index
    %627 = vector.load %arg5[%c0_285, %c0_286, %c0_287] : memref<3x32x128xf32, #tpu.memory_space<vmem>>, vector<1x32x128xf32>
    %628 = vector.shape_cast %627 : vector<1x32x128xf32> to vector<32x128xf32>
    %cst_288 = arith.constant dense<0.000000e+00> : vector<2x128xf32>
    %629 = tpu.matmul %625, %628, %cst_288 {dimension_numbers = #tpu.dot_dimension_numbers<[1], [0], [0], [1], [0, 0, 1, 1], [], []>} : vector<2x32xf32>, vector<32x128xf32>, vector<2x128xf32> -> vector<2x128xf32>
    %c0_289 = arith.constant 0 : index
    %c0_290 = arith.constant 0 : index
    %c0_291 = arith.constant 0 : index
    %630 = vector.load %arg7[%c0_289, %c0_290, %c0_291] : memref<3x1x128xf32, #tpu.memory_space<vmem>>, vector<1x1x128xf32>
    %631 = vector.shape_cast %630 : vector<1x1x128xf32> to vector<1x128xf32>
    %632 = vector.broadcast %631 : vector<1x128xf32> to vector<2x128xf32>
    %633 = arith.addf %629, %632 : vector<2x128xf32>
    %634 = vector.extract_strided_slice %633 {offsets = [0, 0], sizes = [1, 128], strides = [1, 1]} : vector<2x128xf32> to vector<1x128xf32>
    %635 = arith.negf %634 : vector<1x128xf32>
    %636 = math.exp %635 : vector<1x128xf32>
    %cst_292 = arith.constant 1.000000e+00 : f32
    %637 = vector.broadcast %cst_292 : f32 to vector<1x128xf32>
    %638 = arith.addf %637, %636 : vector<1x128xf32>
    %639 = arith.divf %637, %638 : vector<1x128xf32>
    %640 = math.tanh %634 : vector<1x128xf32>
    %641 = vector.extract_strided_slice %639 {offsets = [0, 0], sizes = [1, 32], strides = [1, 1]} : vector<1x128xf32> to vector<1x32xf32>
    %642 = vector.extract_strided_slice %640 {offsets = [0, 64], sizes = [1, 32], strides = [1, 1]} : vector<1x128xf32> to vector<1x32xf32>
    %643 = vector.extract_strided_slice %639 {offsets = [0, 96], sizes = [1, 32], strides = [1, 1]} : vector<1x128xf32> to vector<1x32xf32>
    %644 = arith.mulf %641, %642 : vector<1x32xf32>
    %645 = math.tanh %644 : vector<1x32xf32>
    %646 = arith.mulf %643, %645 : vector<1x32xf32>
    %c0_293 = arith.constant 0 : index
    %c0_294 = arith.constant 0 : index
    %647 = vector.load %arg12[%c0_293, %c0_294] : memref<2x32xf32, #tpu.memory_space<vmem>>, vector<1x32xf32>
    tpu.vector_store %arg12[%c0_293, %c0_294], %646 {strides = array<i32>} : memref<2x32xf32, #tpu.memory_space<vmem>>, vector<1x32xf32>,
    %648 = vector.extract_strided_slice %633 {offsets = [1, 0], sizes = [1, 128], strides = [1, 1]} : vector<2x128xf32> to vector<1x128xf32>
    %c0_295 = arith.constant 0 : index
    %c0_296 = arith.constant 0 : index
    %c0_297 = arith.constant 0 : index
    %649 = vector.load %arg6[%c0_295, %c0_296, %c0_297] : memref<3x32x128xf32, #tpu.memory_space<vmem>>, vector<1x32x128xf32>
    %650 = vector.shape_cast %649 : vector<1x32x128xf32> to vector<32x128xf32>
    %cst_298 = arith.constant dense<0.000000e+00> : vector<1x128xf32>
    %651 = tpu.matmul %646, %650, %cst_298 {dimension_numbers = #tpu.dot_dimension_numbers<[1], [0], [0], [1], [0, 0, 1, 1], [], []>} : vector<1x32xf32>, vector<32x128xf32>, vector<1x128xf32> -> vector<1x128xf32>
    %652 = arith.addf %648, %651 : vector<1x128xf32>
    %653 = arith.negf %652 : vector<1x128xf32>
    %654 = math.exp %653 : vector<1x128xf32>
    %cst_299 = arith.constant 1.000000e+00 : f32
    %655 = vector.broadcast %cst_299 : f32 to vector<1x128xf32>
    %656 = arith.addf %655, %654 : vector<1x128xf32>
    %657 = arith.divf %655, %656 : vector<1x128xf32>
    %658 = math.tanh %652 : vector<1x128xf32>
    %659 = vector.extract_strided_slice %657 {offsets = [0, 0], sizes = [1, 32], strides = [1, 1]} : vector<1x128xf32> to vector<1x32xf32>
    %660 = vector.extract_strided_slice %657 {offsets = [0, 32], sizes = [1, 32], strides = [1, 1]} : vector<1x128xf32> to vector<1x32xf32>
    %661 = vector.extract_strided_slice %658 {offsets = [0, 64], sizes = [1, 32], strides = [1, 1]} : vector<1x128xf32> to vector<1x32xf32>
    %662 = vector.extract_strided_slice %657 {offsets = [0, 96], sizes = [1, 32], strides = [1, 1]} : vector<1x128xf32> to vector<1x32xf32>
    %663 = arith.mulf %660, %644 : vector<1x32xf32>
    %664 = arith.mulf %659, %661 : vector<1x32xf32>
    %665 = arith.addf %663, %664 : vector<1x32xf32>
    %666 = math.tanh %665 : vector<1x32xf32>
    %667 = arith.mulf %662, %666 : vector<1x32xf32>
    %c1_300 = arith.constant 1 : index
    %c0_301 = arith.constant 0 : index
    %668 = vector.load %arg12[%c1_300, %c0_301] : memref<2x32xf32, #tpu.memory_space<vmem>>, vector<1x32xf32>
    tpu.vector_store %arg12[%c1_300, %c0_301], %667 {strides = array<i32>} : memref<2x32xf32, #tpu.memory_space<vmem>>, vector<1x32xf32>,
    %c0_302 = arith.constant 0 : index
    %c0_303 = arith.constant 0 : index
    %669 = vector.load %arg12[%c0_302, %c0_303] : memref<2x32xf32, #tpu.memory_space<vmem>>, vector<2x32xf32>
    %c1_304 = arith.constant 1 : index
    %c0_305 = arith.constant 0 : index
    %c0_306 = arith.constant 0 : index
    %670 = vector.load %arg5[%c1_304, %c0_305, %c0_306] : memref<3x32x128xf32, #tpu.memory_space<vmem>>, vector<1x32x128xf32>
    %671 = vector.shape_cast %670 : vector<1x32x128xf32> to vector<32x128xf32>
    %cst_307 = arith.constant dense<0.000000e+00> : vector<2x128xf32>
    %672 = tpu.matmul %669, %671, %cst_307 {dimension_numbers = #tpu.dot_dimension_numbers<[1], [0], [0], [1], [0, 0, 1, 1], [], []>} : vector<2x32xf32>, vector<32x128xf32>, vector<2x128xf32> -> vector<2x128xf32>
    %c1_308 = arith.constant 1 : index
    %c0_309 = arith.constant 0 : index
    %c0_310 = arith.constant 0 : index
    %673 = vector.load %arg7[%c1_308, %c0_309, %c0_310] : memref<3x1x128xf32, #tpu.memory_space<vmem>>, vector<1x1x128xf32>
    %674 = vector.shape_cast %673 : vector<1x1x128xf32> to vector<1x128xf32>
    %675 = vector.broadcast %674 : vector<1x128xf32> to vector<2x128xf32>
    %676 = arith.addf %672, %675 : vector<2x128xf32>
    %677 = vector.extract_strided_slice %676 {offsets = [0, 0], sizes = [1, 128], strides = [1, 1]} : vector<2x128xf32> to vector<1x128xf32>
    %678 = arith.negf %677 : vector<1x128xf32>
    %679 = math.exp %678 : vector<1x128xf32>
    %cst_311 = arith.constant 1.000000e+00 : f32
    %680 = vector.broadcast %cst_311 : f32 to vector<1x128xf32>
    %681 = arith.addf %680, %679 : vector<1x128xf32>
    %682 = arith.divf %680, %681 : vector<1x128xf32>
    %683 = math.tanh %677 : vector<1x128xf32>
    %684 = vector.extract_strided_slice %682 {offsets = [0, 0], sizes = [1, 32], strides = [1, 1]} : vector<1x128xf32> to vector<1x32xf32>
    %685 = vector.extract_strided_slice %683 {offsets = [0, 64], sizes = [1, 32], strides = [1, 1]} : vector<1x128xf32> to vector<1x32xf32>
    %686 = vector.extract_strided_slice %682 {offsets = [0, 96], sizes = [1, 32], strides = [1, 1]} : vector<1x128xf32> to vector<1x32xf32>
    %687 = arith.mulf %684, %685 : vector<1x32xf32>
    %688 = math.tanh %687 : vector<1x32xf32>
    %689 = arith.mulf %686, %688 : vector<1x32xf32>
    %c0_312 = arith.constant 0 : index
    %c0_313 = arith.constant 0 : index
    %690 = vector.load %arg12[%c0_312, %c0_313] : memref<2x32xf32, #tpu.memory_space<vmem>>, vector<1x32xf32>
    tpu.vector_store %arg12[%c0_312, %c0_313], %689 {strides = array<i32>} : memref<2x32xf32, #tpu.memory_space<vmem>>, vector<1x32xf32>,
    %691 = vector.extract_strided_slice %676 {offsets = [1, 0], sizes = [1, 128], strides = [1, 1]} : vector<2x128xf32> to vector<1x128xf32>
    %c1_314 = arith.constant 1 : index
    %c0_315 = arith.constant 0 : index
    %c0_316 = arith.constant 0 : index
    %692 = vector.load %arg6[%c1_314, %c0_315, %c0_316] : memref<3x32x128xf32, #tpu.memory_space<vmem>>, vector<1x32x128xf32>
    %693 = vector.shape_cast %692 : vector<1x32x128xf32> to vector<32x128xf32>
    %cst_317 = arith.constant dense<0.000000e+00> : vector<1x128xf32>
    %694 = tpu.matmul %689, %693, %cst_317 {dimension_numbers = #tpu.dot_dimension_numbers<[1], [0], [0], [1], [0, 0, 1, 1], [], []>} : vector<1x32xf32>, vector<32x128xf32>, vector<1x128xf32> -> vector<1x128xf32>
    %695 = arith.addf %691, %694 : vector<1x128xf32>
    %696 = arith.negf %695 : vector<1x128xf32>
    %697 = math.exp %696 : vector<1x128xf32>
    %cst_318 = arith.constant 1.000000e+00 : f32
    %698 = vector.broadcast %cst_318 : f32 to vector<1x128xf32>
    %699 = arith.addf %698, %697 : vector<1x128xf32>
    %700 = arith.divf %698, %699 : vector<1x128xf32>
    %701 = math.tanh %695 : vector<1x128xf32>
    %702 = vector.extract_strided_slice %700 {offsets = [0, 0], sizes = [1, 32], strides = [1, 1]} : vector<1x128xf32> to vector<1x32xf32>
    %703 = vector.extract_strided_slice %700 {offsets = [0, 32], sizes = [1, 32], strides = [1, 1]} : vector<1x128xf32> to vector<1x32xf32>
    %704 = vector.extract_strided_slice %701 {offsets = [0, 64], sizes = [1, 32], strides = [1, 1]} : vector<1x128xf32> to vector<1x32xf32>
    %705 = vector.extract_strided_slice %700 {offsets = [0, 96], sizes = [1, 32], strides = [1, 1]} : vector<1x128xf32> to vector<1x32xf32>
    %706 = arith.mulf %703, %687 : vector<1x32xf32>
    %707 = arith.mulf %702, %704 : vector<1x32xf32>
    %708 = arith.addf %706, %707 : vector<1x32xf32>
    %709 = math.tanh %708 : vector<1x32xf32>
    %710 = arith.mulf %705, %709 : vector<1x32xf32>
    %c1_319 = arith.constant 1 : index
    %c0_320 = arith.constant 0 : index
    %711 = vector.load %arg12[%c1_319, %c0_320] : memref<2x32xf32, #tpu.memory_space<vmem>>, vector<1x32xf32>
    tpu.vector_store %arg12[%c1_319, %c0_320], %710 {strides = array<i32>} : memref<2x32xf32, #tpu.memory_space<vmem>>, vector<1x32xf32>,
    %c0_321 = arith.constant 0 : index
    %c0_322 = arith.constant 0 : index
    %712 = vector.load %arg12[%c0_321, %c0_322] : memref<2x32xf32, #tpu.memory_space<vmem>>, vector<2x32xf32>
    %c2_323 = arith.constant 2 : index
    %c0_324 = arith.constant 0 : index
    %c0_325 = arith.constant 0 : index
    %713 = vector.load %arg5[%c2_323, %c0_324, %c0_325] : memref<3x32x128xf32, #tpu.memory_space<vmem>>, vector<1x32x128xf32>
    %714 = vector.shape_cast %713 : vector<1x32x128xf32> to vector<32x128xf32>
    %cst_326 = arith.constant dense<0.000000e+00> : vector<2x128xf32>
    %715 = tpu.matmul %712, %714, %cst_326 {dimension_numbers = #tpu.dot_dimension_numbers<[1], [0], [0], [1], [0, 0, 1, 1], [], []>} : vector<2x32xf32>, vector<32x128xf32>, vector<2x128xf32> -> vector<2x128xf32>
    %c2_327 = arith.constant 2 : index
    %c0_328 = arith.constant 0 : index
    %c0_329 = arith.constant 0 : index
    %716 = vector.load %arg7[%c2_327, %c0_328, %c0_329] : memref<3x1x128xf32, #tpu.memory_space<vmem>>, vector<1x1x128xf32>
    %717 = vector.shape_cast %716 : vector<1x1x128xf32> to vector<1x128xf32>
    %718 = vector.broadcast %717 : vector<1x128xf32> to vector<2x128xf32>
    %719 = arith.addf %715, %718 : vector<2x128xf32>
    %720 = vector.extract_strided_slice %719 {offsets = [0, 0], sizes = [1, 128], strides = [1, 1]} : vector<2x128xf32> to vector<1x128xf32>
    %721 = arith.negf %720 : vector<1x128xf32>
    %722 = math.exp %721 : vector<1x128xf32>
    %cst_330 = arith.constant 1.000000e+00 : f32
    %723 = vector.broadcast %cst_330 : f32 to vector<1x128xf32>
    %724 = arith.addf %723, %722 : vector<1x128xf32>
    %725 = arith.divf %723, %724 : vector<1x128xf32>
    %726 = math.tanh %720 : vector<1x128xf32>
    %727 = vector.extract_strided_slice %725 {offsets = [0, 0], sizes = [1, 32], strides = [1, 1]} : vector<1x128xf32> to vector<1x32xf32>
    %728 = vector.extract_strided_slice %726 {offsets = [0, 64], sizes = [1, 32], strides = [1, 1]} : vector<1x128xf32> to vector<1x32xf32>
    %729 = vector.extract_strided_slice %725 {offsets = [0, 96], sizes = [1, 32], strides = [1, 1]} : vector<1x128xf32> to vector<1x32xf32>
    %730 = arith.mulf %727, %728 : vector<1x32xf32>
    %731 = math.tanh %730 : vector<1x32xf32>
    %732 = arith.mulf %729, %731 : vector<1x32xf32>
    %c0_331 = arith.constant 0 : index
    %c0_332 = arith.constant 0 : index
    %733 = vector.load %arg12[%c0_331, %c0_332] : memref<2x32xf32, #tpu.memory_space<vmem>>, vector<1x32xf32>
    tpu.vector_store %arg12[%c0_331, %c0_332], %732 {strides = array<i32>} : memref<2x32xf32, #tpu.memory_space<vmem>>, vector<1x32xf32>,
    %734 = vector.extract_strided_slice %719 {offsets = [1, 0], sizes = [1, 128], strides = [1, 1]} : vector<2x128xf32> to vector<1x128xf32>
    %c2_333 = arith.constant 2 : index
    %c0_334 = arith.constant 0 : index
    %c0_335 = arith.constant 0 : index
    %735 = vector.load %arg6[%c2_333, %c0_334, %c0_335] : memref<3x32x128xf32, #tpu.memory_space<vmem>>, vector<1x32x128xf32>
    %736 = vector.shape_cast %735 : vector<1x32x128xf32> to vector<32x128xf32>
    %cst_336 = arith.constant dense<0.000000e+00> : vector<1x128xf32>
    %737 = tpu.matmul %732, %736, %cst_336 {dimension_numbers = #tpu.dot_dimension_numbers<[1], [0], [0], [1], [0, 0, 1, 1], [], []>} : vector<1x32xf32>, vector<32x128xf32>, vector<1x128xf32> -> vector<1x128xf32>
    %738 = arith.addf %734, %737 : vector<1x128xf32>
    %739 = arith.negf %738 : vector<1x128xf32>
    %740 = math.exp %739 : vector<1x128xf32>
    %cst_337 = arith.constant 1.000000e+00 : f32
    %741 = vector.broadcast %cst_337 : f32 to vector<1x128xf32>
    %742 = arith.addf %741, %740 : vector<1x128xf32>
    %743 = arith.divf %741, %742 : vector<1x128xf32>
    %744 = math.tanh %738 : vector<1x128xf32>
    %745 = vector.extract_strided_slice %743 {offsets = [0, 0], sizes = [1, 32], strides = [1, 1]} : vector<1x128xf32> to vector<1x32xf32>
    %746 = vector.extract_strided_slice %743 {offsets = [0, 32], sizes = [1, 32], strides = [1, 1]} : vector<1x128xf32> to vector<1x32xf32>
    %747 = vector.extract_strided_slice %744 {offsets = [0, 64], sizes = [1, 32], strides = [1, 1]} : vector<1x128xf32> to vector<1x32xf32>
    %748 = vector.extract_strided_slice %743 {offsets = [0, 96], sizes = [1, 32], strides = [1, 1]} : vector<1x128xf32> to vector<1x32xf32>
    %749 = arith.mulf %746, %730 : vector<1x32xf32>
    %750 = arith.mulf %745, %747 : vector<1x32xf32>
    %751 = arith.addf %749, %750 : vector<1x32xf32>
    %752 = math.tanh %751 : vector<1x32xf32>
    %753 = arith.mulf %748, %752 : vector<1x32xf32>
    %c1_338 = arith.constant 1 : index
    %c0_339 = arith.constant 0 : index
    %754 = vector.load %arg12[%c1_338, %c0_339] : memref<2x32xf32, #tpu.memory_space<vmem>>, vector<1x32xf32>
    tpu.vector_store %arg12[%c1_338, %c0_339], %753 {strides = array<i32>} : memref<2x32xf32, #tpu.memory_space<vmem>>, vector<1x32xf32>,
    %c0_340 = arith.constant 0 : index
    %c0_341 = arith.constant 0 : index
    %755 = vector.load %arg12[%c0_340, %c0_341] : memref<2x32xf32, #tpu.memory_space<vmem>>, vector<2x32xf32>
    %756 = vector.broadcast %59 : vector<1x32xf32> to vector<2x32xf32>
    %757 = arith.mulf %755, %756 : vector<2x32xf32>
    %cst_342 = arith.constant dense<0.000000e+00> : vector<2xf32>
    %758 = vector.multi_reduction <add>, %757, %cst_342 [1] : vector<2x32xf32> to vector<2xf32>
    %759 = vector.shape_cast %758 : vector<2xf32> to vector<2x1xf32>
    %760 = vector.broadcast %60 : vector<1x1xf32> to vector<2x1xf32>
    %761 = arith.addf %759, %760 : vector<2x1xf32>
    %c8_343 = arith.constant 8 : index
    %c0_344 = arith.constant 0 : index
    %762 = vector.load %arg10[%c8_343, %c0_344] : memref<16x1xf32, #tpu.memory_space<vmem>>, vector<2x1xf32>
    tpu.vector_store %arg10[%c8_343, %c0_344], %761 {strides = array<i32>} : memref<16x1xf32, #tpu.memory_space<vmem>>, vector<2x1xf32>,
    %763 = arith.subf %626, %755 : vector<2x32xf32>
    %cst_345 = arith.constant 5.000000e-01 : f32
    %764 = vector.broadcast %cst_345 : f32 to vector<2x32xf32>
    %765 = arith.mulf %763, %764 : vector<2x32xf32>
    %766 = arith.addf %755, %765 : vector<2x32xf32>
    %c10 = arith.constant 10 : index
    %c0_346 = arith.constant 0 : index
    %767 = vector.load %arg11[%c10, %c0_346] : memref<16x32xf32, #tpu.memory_space<vmem>>, vector<2x32xf32>
    %c0_347 = arith.constant 0 : index
    %c0_348 = arith.constant 0 : index
    %c0_349 = arith.constant 0 : index
    %768 = vector.load %arg5[%c0_347, %c0_348, %c0_349] : memref<3x32x128xf32, #tpu.memory_space<vmem>>, vector<1x32x128xf32>
    %769 = vector.shape_cast %768 : vector<1x32x128xf32> to vector<32x128xf32>
    %cst_350 = arith.constant dense<0.000000e+00> : vector<2x128xf32>
    %770 = tpu.matmul %766, %769, %cst_350 {dimension_numbers = #tpu.dot_dimension_numbers<[1], [0], [0], [1], [0, 0, 1, 1], [], []>} : vector<2x32xf32>, vector<32x128xf32>, vector<2x128xf32> -> vector<2x128xf32>
    %c0_351 = arith.constant 0 : index
    %c0_352 = arith.constant 0 : index
    %c0_353 = arith.constant 0 : index
    %771 = vector.load %arg7[%c0_351, %c0_352, %c0_353] : memref<3x1x128xf32, #tpu.memory_space<vmem>>, vector<1x1x128xf32>
    %772 = vector.shape_cast %771 : vector<1x1x128xf32> to vector<1x128xf32>
    %773 = vector.broadcast %772 : vector<1x128xf32> to vector<2x128xf32>
    %774 = arith.addf %770, %773 : vector<2x128xf32>
    %775 = vector.extract_strided_slice %774 {offsets = [0, 0], sizes = [1, 128], strides = [1, 1]} : vector<2x128xf32> to vector<1x128xf32>
    %776 = arith.negf %775 : vector<1x128xf32>
    %777 = math.exp %776 : vector<1x128xf32>
    %cst_354 = arith.constant 1.000000e+00 : f32
    %778 = vector.broadcast %cst_354 : f32 to vector<1x128xf32>
    %779 = arith.addf %778, %777 : vector<1x128xf32>
    %780 = arith.divf %778, %779 : vector<1x128xf32>
    %781 = math.tanh %775 : vector<1x128xf32>
    %782 = vector.extract_strided_slice %780 {offsets = [0, 0], sizes = [1, 32], strides = [1, 1]} : vector<1x128xf32> to vector<1x32xf32>
    %783 = vector.extract_strided_slice %781 {offsets = [0, 64], sizes = [1, 32], strides = [1, 1]} : vector<1x128xf32> to vector<1x32xf32>
    %784 = vector.extract_strided_slice %780 {offsets = [0, 96], sizes = [1, 32], strides = [1, 1]} : vector<1x128xf32> to vector<1x32xf32>
    %785 = arith.mulf %782, %783 : vector<1x32xf32>
    %786 = math.tanh %785 : vector<1x32xf32>
    %787 = arith.mulf %784, %786 : vector<1x32xf32>
    %c0_355 = arith.constant 0 : index
    %c0_356 = arith.constant 0 : index
    %788 = vector.load %arg12[%c0_355, %c0_356] : memref<2x32xf32, #tpu.memory_space<vmem>>, vector<1x32xf32>
    tpu.vector_store %arg12[%c0_355, %c0_356], %787 {strides = array<i32>} : memref<2x32xf32, #tpu.memory_space<vmem>>, vector<1x32xf32>,
    %789 = vector.extract_strided_slice %774 {offsets = [1, 0], sizes = [1, 128], strides = [1, 1]} : vector<2x128xf32> to vector<1x128xf32>
    %c0_357 = arith.constant 0 : index
    %c0_358 = arith.constant 0 : index
    %c0_359 = arith.constant 0 : index
    %790 = vector.load %arg6[%c0_357, %c0_358, %c0_359] : memref<3x32x128xf32, #tpu.memory_space<vmem>>, vector<1x32x128xf32>
    %791 = vector.shape_cast %790 : vector<1x32x128xf32> to vector<32x128xf32>
    %cst_360 = arith.constant dense<0.000000e+00> : vector<1x128xf32>
    %792 = tpu.matmul %787, %791, %cst_360 {dimension_numbers = #tpu.dot_dimension_numbers<[1], [0], [0], [1], [0, 0, 1, 1], [], []>} : vector<1x32xf32>, vector<32x128xf32>, vector<1x128xf32> -> vector<1x128xf32>
    %793 = arith.addf %789, %792 : vector<1x128xf32>
    %794 = arith.negf %793 : vector<1x128xf32>
    %795 = math.exp %794 : vector<1x128xf32>
    %cst_361 = arith.constant 1.000000e+00 : f32
    %796 = vector.broadcast %cst_361 : f32 to vector<1x128xf32>
    %797 = arith.addf %796, %795 : vector<1x128xf32>
    %798 = arith.divf %796, %797 : vector<1x128xf32>
    %799 = math.tanh %793 : vector<1x128xf32>
    %800 = vector.extract_strided_slice %798 {offsets = [0, 0], sizes = [1, 32], strides = [1, 1]} : vector<1x128xf32> to vector<1x32xf32>
    %801 = vector.extract_strided_slice %798 {offsets = [0, 32], sizes = [1, 32], strides = [1, 1]} : vector<1x128xf32> to vector<1x32xf32>
    %802 = vector.extract_strided_slice %799 {offsets = [0, 64], sizes = [1, 32], strides = [1, 1]} : vector<1x128xf32> to vector<1x32xf32>
    %803 = vector.extract_strided_slice %798 {offsets = [0, 96], sizes = [1, 32], strides = [1, 1]} : vector<1x128xf32> to vector<1x32xf32>
    %804 = arith.mulf %801, %785 : vector<1x32xf32>
    %805 = arith.mulf %800, %802 : vector<1x32xf32>
    %806 = arith.addf %804, %805 : vector<1x32xf32>
    %807 = math.tanh %806 : vector<1x32xf32>
    %808 = arith.mulf %803, %807 : vector<1x32xf32>
    %c1_362 = arith.constant 1 : index
    %c0_363 = arith.constant 0 : index
    %809 = vector.load %arg12[%c1_362, %c0_363] : memref<2x32xf32, #tpu.memory_space<vmem>>, vector<1x32xf32>
    tpu.vector_store %arg12[%c1_362, %c0_363], %808 {strides = array<i32>} : memref<2x32xf32, #tpu.memory_space<vmem>>, vector<1x32xf32>,
    %c0_364 = arith.constant 0 : index
    %c0_365 = arith.constant 0 : index
    %810 = vector.load %arg12[%c0_364, %c0_365] : memref<2x32xf32, #tpu.memory_space<vmem>>, vector<2x32xf32>
    %c1_366 = arith.constant 1 : index
    %c0_367 = arith.constant 0 : index
    %c0_368 = arith.constant 0 : index
    %811 = vector.load %arg5[%c1_366, %c0_367, %c0_368] : memref<3x32x128xf32, #tpu.memory_space<vmem>>, vector<1x32x128xf32>
    %812 = vector.shape_cast %811 : vector<1x32x128xf32> to vector<32x128xf32>
    %cst_369 = arith.constant dense<0.000000e+00> : vector<2x128xf32>
    %813 = tpu.matmul %810, %812, %cst_369 {dimension_numbers = #tpu.dot_dimension_numbers<[1], [0], [0], [1], [0, 0, 1, 1], [], []>} : vector<2x32xf32>, vector<32x128xf32>, vector<2x128xf32> -> vector<2x128xf32>
    %c1_370 = arith.constant 1 : index
    %c0_371 = arith.constant 0 : index
    %c0_372 = arith.constant 0 : index
    %814 = vector.load %arg7[%c1_370, %c0_371, %c0_372] : memref<3x1x128xf32, #tpu.memory_space<vmem>>, vector<1x1x128xf32>
    %815 = vector.shape_cast %814 : vector<1x1x128xf32> to vector<1x128xf32>
    %816 = vector.broadcast %815 : vector<1x128xf32> to vector<2x128xf32>
    %817 = arith.addf %813, %816 : vector<2x128xf32>
    %818 = vector.extract_strided_slice %817 {offsets = [0, 0], sizes = [1, 128], strides = [1, 1]} : vector<2x128xf32> to vector<1x128xf32>
    %819 = arith.negf %818 : vector<1x128xf32>
    %820 = math.exp %819 : vector<1x128xf32>
    %cst_373 = arith.constant 1.000000e+00 : f32
    %821 = vector.broadcast %cst_373 : f32 to vector<1x128xf32>
    %822 = arith.addf %821, %820 : vector<1x128xf32>
    %823 = arith.divf %821, %822 : vector<1x128xf32>
    %824 = math.tanh %818 : vector<1x128xf32>
    %825 = vector.extract_strided_slice %823 {offsets = [0, 0], sizes = [1, 32], strides = [1, 1]} : vector<1x128xf32> to vector<1x32xf32>
    %826 = vector.extract_strided_slice %824 {offsets = [0, 64], sizes = [1, 32], strides = [1, 1]} : vector<1x128xf32> to vector<1x32xf32>
    %827 = vector.extract_strided_slice %823 {offsets = [0, 96], sizes = [1, 32], strides = [1, 1]} : vector<1x128xf32> to vector<1x32xf32>
    %828 = arith.mulf %825, %826 : vector<1x32xf32>
    %829 = math.tanh %828 : vector<1x32xf32>
    %830 = arith.mulf %827, %829 : vector<1x32xf32>
    %c0_374 = arith.constant 0 : index
    %c0_375 = arith.constant 0 : index
    %831 = vector.load %arg12[%c0_374, %c0_375] : memref<2x32xf32, #tpu.memory_space<vmem>>, vector<1x32xf32>
    tpu.vector_store %arg12[%c0_374, %c0_375], %830 {strides = array<i32>} : memref<2x32xf32, #tpu.memory_space<vmem>>, vector<1x32xf32>,
    %832 = vector.extract_strided_slice %817 {offsets = [1, 0], sizes = [1, 128], strides = [1, 1]} : vector<2x128xf32> to vector<1x128xf32>
    %c1_376 = arith.constant 1 : index
    %c0_377 = arith.constant 0 : index
    %c0_378 = arith.constant 0 : index
    %833 = vector.load %arg6[%c1_376, %c0_377, %c0_378] : memref<3x32x128xf32, #tpu.memory_space<vmem>>, vector<1x32x128xf32>
    %834 = vector.shape_cast %833 : vector<1x32x128xf32> to vector<32x128xf32>
    %cst_379 = arith.constant dense<0.000000e+00> : vector<1x128xf32>
    %835 = tpu.matmul %830, %834, %cst_379 {dimension_numbers = #tpu.dot_dimension_numbers<[1], [0], [0], [1], [0, 0, 1, 1], [], []>} : vector<1x32xf32>, vector<32x128xf32>, vector<1x128xf32> -> vector<1x128xf32>
    %836 = arith.addf %832, %835 : vector<1x128xf32>
    %837 = arith.negf %836 : vector<1x128xf32>
    %838 = math.exp %837 : vector<1x128xf32>
    %cst_380 = arith.constant 1.000000e+00 : f32
    %839 = vector.broadcast %cst_380 : f32 to vector<1x128xf32>
    %840 = arith.addf %839, %838 : vector<1x128xf32>
    %841 = arith.divf %839, %840 : vector<1x128xf32>
    %842 = math.tanh %836 : vector<1x128xf32>
    %843 = vector.extract_strided_slice %841 {offsets = [0, 0], sizes = [1, 32], strides = [1, 1]} : vector<1x128xf32> to vector<1x32xf32>
    %844 = vector.extract_strided_slice %841 {offsets = [0, 32], sizes = [1, 32], strides = [1, 1]} : vector<1x128xf32> to vector<1x32xf32>
    %845 = vector.extract_strided_slice %842 {offsets = [0, 64], sizes = [1, 32], strides = [1, 1]} : vector<1x128xf32> to vector<1x32xf32>
    %846 = vector.extract_strided_slice %841 {offsets = [0, 96], sizes = [1, 32], strides = [1, 1]} : vector<1x128xf32> to vector<1x32xf32>
    %847 = arith.mulf %844, %828 : vector<1x32xf32>
    %848 = arith.mulf %843, %845 : vector<1x32xf32>
    %849 = arith.addf %847, %848 : vector<1x32xf32>
    %850 = math.tanh %849 : vector<1x32xf32>
    %851 = arith.mulf %846, %850 : vector<1x32xf32>
    %c1_381 = arith.constant 1 : index
    %c0_382 = arith.constant 0 : index
    %852 = vector.load %arg12[%c1_381, %c0_382] : memref<2x32xf32, #tpu.memory_space<vmem>>, vector<1x32xf32>
    tpu.vector_store %arg12[%c1_381, %c0_382], %851 {strides = array<i32>} : memref<2x32xf32, #tpu.memory_space<vmem>>, vector<1x32xf32>,
    %c0_383 = arith.constant 0 : index
    %c0_384 = arith.constant 0 : index
    %853 = vector.load %arg12[%c0_383, %c0_384] : memref<2x32xf32, #tpu.memory_space<vmem>>, vector<2x32xf32>
    %c2_385 = arith.constant 2 : index
    %c0_386 = arith.constant 0 : index
    %c0_387 = arith.constant 0 : index
    %854 = vector.load %arg5[%c2_385, %c0_386, %c0_387] : memref<3x32x128xf32, #tpu.memory_space<vmem>>, vector<1x32x128xf32>
    %855 = vector.shape_cast %854 : vector<1x32x128xf32> to vector<32x128xf32>
    %cst_388 = arith.constant dense<0.000000e+00> : vector<2x128xf32>
    %856 = tpu.matmul %853, %855, %cst_388 {dimension_numbers = #tpu.dot_dimension_numbers<[1], [0], [0], [1], [0, 0, 1, 1], [], []>} : vector<2x32xf32>, vector<32x128xf32>, vector<2x128xf32> -> vector<2x128xf32>
    %c2_389 = arith.constant 2 : index
    %c0_390 = arith.constant 0 : index
    %c0_391 = arith.constant 0 : index
    %857 = vector.load %arg7[%c2_389, %c0_390, %c0_391] : memref<3x1x128xf32, #tpu.memory_space<vmem>>, vector<1x1x128xf32>
    %858 = vector.shape_cast %857 : vector<1x1x128xf32> to vector<1x128xf32>
    %859 = vector.broadcast %858 : vector<1x128xf32> to vector<2x128xf32>
    %860 = arith.addf %856, %859 : vector<2x128xf32>
    %861 = vector.extract_strided_slice %860 {offsets = [0, 0], sizes = [1, 128], strides = [1, 1]} : vector<2x128xf32> to vector<1x128xf32>
    %862 = arith.negf %861 : vector<1x128xf32>
    %863 = math.exp %862 : vector<1x128xf32>
    %cst_392 = arith.constant 1.000000e+00 : f32
    %864 = vector.broadcast %cst_392 : f32 to vector<1x128xf32>
    %865 = arith.addf %864, %863 : vector<1x128xf32>
    %866 = arith.divf %864, %865 : vector<1x128xf32>
    %867 = math.tanh %861 : vector<1x128xf32>
    %868 = vector.extract_strided_slice %866 {offsets = [0, 0], sizes = [1, 32], strides = [1, 1]} : vector<1x128xf32> to vector<1x32xf32>
    %869 = vector.extract_strided_slice %867 {offsets = [0, 64], sizes = [1, 32], strides = [1, 1]} : vector<1x128xf32> to vector<1x32xf32>
    %870 = vector.extract_strided_slice %866 {offsets = [0, 96], sizes = [1, 32], strides = [1, 1]} : vector<1x128xf32> to vector<1x32xf32>
    %871 = arith.mulf %868, %869 : vector<1x32xf32>
    %872 = math.tanh %871 : vector<1x32xf32>
    %873 = arith.mulf %870, %872 : vector<1x32xf32>
    %c0_393 = arith.constant 0 : index
    %c0_394 = arith.constant 0 : index
    %874 = vector.load %arg12[%c0_393, %c0_394] : memref<2x32xf32, #tpu.memory_space<vmem>>, vector<1x32xf32>
    tpu.vector_store %arg12[%c0_393, %c0_394], %873 {strides = array<i32>} : memref<2x32xf32, #tpu.memory_space<vmem>>, vector<1x32xf32>,
    %875 = vector.extract_strided_slice %860 {offsets = [1, 0], sizes = [1, 128], strides = [1, 1]} : vector<2x128xf32> to vector<1x128xf32>
    %c2_395 = arith.constant 2 : index
    %c0_396 = arith.constant 0 : index
    %c0_397 = arith.constant 0 : index
    %876 = vector.load %arg6[%c2_395, %c0_396, %c0_397] : memref<3x32x128xf32, #tpu.memory_space<vmem>>, vector<1x32x128xf32>
    %877 = vector.shape_cast %876 : vector<1x32x128xf32> to vector<32x128xf32>
    %cst_398 = arith.constant dense<0.000000e+00> : vector<1x128xf32>
    %878 = tpu.matmul %873, %877, %cst_398 {dimension_numbers = #tpu.dot_dimension_numbers<[1], [0], [0], [1], [0, 0, 1, 1], [], []>} : vector<1x32xf32>, vector<32x128xf32>, vector<1x128xf32> -> vector<1x128xf32>
    %879 = arith.addf %875, %878 : vector<1x128xf32>
    %880 = arith.negf %879 : vector<1x128xf32>
    %881 = math.exp %880 : vector<1x128xf32>
    %cst_399 = arith.constant 1.000000e+00 : f32
    %882 = vector.broadcast %cst_399 : f32 to vector<1x128xf32>
    %883 = arith.addf %882, %881 : vector<1x128xf32>
    %884 = arith.divf %882, %883 : vector<1x128xf32>
    %885 = math.tanh %879 : vector<1x128xf32>
    %886 = vector.extract_strided_slice %884 {offsets = [0, 0], sizes = [1, 32], strides = [1, 1]} : vector<1x128xf32> to vector<1x32xf32>
    %887 = vector.extract_strided_slice %884 {offsets = [0, 32], sizes = [1, 32], strides = [1, 1]} : vector<1x128xf32> to vector<1x32xf32>
    %888 = vector.extract_strided_slice %885 {offsets = [0, 64], sizes = [1, 32], strides = [1, 1]} : vector<1x128xf32> to vector<1x32xf32>
    %889 = vector.extract_strided_slice %884 {offsets = [0, 96], sizes = [1, 32], strides = [1, 1]} : vector<1x128xf32> to vector<1x32xf32>
    %890 = arith.mulf %887, %871 : vector<1x32xf32>
    %891 = arith.mulf %886, %888 : vector<1x32xf32>
    %892 = arith.addf %890, %891 : vector<1x32xf32>
    %893 = math.tanh %892 : vector<1x32xf32>
    %894 = arith.mulf %889, %893 : vector<1x32xf32>
    %c1_400 = arith.constant 1 : index
    %c0_401 = arith.constant 0 : index
    %895 = vector.load %arg12[%c1_400, %c0_401] : memref<2x32xf32, #tpu.memory_space<vmem>>, vector<1x32xf32>
    tpu.vector_store %arg12[%c1_400, %c0_401], %894 {strides = array<i32>} : memref<2x32xf32, #tpu.memory_space<vmem>>, vector<1x32xf32>,
    %c0_402 = arith.constant 0 : index
    %c0_403 = arith.constant 0 : index
    %896 = vector.load %arg12[%c0_402, %c0_403] : memref<2x32xf32, #tpu.memory_space<vmem>>, vector<2x32xf32>
    %897 = vector.broadcast %59 : vector<1x32xf32> to vector<2x32xf32>
    %898 = arith.mulf %896, %897 : vector<2x32xf32>
    %cst_404 = arith.constant dense<0.000000e+00> : vector<2xf32>
    %899 = vector.multi_reduction <add>, %898, %cst_404 [1] : vector<2x32xf32> to vector<2xf32>
    %900 = vector.shape_cast %899 : vector<2xf32> to vector<2x1xf32>
    %901 = vector.broadcast %60 : vector<1x1xf32> to vector<2x1xf32>
    %902 = arith.addf %900, %901 : vector<2x1xf32>
    %c10_405 = arith.constant 10 : index
    %c0_406 = arith.constant 0 : index
    %903 = vector.load %arg10[%c10_405, %c0_406] : memref<16x1xf32, #tpu.memory_space<vmem>>, vector<2x1xf32>
    tpu.vector_store %arg10[%c10_405, %c0_406], %902 {strides = array<i32>} : memref<16x1xf32, #tpu.memory_space<vmem>>, vector<2x1xf32>,
    %904 = arith.subf %767, %896 : vector<2x32xf32>
    %cst_407 = arith.constant 5.000000e-01 : f32
    %905 = vector.broadcast %cst_407 : f32 to vector<2x32xf32>
    %906 = arith.mulf %904, %905 : vector<2x32xf32>
    %907 = arith.addf %896, %906 : vector<2x32xf32>
    %c12 = arith.constant 12 : index
    %c0_408 = arith.constant 0 : index
    %908 = vector.load %arg11[%c12, %c0_408] : memref<16x32xf32, #tpu.memory_space<vmem>>, vector<2x32xf32>
    %c0_409 = arith.constant 0 : index
    %c0_410 = arith.constant 0 : index
    %c0_411 = arith.constant 0 : index
    %909 = vector.load %arg5[%c0_409, %c0_410, %c0_411] : memref<3x32x128xf32, #tpu.memory_space<vmem>>, vector<1x32x128xf32>
    %910 = vector.shape_cast %909 : vector<1x32x128xf32> to vector<32x128xf32>
    %cst_412 = arith.constant dense<0.000000e+00> : vector<2x128xf32>
    %911 = tpu.matmul %907, %910, %cst_412 {dimension_numbers = #tpu.dot_dimension_numbers<[1], [0], [0], [1], [0, 0, 1, 1], [], []>} : vector<2x32xf32>, vector<32x128xf32>, vector<2x128xf32> -> vector<2x128xf32>
    %c0_413 = arith.constant 0 : index
    %c0_414 = arith.constant 0 : index
    %c0_415 = arith.constant 0 : index
    %912 = vector.load %arg7[%c0_413, %c0_414, %c0_415] : memref<3x1x128xf32, #tpu.memory_space<vmem>>, vector<1x1x128xf32>
    %913 = vector.shape_cast %912 : vector<1x1x128xf32> to vector<1x128xf32>
    %914 = vector.broadcast %913 : vector<1x128xf32> to vector<2x128xf32>
    %915 = arith.addf %911, %914 : vector<2x128xf32>
    %916 = vector.extract_strided_slice %915 {offsets = [0, 0], sizes = [1, 128], strides = [1, 1]} : vector<2x128xf32> to vector<1x128xf32>
    %917 = arith.negf %916 : vector<1x128xf32>
    %918 = math.exp %917 : vector<1x128xf32>
    %cst_416 = arith.constant 1.000000e+00 : f32
    %919 = vector.broadcast %cst_416 : f32 to vector<1x128xf32>
    %920 = arith.addf %919, %918 : vector<1x128xf32>
    %921 = arith.divf %919, %920 : vector<1x128xf32>
    %922 = math.tanh %916 : vector<1x128xf32>
    %923 = vector.extract_strided_slice %921 {offsets = [0, 0], sizes = [1, 32], strides = [1, 1]} : vector<1x128xf32> to vector<1x32xf32>
    %924 = vector.extract_strided_slice %922 {offsets = [0, 64], sizes = [1, 32], strides = [1, 1]} : vector<1x128xf32> to vector<1x32xf32>
    %925 = vector.extract_strided_slice %921 {offsets = [0, 96], sizes = [1, 32], strides = [1, 1]} : vector<1x128xf32> to vector<1x32xf32>
    %926 = arith.mulf %923, %924 : vector<1x32xf32>
    %927 = math.tanh %926 : vector<1x32xf32>
    %928 = arith.mulf %925, %927 : vector<1x32xf32>
    %c0_417 = arith.constant 0 : index
    %c0_418 = arith.constant 0 : index
    %929 = vector.load %arg12[%c0_417, %c0_418] : memref<2x32xf32, #tpu.memory_space<vmem>>, vector<1x32xf32>
    tpu.vector_store %arg12[%c0_417, %c0_418], %928 {strides = array<i32>} : memref<2x32xf32, #tpu.memory_space<vmem>>, vector<1x32xf32>,
    %930 = vector.extract_strided_slice %915 {offsets = [1, 0], sizes = [1, 128], strides = [1, 1]} : vector<2x128xf32> to vector<1x128xf32>
    %c0_419 = arith.constant 0 : index
    %c0_420 = arith.constant 0 : index
    %c0_421 = arith.constant 0 : index
    %931 = vector.load %arg6[%c0_419, %c0_420, %c0_421] : memref<3x32x128xf32, #tpu.memory_space<vmem>>, vector<1x32x128xf32>
    %932 = vector.shape_cast %931 : vector<1x32x128xf32> to vector<32x128xf32>
    %cst_422 = arith.constant dense<0.000000e+00> : vector<1x128xf32>
    %933 = tpu.matmul %928, %932, %cst_422 {dimension_numbers = #tpu.dot_dimension_numbers<[1], [0], [0], [1], [0, 0, 1, 1], [], []>} : vector<1x32xf32>, vector<32x128xf32>, vector<1x128xf32> -> vector<1x128xf32>
    %934 = arith.addf %930, %933 : vector<1x128xf32>
    %935 = arith.negf %934 : vector<1x128xf32>
    %936 = math.exp %935 : vector<1x128xf32>
    %cst_423 = arith.constant 1.000000e+00 : f32
    %937 = vector.broadcast %cst_423 : f32 to vector<1x128xf32>
    %938 = arith.addf %937, %936 : vector<1x128xf32>
    %939 = arith.divf %937, %938 : vector<1x128xf32>
    %940 = math.tanh %934 : vector<1x128xf32>
    %941 = vector.extract_strided_slice %939 {offsets = [0, 0], sizes = [1, 32], strides = [1, 1]} : vector<1x128xf32> to vector<1x32xf32>
    %942 = vector.extract_strided_slice %939 {offsets = [0, 32], sizes = [1, 32], strides = [1, 1]} : vector<1x128xf32> to vector<1x32xf32>
    %943 = vector.extract_strided_slice %940 {offsets = [0, 64], sizes = [1, 32], strides = [1, 1]} : vector<1x128xf32> to vector<1x32xf32>
    %944 = vector.extract_strided_slice %939 {offsets = [0, 96], sizes = [1, 32], strides = [1, 1]} : vector<1x128xf32> to vector<1x32xf32>
    %945 = arith.mulf %942, %926 : vector<1x32xf32>
    %946 = arith.mulf %941, %943 : vector<1x32xf32>
    %947 = arith.addf %945, %946 : vector<1x32xf32>
    %948 = math.tanh %947 : vector<1x32xf32>
    %949 = arith.mulf %944, %948 : vector<1x32xf32>
    %c1_424 = arith.constant 1 : index
    %c0_425 = arith.constant 0 : index
    %950 = vector.load %arg12[%c1_424, %c0_425] : memref<2x32xf32, #tpu.memory_space<vmem>>, vector<1x32xf32>
    tpu.vector_store %arg12[%c1_424, %c0_425], %949 {strides = array<i32>} : memref<2x32xf32, #tpu.memory_space<vmem>>, vector<1x32xf32>,
    %c0_426 = arith.constant 0 : index
    %c0_427 = arith.constant 0 : index
    %951 = vector.load %arg12[%c0_426, %c0_427] : memref<2x32xf32, #tpu.memory_space<vmem>>, vector<2x32xf32>
    %c1_428 = arith.constant 1 : index
    %c0_429 = arith.constant 0 : index
    %c0_430 = arith.constant 0 : index
    %952 = vector.load %arg5[%c1_428, %c0_429, %c0_430] : memref<3x32x128xf32, #tpu.memory_space<vmem>>, vector<1x32x128xf32>
    %953 = vector.shape_cast %952 : vector<1x32x128xf32> to vector<32x128xf32>
    %cst_431 = arith.constant dense<0.000000e+00> : vector<2x128xf32>
    %954 = tpu.matmul %951, %953, %cst_431 {dimension_numbers = #tpu.dot_dimension_numbers<[1], [0], [0], [1], [0, 0, 1, 1], [], []>} : vector<2x32xf32>, vector<32x128xf32>, vector<2x128xf32> -> vector<2x128xf32>
    %c1_432 = arith.constant 1 : index
    %c0_433 = arith.constant 0 : index
    %c0_434 = arith.constant 0 : index
    %955 = vector.load %arg7[%c1_432, %c0_433, %c0_434] : memref<3x1x128xf32, #tpu.memory_space<vmem>>, vector<1x1x128xf32>
    %956 = vector.shape_cast %955 : vector<1x1x128xf32> to vector<1x128xf32>
    %957 = vector.broadcast %956 : vector<1x128xf32> to vector<2x128xf32>
    %958 = arith.addf %954, %957 : vector<2x128xf32>
    %959 = vector.extract_strided_slice %958 {offsets = [0, 0], sizes = [1, 128], strides = [1, 1]} : vector<2x128xf32> to vector<1x128xf32>
    %960 = arith.negf %959 : vector<1x128xf32>
    %961 = math.exp %960 : vector<1x128xf32>
    %cst_435 = arith.constant 1.000000e+00 : f32
    %962 = vector.broadcast %cst_435 : f32 to vector<1x128xf32>
    %963 = arith.addf %962, %961 : vector<1x128xf32>
    %964 = arith.divf %962, %963 : vector<1x128xf32>
    %965 = math.tanh %959 : vector<1x128xf32>
    %966 = vector.extract_strided_slice %964 {offsets = [0, 0], sizes = [1, 32], strides = [1, 1]} : vector<1x128xf32> to vector<1x32xf32>
    %967 = vector.extract_strided_slice %965 {offsets = [0, 64], sizes = [1, 32], strides = [1, 1]} : vector<1x128xf32> to vector<1x32xf32>
    %968 = vector.extract_strided_slice %964 {offsets = [0, 96], sizes = [1, 32], strides = [1, 1]} : vector<1x128xf32> to vector<1x32xf32>
    %969 = arith.mulf %966, %967 : vector<1x32xf32>
    %970 = math.tanh %969 : vector<1x32xf32>
    %971 = arith.mulf %968, %970 : vector<1x32xf32>
    %c0_436 = arith.constant 0 : index
    %c0_437 = arith.constant 0 : index
    %972 = vector.load %arg12[%c0_436, %c0_437] : memref<2x32xf32, #tpu.memory_space<vmem>>, vector<1x32xf32>
    tpu.vector_store %arg12[%c0_436, %c0_437], %971 {strides = array<i32>} : memref<2x32xf32, #tpu.memory_space<vmem>>, vector<1x32xf32>,
    %973 = vector.extract_strided_slice %958 {offsets = [1, 0], sizes = [1, 128], strides = [1, 1]} : vector<2x128xf32> to vector<1x128xf32>
    %c1_438 = arith.constant 1 : index
    %c0_439 = arith.constant 0 : index
    %c0_440 = arith.constant 0 : index
    %974 = vector.load %arg6[%c1_438, %c0_439, %c0_440] : memref<3x32x128xf32, #tpu.memory_space<vmem>>, vector<1x32x128xf32>
    %975 = vector.shape_cast %974 : vector<1x32x128xf32> to vector<32x128xf32>
    %cst_441 = arith.constant dense<0.000000e+00> : vector<1x128xf32>
    %976 = tpu.matmul %971, %975, %cst_441 {dimension_numbers = #tpu.dot_dimension_numbers<[1], [0], [0], [1], [0, 0, 1, 1], [], []>} : vector<1x32xf32>, vector<32x128xf32>, vector<1x128xf32> -> vector<1x128xf32>
    %977 = arith.addf %973, %976 : vector<1x128xf32>
    %978 = arith.negf %977 : vector<1x128xf32>
    %979 = math.exp %978 : vector<1x128xf32>
    %cst_442 = arith.constant 1.000000e+00 : f32
    %980 = vector.broadcast %cst_442 : f32 to vector<1x128xf32>
    %981 = arith.addf %980, %979 : vector<1x128xf32>
    %982 = arith.divf %980, %981 : vector<1x128xf32>
    %983 = math.tanh %977 : vector<1x128xf32>
    %984 = vector.extract_strided_slice %982 {offsets = [0, 0], sizes = [1, 32], strides = [1, 1]} : vector<1x128xf32> to vector<1x32xf32>
    %985 = vector.extract_strided_slice %982 {offsets = [0, 32], sizes = [1, 32], strides = [1, 1]} : vector<1x128xf32> to vector<1x32xf32>
    %986 = vector.extract_strided_slice %983 {offsets = [0, 64], sizes = [1, 32], strides = [1, 1]} : vector<1x128xf32> to vector<1x32xf32>
    %987 = vector.extract_strided_slice %982 {offsets = [0, 96], sizes = [1, 32], strides = [1, 1]} : vector<1x128xf32> to vector<1x32xf32>
    %988 = arith.mulf %985, %969 : vector<1x32xf32>
    %989 = arith.mulf %984, %986 : vector<1x32xf32>
    %990 = arith.addf %988, %989 : vector<1x32xf32>
    %991 = math.tanh %990 : vector<1x32xf32>
    %992 = arith.mulf %987, %991 : vector<1x32xf32>
    %c1_443 = arith.constant 1 : index
    %c0_444 = arith.constant 0 : index
    %993 = vector.load %arg12[%c1_443, %c0_444] : memref<2x32xf32, #tpu.memory_space<vmem>>, vector<1x32xf32>
    tpu.vector_store %arg12[%c1_443, %c0_444], %992 {strides = array<i32>} : memref<2x32xf32, #tpu.memory_space<vmem>>, vector<1x32xf32>,
    %c0_445 = arith.constant 0 : index
    %c0_446 = arith.constant 0 : index
    %994 = vector.load %arg12[%c0_445, %c0_446] : memref<2x32xf32, #tpu.memory_space<vmem>>, vector<2x32xf32>
    %c2_447 = arith.constant 2 : index
    %c0_448 = arith.constant 0 : index
    %c0_449 = arith.constant 0 : index
    %995 = vector.load %arg5[%c2_447, %c0_448, %c0_449] : memref<3x32x128xf32, #tpu.memory_space<vmem>>, vector<1x32x128xf32>
    %996 = vector.shape_cast %995 : vector<1x32x128xf32> to vector<32x128xf32>
    %cst_450 = arith.constant dense<0.000000e+00> : vector<2x128xf32>
    %997 = tpu.matmul %994, %996, %cst_450 {dimension_numbers = #tpu.dot_dimension_numbers<[1], [0], [0], [1], [0, 0, 1, 1], [], []>} : vector<2x32xf32>, vector<32x128xf32>, vector<2x128xf32> -> vector<2x128xf32>
    %c2_451 = arith.constant 2 : index
    %c0_452 = arith.constant 0 : index
    %c0_453 = arith.constant 0 : index
    %998 = vector.load %arg7[%c2_451, %c0_452, %c0_453] : memref<3x1x128xf32, #tpu.memory_space<vmem>>, vector<1x1x128xf32>
    %999 = vector.shape_cast %998 : vector<1x1x128xf32> to vector<1x128xf32>
    %1000 = vector.broadcast %999 : vector<1x128xf32> to vector<2x128xf32>
    %1001 = arith.addf %997, %1000 : vector<2x128xf32>
    %1002 = vector.extract_strided_slice %1001 {offsets = [0, 0], sizes = [1, 128], strides = [1, 1]} : vector<2x128xf32> to vector<1x128xf32>
    %1003 = arith.negf %1002 : vector<1x128xf32>
    %1004 = math.exp %1003 : vector<1x128xf32>
    %cst_454 = arith.constant 1.000000e+00 : f32
    %1005 = vector.broadcast %cst_454 : f32 to vector<1x128xf32>
    %1006 = arith.addf %1005, %1004 : vector<1x128xf32>
    %1007 = arith.divf %1005, %1006 : vector<1x128xf32>
    %1008 = math.tanh %1002 : vector<1x128xf32>
    %1009 = vector.extract_strided_slice %1007 {offsets = [0, 0], sizes = [1, 32], strides = [1, 1]} : vector<1x128xf32> to vector<1x32xf32>
    %1010 = vector.extract_strided_slice %1008 {offsets = [0, 64], sizes = [1, 32], strides = [1, 1]} : vector<1x128xf32> to vector<1x32xf32>
    %1011 = vector.extract_strided_slice %1007 {offsets = [0, 96], sizes = [1, 32], strides = [1, 1]} : vector<1x128xf32> to vector<1x32xf32>
    %1012 = arith.mulf %1009, %1010 : vector<1x32xf32>
    %1013 = math.tanh %1012 : vector<1x32xf32>
    %1014 = arith.mulf %1011, %1013 : vector<1x32xf32>
    %c0_455 = arith.constant 0 : index
    %c0_456 = arith.constant 0 : index
    %1015 = vector.load %arg12[%c0_455, %c0_456] : memref<2x32xf32, #tpu.memory_space<vmem>>, vector<1x32xf32>
    tpu.vector_store %arg12[%c0_455, %c0_456], %1014 {strides = array<i32>} : memref<2x32xf32, #tpu.memory_space<vmem>>, vector<1x32xf32>,
    %1016 = vector.extract_strided_slice %1001 {offsets = [1, 0], sizes = [1, 128], strides = [1, 1]} : vector<2x128xf32> to vector<1x128xf32>
    %c2_457 = arith.constant 2 : index
    %c0_458 = arith.constant 0 : index
    %c0_459 = arith.constant 0 : index
    %1017 = vector.load %arg6[%c2_457, %c0_458, %c0_459] : memref<3x32x128xf32, #tpu.memory_space<vmem>>, vector<1x32x128xf32>
    %1018 = vector.shape_cast %1017 : vector<1x32x128xf32> to vector<32x128xf32>
    %cst_460 = arith.constant dense<0.000000e+00> : vector<1x128xf32>
    %1019 = tpu.matmul %1014, %1018, %cst_460 {dimension_numbers = #tpu.dot_dimension_numbers<[1], [0], [0], [1], [0, 0, 1, 1], [], []>} : vector<1x32xf32>, vector<32x128xf32>, vector<1x128xf32> -> vector<1x128xf32>
    %1020 = arith.addf %1016, %1019 : vector<1x128xf32>
    %1021 = arith.negf %1020 : vector<1x128xf32>
    %1022 = math.exp %1021 : vector<1x128xf32>
    %cst_461 = arith.constant 1.000000e+00 : f32
    %1023 = vector.broadcast %cst_461 : f32 to vector<1x128xf32>
    %1024 = arith.addf %1023, %1022 : vector<1x128xf32>
    %1025 = arith.divf %1023, %1024 : vector<1x128xf32>
    %1026 = math.tanh %1020 : vector<1x128xf32>
    %1027 = vector.extract_strided_slice %1025 {offsets = [0, 0], sizes = [1, 32], strides = [1, 1]} : vector<1x128xf32> to vector<1x32xf32>
    %1028 = vector.extract_strided_slice %1025 {offsets = [0, 32], sizes = [1, 32], strides = [1, 1]} : vector<1x128xf32> to vector<1x32xf32>
    %1029 = vector.extract_strided_slice %1026 {offsets = [0, 64], sizes = [1, 32], strides = [1, 1]} : vector<1x128xf32> to vector<1x32xf32>
    %1030 = vector.extract_strided_slice %1025 {offsets = [0, 96], sizes = [1, 32], strides = [1, 1]} : vector<1x128xf32> to vector<1x32xf32>
    %1031 = arith.mulf %1028, %1012 : vector<1x32xf32>
    %1032 = arith.mulf %1027, %1029 : vector<1x32xf32>
    %1033 = arith.addf %1031, %1032 : vector<1x32xf32>
    %1034 = math.tanh %1033 : vector<1x32xf32>
    %1035 = arith.mulf %1030, %1034 : vector<1x32xf32>
    %c1_462 = arith.constant 1 : index
    %c0_463 = arith.constant 0 : index
    %1036 = vector.load %arg12[%c1_462, %c0_463] : memref<2x32xf32, #tpu.memory_space<vmem>>, vector<1x32xf32>
    tpu.vector_store %arg12[%c1_462, %c0_463], %1035 {strides = array<i32>} : memref<2x32xf32, #tpu.memory_space<vmem>>, vector<1x32xf32>,
    %c0_464 = arith.constant 0 : index
    %c0_465 = arith.constant 0 : index
    %1037 = vector.load %arg12[%c0_464, %c0_465] : memref<2x32xf32, #tpu.memory_space<vmem>>, vector<2x32xf32>
    %1038 = vector.broadcast %59 : vector<1x32xf32> to vector<2x32xf32>
    %1039 = arith.mulf %1037, %1038 : vector<2x32xf32>
    %cst_466 = arith.constant dense<0.000000e+00> : vector<2xf32>
    %1040 = vector.multi_reduction <add>, %1039, %cst_466 [1] : vector<2x32xf32> to vector<2xf32>
    %1041 = vector.shape_cast %1040 : vector<2xf32> to vector<2x1xf32>
    %1042 = vector.broadcast %60 : vector<1x1xf32> to vector<2x1xf32>
    %1043 = arith.addf %1041, %1042 : vector<2x1xf32>
    %c12_467 = arith.constant 12 : index
    %c0_468 = arith.constant 0 : index
    %1044 = vector.load %arg10[%c12_467, %c0_468] : memref<16x1xf32, #tpu.memory_space<vmem>>, vector<2x1xf32>
    tpu.vector_store %arg10[%c12_467, %c0_468], %1043 {strides = array<i32>} : memref<16x1xf32, #tpu.memory_space<vmem>>, vector<2x1xf32>,
    %1045 = arith.subf %908, %1037 : vector<2x32xf32>
    %cst_469 = arith.constant 5.000000e-01 : f32
    %1046 = vector.broadcast %cst_469 : f32 to vector<2x32xf32>
    %1047 = arith.mulf %1045, %1046 : vector<2x32xf32>
    %1048 = arith.addf %1037, %1047 : vector<2x32xf32>
    %c0_470 = arith.constant 0 : index
    %c0_471 = arith.constant 0 : index
    %c0_472 = arith.constant 0 : index
    %1049 = vector.load %arg5[%c0_470, %c0_471, %c0_472] : memref<3x32x128xf32, #tpu.memory_space<vmem>>, vector<1x32x128xf32>
    %1050 = vector.shape_cast %1049 : vector<1x32x128xf32> to vector<32x128xf32>
    %cst_473 = arith.constant dense<0.000000e+00> : vector<2x128xf32>
    %1051 = tpu.matmul %1048, %1050, %cst_473 {dimension_numbers = #tpu.dot_dimension_numbers<[1], [0], [0], [1], [0, 0, 1, 1], [], []>} : vector<2x32xf32>, vector<32x128xf32>, vector<2x128xf32> -> vector<2x128xf32>
    %c0_474 = arith.constant 0 : index
    %c0_475 = arith.constant 0 : index
    %c0_476 = arith.constant 0 : index
    %1052 = vector.load %arg7[%c0_474, %c0_475, %c0_476] : memref<3x1x128xf32, #tpu.memory_space<vmem>>, vector<1x1x128xf32>
    %1053 = vector.shape_cast %1052 : vector<1x1x128xf32> to vector<1x128xf32>
    %1054 = vector.broadcast %1053 : vector<1x128xf32> to vector<2x128xf32>
    %1055 = arith.addf %1051, %1054 : vector<2x128xf32>
    %1056 = vector.extract_strided_slice %1055 {offsets = [0, 0], sizes = [1, 128], strides = [1, 1]} : vector<2x128xf32> to vector<1x128xf32>
    %1057 = arith.negf %1056 : vector<1x128xf32>
    %1058 = math.exp %1057 : vector<1x128xf32>
    %cst_477 = arith.constant 1.000000e+00 : f32
    %1059 = vector.broadcast %cst_477 : f32 to vector<1x128xf32>
    %1060 = arith.addf %1059, %1058 : vector<1x128xf32>
    %1061 = arith.divf %1059, %1060 : vector<1x128xf32>
    %1062 = math.tanh %1056 : vector<1x128xf32>
    %1063 = vector.extract_strided_slice %1061 {offsets = [0, 0], sizes = [1, 32], strides = [1, 1]} : vector<1x128xf32> to vector<1x32xf32>
    %1064 = vector.extract_strided_slice %1062 {offsets = [0, 64], sizes = [1, 32], strides = [1, 1]} : vector<1x128xf32> to vector<1x32xf32>
    %1065 = vector.extract_strided_slice %1061 {offsets = [0, 96], sizes = [1, 32], strides = [1, 1]} : vector<1x128xf32> to vector<1x32xf32>
    %1066 = arith.mulf %1063, %1064 : vector<1x32xf32>
    %1067 = math.tanh %1066 : vector<1x32xf32>
    %1068 = arith.mulf %1065, %1067 : vector<1x32xf32>
    %c0_478 = arith.constant 0 : index
    %c0_479 = arith.constant 0 : index
    %1069 = vector.load %arg12[%c0_478, %c0_479] : memref<2x32xf32, #tpu.memory_space<vmem>>, vector<1x32xf32>
    tpu.vector_store %arg12[%c0_478, %c0_479], %1068 {strides = array<i32>} : memref<2x32xf32, #tpu.memory_space<vmem>>, vector<1x32xf32>,
    %1070 = vector.extract_strided_slice %1055 {offsets = [1, 0], sizes = [1, 128], strides = [1, 1]} : vector<2x128xf32> to vector<1x128xf32>
    %c0_480 = arith.constant 0 : index
    %c0_481 = arith.constant 0 : index
    %c0_482 = arith.constant 0 : index
    %1071 = vector.load %arg6[%c0_480, %c0_481, %c0_482] : memref<3x32x128xf32, #tpu.memory_space<vmem>>, vector<1x32x128xf32>
    %1072 = vector.shape_cast %1071 : vector<1x32x128xf32> to vector<32x128xf32>
    %cst_483 = arith.constant dense<0.000000e+00> : vector<1x128xf32>
    %1073 = tpu.matmul %1068, %1072, %cst_483 {dimension_numbers = #tpu.dot_dimension_numbers<[1], [0], [0], [1], [0, 0, 1, 1], [], []>} : vector<1x32xf32>, vector<32x128xf32>, vector<1x128xf32> -> vector<1x128xf32>
    %1074 = arith.addf %1070, %1073 : vector<1x128xf32>
    %1075 = arith.negf %1074 : vector<1x128xf32>
    %1076 = math.exp %1075 : vector<1x128xf32>
    %cst_484 = arith.constant 1.000000e+00 : f32
    %1077 = vector.broadcast %cst_484 : f32 to vector<1x128xf32>
    %1078 = arith.addf %1077, %1076 : vector<1x128xf32>
    %1079 = arith.divf %1077, %1078 : vector<1x128xf32>
    %1080 = math.tanh %1074 : vector<1x128xf32>
    %1081 = vector.extract_strided_slice %1079 {offsets = [0, 0], sizes = [1, 32], strides = [1, 1]} : vector<1x128xf32> to vector<1x32xf32>
    %1082 = vector.extract_strided_slice %1079 {offsets = [0, 32], sizes = [1, 32], strides = [1, 1]} : vector<1x128xf32> to vector<1x32xf32>
    %1083 = vector.extract_strided_slice %1080 {offsets = [0, 64], sizes = [1, 32], strides = [1, 1]} : vector<1x128xf32> to vector<1x32xf32>
    %1084 = vector.extract_strided_slice %1079 {offsets = [0, 96], sizes = [1, 32], strides = [1, 1]} : vector<1x128xf32> to vector<1x32xf32>
    %1085 = arith.mulf %1082, %1066 : vector<1x32xf32>
    %1086 = arith.mulf %1081, %1083 : vector<1x32xf32>
    %1087 = arith.addf %1085, %1086 : vector<1x32xf32>
    %1088 = math.tanh %1087 : vector<1x32xf32>
    %1089 = arith.mulf %1084, %1088 : vector<1x32xf32>
    %c1_485 = arith.constant 1 : index
    %c0_486 = arith.constant 0 : index
    %1090 = vector.load %arg12[%c1_485, %c0_486] : memref<2x32xf32, #tpu.memory_space<vmem>>, vector<1x32xf32>
    tpu.vector_store %arg12[%c1_485, %c0_486], %1089 {strides = array<i32>} : memref<2x32xf32, #tpu.memory_space<vmem>>, vector<1x32xf32>,
    %c0_487 = arith.constant 0 : index
    %c0_488 = arith.constant 0 : index
    %1091 = vector.load %arg12[%c0_487, %c0_488] : memref<2x32xf32, #tpu.memory_space<vmem>>, vector<2x32xf32>
    %c1_489 = arith.constant 1 : index
    %c0_490 = arith.constant 0 : index
    %c0_491 = arith.constant 0 : index
    %1092 = vector.load %arg5[%c1_489, %c0_490, %c0_491] : memref<3x32x128xf32, #tpu.memory_space<vmem>>, vector<1x32x128xf32>
    %1093 = vector.shape_cast %1092 : vector<1x32x128xf32> to vector<32x128xf32>
    %cst_492 = arith.constant dense<0.000000e+00> : vector<2x128xf32>
    %1094 = tpu.matmul %1091, %1093, %cst_492 {dimension_numbers = #tpu.dot_dimension_numbers<[1], [0], [0], [1], [0, 0, 1, 1], [], []>} : vector<2x32xf32>, vector<32x128xf32>, vector<2x128xf32> -> vector<2x128xf32>
    %c1_493 = arith.constant 1 : index
    %c0_494 = arith.constant 0 : index
    %c0_495 = arith.constant 0 : index
    %1095 = vector.load %arg7[%c1_493, %c0_494, %c0_495] : memref<3x1x128xf32, #tpu.memory_space<vmem>>, vector<1x1x128xf32>
    %1096 = vector.shape_cast %1095 : vector<1x1x128xf32> to vector<1x128xf32>
    %1097 = vector.broadcast %1096 : vector<1x128xf32> to vector<2x128xf32>
    %1098 = arith.addf %1094, %1097 : vector<2x128xf32>
    %1099 = vector.extract_strided_slice %1098 {offsets = [0, 0], sizes = [1, 128], strides = [1, 1]} : vector<2x128xf32> to vector<1x128xf32>
    %1100 = arith.negf %1099 : vector<1x128xf32>
    %1101 = math.exp %1100 : vector<1x128xf32>
    %cst_496 = arith.constant 1.000000e+00 : f32
    %1102 = vector.broadcast %cst_496 : f32 to vector<1x128xf32>
    %1103 = arith.addf %1102, %1101 : vector<1x128xf32>
    %1104 = arith.divf %1102, %1103 : vector<1x128xf32>
    %1105 = math.tanh %1099 : vector<1x128xf32>
    %1106 = vector.extract_strided_slice %1104 {offsets = [0, 0], sizes = [1, 32], strides = [1, 1]} : vector<1x128xf32> to vector<1x32xf32>
    %1107 = vector.extract_strided_slice %1105 {offsets = [0, 64], sizes = [1, 32], strides = [1, 1]} : vector<1x128xf32> to vector<1x32xf32>
    %1108 = vector.extract_strided_slice %1104 {offsets = [0, 96], sizes = [1, 32], strides = [1, 1]} : vector<1x128xf32> to vector<1x32xf32>
    %1109 = arith.mulf %1106, %1107 : vector<1x32xf32>
    %1110 = math.tanh %1109 : vector<1x32xf32>
    %1111 = arith.mulf %1108, %1110 : vector<1x32xf32>
    %c0_497 = arith.constant 0 : index
    %c0_498 = arith.constant 0 : index
    %1112 = vector.load %arg12[%c0_497, %c0_498] : memref<2x32xf32, #tpu.memory_space<vmem>>, vector<1x32xf32>
    tpu.vector_store %arg12[%c0_497, %c0_498], %1111 {strides = array<i32>} : memref<2x32xf32, #tpu.memory_space<vmem>>, vector<1x32xf32>,
    %1113 = vector.extract_strided_slice %1098 {offsets = [1, 0], sizes = [1, 128], strides = [1, 1]} : vector<2x128xf32> to vector<1x128xf32>
    %c1_499 = arith.constant 1 : index
    %c0_500 = arith.constant 0 : index
    %c0_501 = arith.constant 0 : index
    %1114 = vector.load %arg6[%c1_499, %c0_500, %c0_501] : memref<3x32x128xf32, #tpu.memory_space<vmem>>, vector<1x32x128xf32>
    %1115 = vector.shape_cast %1114 : vector<1x32x128xf32> to vector<32x128xf32>
    %cst_502 = arith.constant dense<0.000000e+00> : vector<1x128xf32>
    %1116 = tpu.matmul %1111, %1115, %cst_502 {dimension_numbers = #tpu.dot_dimension_numbers<[1], [0], [0], [1], [0, 0, 1, 1], [], []>} : vector<1x32xf32>, vector<32x128xf32>, vector<1x128xf32> -> vector<1x128xf32>
    %1117 = arith.addf %1113, %1116 : vector<1x128xf32>
    %1118 = arith.negf %1117 : vector<1x128xf32>
    %1119 = math.exp %1118 : vector<1x128xf32>
    %cst_503 = arith.constant 1.000000e+00 : f32
    %1120 = vector.broadcast %cst_503 : f32 to vector<1x128xf32>
    %1121 = arith.addf %1120, %1119 : vector<1x128xf32>
    %1122 = arith.divf %1120, %1121 : vector<1x128xf32>
    %1123 = math.tanh %1117 : vector<1x128xf32>
    %1124 = vector.extract_strided_slice %1122 {offsets = [0, 0], sizes = [1, 32], strides = [1, 1]} : vector<1x128xf32> to vector<1x32xf32>
    %1125 = vector.extract_strided_slice %1122 {offsets = [0, 32], sizes = [1, 32], strides = [1, 1]} : vector<1x128xf32> to vector<1x32xf32>
    %1126 = vector.extract_strided_slice %1123 {offsets = [0, 64], sizes = [1, 32], strides = [1, 1]} : vector<1x128xf32> to vector<1x32xf32>
    %1127 = vector.extract_strided_slice %1122 {offsets = [0, 96], sizes = [1, 32], strides = [1, 1]} : vector<1x128xf32> to vector<1x32xf32>
    %1128 = arith.mulf %1125, %1109 : vector<1x32xf32>
    %1129 = arith.mulf %1124, %1126 : vector<1x32xf32>
    %1130 = arith.addf %1128, %1129 : vector<1x32xf32>
    %1131 = math.tanh %1130 : vector<1x32xf32>
    %1132 = arith.mulf %1127, %1131 : vector<1x32xf32>
    %c1_504 = arith.constant 1 : index
    %c0_505 = arith.constant 0 : index
    %1133 = vector.load %arg12[%c1_504, %c0_505] : memref<2x32xf32, #tpu.memory_space<vmem>>, vector<1x32xf32>
    tpu.vector_store %arg12[%c1_504, %c0_505], %1132 {strides = array<i32>} : memref<2x32xf32, #tpu.memory_space<vmem>>, vector<1x32xf32>,
    %c0_506 = arith.constant 0 : index
    %c0_507 = arith.constant 0 : index
    %1134 = vector.load %arg12[%c0_506, %c0_507] : memref<2x32xf32, #tpu.memory_space<vmem>>, vector<2x32xf32>
    %c2_508 = arith.constant 2 : index
    %c0_509 = arith.constant 0 : index
    %c0_510 = arith.constant 0 : index
    %1135 = vector.load %arg5[%c2_508, %c0_509, %c0_510] : memref<3x32x128xf32, #tpu.memory_space<vmem>>, vector<1x32x128xf32>
    %1136 = vector.shape_cast %1135 : vector<1x32x128xf32> to vector<32x128xf32>
    %cst_511 = arith.constant dense<0.000000e+00> : vector<2x128xf32>
    %1137 = tpu.matmul %1134, %1136, %cst_511 {dimension_numbers = #tpu.dot_dimension_numbers<[1], [0], [0], [1], [0, 0, 1, 1], [], []>} : vector<2x32xf32>, vector<32x128xf32>, vector<2x128xf32> -> vector<2x128xf32>
    %c2_512 = arith.constant 2 : index
    %c0_513 = arith.constant 0 : index
    %c0_514 = arith.constant 0 : index
    %1138 = vector.load %arg7[%c2_512, %c0_513, %c0_514] : memref<3x1x128xf32, #tpu.memory_space<vmem>>, vector<1x1x128xf32>
    %1139 = vector.shape_cast %1138 : vector<1x1x128xf32> to vector<1x128xf32>
    %1140 = vector.broadcast %1139 : vector<1x128xf32> to vector<2x128xf32>
    %1141 = arith.addf %1137, %1140 : vector<2x128xf32>
    %1142 = vector.extract_strided_slice %1141 {offsets = [0, 0], sizes = [1, 128], strides = [1, 1]} : vector<2x128xf32> to vector<1x128xf32>
    %1143 = arith.negf %1142 : vector<1x128xf32>
    %1144 = math.exp %1143 : vector<1x128xf32>
    %cst_515 = arith.constant 1.000000e+00 : f32
    %1145 = vector.broadcast %cst_515 : f32 to vector<1x128xf32>
    %1146 = arith.addf %1145, %1144 : vector<1x128xf32>
    %1147 = arith.divf %1145, %1146 : vector<1x128xf32>
    %1148 = math.tanh %1142 : vector<1x128xf32>
    %1149 = vector.extract_strided_slice %1147 {offsets = [0, 0], sizes = [1, 32], strides = [1, 1]} : vector<1x128xf32> to vector<1x32xf32>
    %1150 = vector.extract_strided_slice %1148 {offsets = [0, 64], sizes = [1, 32], strides = [1, 1]} : vector<1x128xf32> to vector<1x32xf32>
    %1151 = vector.extract_strided_slice %1147 {offsets = [0, 96], sizes = [1, 32], strides = [1, 1]} : vector<1x128xf32> to vector<1x32xf32>
    %1152 = arith.mulf %1149, %1150 : vector<1x32xf32>
    %1153 = math.tanh %1152 : vector<1x32xf32>
    %1154 = arith.mulf %1151, %1153 : vector<1x32xf32>
    %c0_516 = arith.constant 0 : index
    %c0_517 = arith.constant 0 : index
    %1155 = vector.load %arg12[%c0_516, %c0_517] : memref<2x32xf32, #tpu.memory_space<vmem>>, vector<1x32xf32>
    tpu.vector_store %arg12[%c0_516, %c0_517], %1154 {strides = array<i32>} : memref<2x32xf32, #tpu.memory_space<vmem>>, vector<1x32xf32>,
    %1156 = vector.extract_strided_slice %1141 {offsets = [1, 0], sizes = [1, 128], strides = [1, 1]} : vector<2x128xf32> to vector<1x128xf32>
    %c2_518 = arith.constant 2 : index
    %c0_519 = arith.constant 0 : index
    %c0_520 = arith.constant 0 : index
    %1157 = vector.load %arg6[%c2_518, %c0_519, %c0_520] : memref<3x32x128xf32, #tpu.memory_space<vmem>>, vector<1x32x128xf32>
    %1158 = vector.shape_cast %1157 : vector<1x32x128xf32> to vector<32x128xf32>
    %cst_521 = arith.constant dense<0.000000e+00> : vector<1x128xf32>
    %1159 = tpu.matmul %1154, %1158, %cst_521 {dimension_numbers = #tpu.dot_dimension_numbers<[1], [0], [0], [1], [0, 0, 1, 1], [], []>} : vector<1x32xf32>, vector<32x128xf32>, vector<1x128xf32> -> vector<1x128xf32>
    %1160 = arith.addf %1156, %1159 : vector<1x128xf32>
    %1161 = arith.negf %1160 : vector<1x128xf32>
    %1162 = math.exp %1161 : vector<1x128xf32>
    %cst_522 = arith.constant 1.000000e+00 : f32
    %1163 = vector.broadcast %cst_522 : f32 to vector<1x128xf32>
    %1164 = arith.addf %1163, %1162 : vector<1x128xf32>
    %1165 = arith.divf %1163, %1164 : vector<1x128xf32>
    %1166 = math.tanh %1160 : vector<1x128xf32>
    %1167 = vector.extract_strided_slice %1165 {offsets = [0, 0], sizes = [1, 32], strides = [1, 1]} : vector<1x128xf32> to vector<1x32xf32>
    %1168 = vector.extract_strided_slice %1165 {offsets = [0, 32], sizes = [1, 32], strides = [1, 1]} : vector<1x128xf32> to vector<1x32xf32>
    %1169 = vector.extract_strided_slice %1166 {offsets = [0, 64], sizes = [1, 32], strides = [1, 1]} : vector<1x128xf32> to vector<1x32xf32>
    %1170 = vector.extract_strided_slice %1165 {offsets = [0, 96], sizes = [1, 32], strides = [1, 1]} : vector<1x128xf32> to vector<1x32xf32>
    %1171 = arith.mulf %1168, %1152 : vector<1x32xf32>
    %1172 = arith.mulf %1167, %1169 : vector<1x32xf32>
    %1173 = arith.addf %1171, %1172 : vector<1x32xf32>
    %1174 = math.tanh %1173 : vector<1x32xf32>
    %1175 = arith.mulf %1170, %1174 : vector<1x32xf32>
    %c1_523 = arith.constant 1 : index
    %c0_524 = arith.constant 0 : index
    %1176 = vector.load %arg12[%c1_523, %c0_524] : memref<2x32xf32, #tpu.memory_space<vmem>>, vector<1x32xf32>
    tpu.vector_store %arg12[%c1_523, %c0_524], %1175 {strides = array<i32>} : memref<2x32xf32, #tpu.memory_space<vmem>>, vector<1x32xf32>,
    %c0_525 = arith.constant 0 : index
    %c0_526 = arith.constant 0 : index
    %1177 = vector.load %arg12[%c0_525, %c0_526] : memref<2x32xf32, #tpu.memory_space<vmem>>, vector<2x32xf32>
    %1178 = vector.broadcast %59 : vector<1x32xf32> to vector<2x32xf32>
    %1179 = arith.mulf %1177, %1178 : vector<2x32xf32>
    %cst_527 = arith.constant dense<0.000000e+00> : vector<2xf32>
    %1180 = vector.multi_reduction <add>, %1179, %cst_527 [1] : vector<2x32xf32> to vector<2xf32>
    %1181 = vector.shape_cast %1180 : vector<2xf32> to vector<2x1xf32>
    %1182 = vector.broadcast %60 : vector<1x1xf32> to vector<2x1xf32>
    %1183 = arith.addf %1181, %1182 : vector<2x1xf32>
    %c14 = arith.constant 14 : index
    %c0_528 = arith.constant 0 : index
    %1184 = vector.load %arg10[%c14, %c0_528] : memref<16x1xf32, #tpu.memory_space<vmem>>, vector<2x1xf32>
    tpu.vector_store %arg10[%c14, %c0_528], %1183 {strides = array<i32>} : memref<16x1xf32, #tpu.memory_space<vmem>>, vector<2x1xf32>,
    return
  }
}

</mosaic_0001>

<bundles_post_ra>
// kernel: temperal_model_forward.1
= control target key start
LH: loop header
LB: loop body
LE: loop exit
PB: predicated region body
PF: predicated region fallthrough
CT: control target
= control target key end

     0   :  { %s8707_s0 = inlined_call_operand.vmem [shape: f32[4,16,1], index: 0, kind: input, shape index: {}]   ;;  %s8708_s1 = inlined_call_operand.vmem [shape: f32[4,32], index: 1, kind: input, shape index: {}]   ;;  %s8709_s2 = inlined_call_operand.vmem [shape: f32[16,32], index: 2, kind: input, shape index: {}]   ;;  %s8710_s3 = inlined_call_operand.vmem [shape: f32[1,32], index: 3, kind: input, shape index: {}]   ;;  %s8711_s4 = inlined_call_operand.vmem [shape: f32[1,32], index: 4, kind: input, shape index: {}]   ;;  %s8712_s5 = inlined_call_operand.vmem [shape: f32[3,32,128], index: 5, kind: input, shape index: {}]   ;;  %s8713_s6 = inlined_call_operand.hbm [shape: f32[3,32,128], index: 6, kind: input, shape index: {}]   ;;  %s8714_s7 = inlined_call_operand.vmem [shape: f32[3,1,128], index: 7, kind: input, shape index: {}]   ;;  %s8715_s8 = inlined_call_operand.vmem [shape: f32[1,32], index: 8, kind: input, shape index: {}]   ;;  %s8716_s9 = inlined_call_operand.<no memory space> [shape: f32[1,1], index: 9, kind: input, shape index: {}]   ;;  %s8717_s10 = inlined_call_operand.vmem [shape: f32[16,1], index: 10, kind: output, shape index: {}]  }
   0x1   :  { %v15_v0 = vstv %s8716_s9 }
   0x2   :  { %16 = vst [vmem:[#allocation4] sm:$0x1] %v15_v0 }
   0x3   :  { %17 = vsyncpa [#allocation6], 0  ;;  %s7564_s15 = smov [#allocation5]   ;;  %s7540_s19 = scalar_lea.hbm %s8713_s6, 1536 }
   0x4   :  { %s35_s16 = sshll.u32 %s7564_s15, 4  ;;  %p7541_p0 = scmp.ne.s32.totalorder %s8713_s6, %s7540_s19  ;;  %s36_s16 = int_to_ptr.vmem [resolvable:$true] %s35_s16 }
   0x5   :  { %p7544_p1 = scmp.lt.u32.totalorder %s7540_s19, %s8713_s6 }
   0x7   :  { %p7546_p2 = pnand %p7544_p1, %p7541_p0 }
   0x9   :  { %7549 = shalt.err (!%p7546_p2)
}
   0xa   :  { %s7550_s9 = scalar_lea.vmem %s36_s16, 1536  ;;  %p7555_p4 = scmp.lt.s32.totalorder %s36_s16, %s36_s16 }
   0xb   :  { %p7551_p3 = scmp.ne.s32.totalorder %s36_s16, %s7550_s9  ;;  %p7556_p5 = scmp.lt.s32.totalorder %s7550_s9, %s7550_s9 }
   0xd   :  { %p7557_p6 = por %p7556_p5, %p7555_p4 }
   0xf   :  { %p7558_p7 = pnand %p7557_p6, %p7551_p3 }
  0x11   :  { %7561 = shalt.err (!%p7558_p7)
}
  0x12   :  { %s7565_s24 = smov 128   ;;  %s7566_s25 = smov 8  }
  0x13   :  { %41 = dma.hbm_to_vmem [thread:$0]  %s8713_s6, 1536, %s36_s16, [#allocation6], %s7565_s24, %s7565_s24, %s7566_s25  }
  0x14   :  { %7562 = dma.done.wait [#allocation6], 1536  }
  0x15   :  { %7563 = vsyncadd [#allocation6], 4294965760  ;;  %v7567_v1 = vmov 0   ;;  %v5838_v2 = vld [vmem:[%s8707_s0 + $0x20] sm:$0xff]  ;;  %v5841_v4 = vld [vmem:[%s8707_s0 + $0x30] sm:$0xff]  ;;  %vm353_vm14 = vcmask 261120  }
  0x16   :  { %7137 = vset.pattern.permute.xlu1 %v7567_v1  ;;  %7136 = vset.pattern.permute.xlu0 %v7567_v1  ;;  %v53_v3 = vld [vmem:[%s8707_s0] sm:$0xff]  ;;  %v5835_v5 = vld [vmem:[%s8707_s0 + $0x10] sm:$0xff]  ;;  %v7568_v33 = vmov 683565275   ;;  %v7569_v35 = vmov 2475754826  }
  0x17   :  { %102 = vperm.xlu1 %7137, %v5838_v2   ;;  %58 = vperm.xlu0 %7136, %v53_v3   ;;  %v5834_v6 = vld [vmem:[%s8708_s1] ss:$0 sm:$0xff]  ;;  %v5837_v11 = vld [vmem:[%s8708_s1 + $0x1] ss:$0 sm:$0xff]  ;;  %v5840_v12 = vld [vmem:[%s8708_s1 + $0x2] ss:$0 sm:$0xff] }
  0x18   :  { %v51_v10 = vld [vmem:[%s8709_s2] sm:$0xff]  ;;  %v7570_v38 = vmov 2131351028   ;;  %v7571_v41 = vmov 2102212464   ;;  %vm7575_vm15 = vmmov 0  }
  0x19   :  { %v5843_v16 = vld [vmem:[%s8708_s1 + $0x3] ss:$0 sm:$0xff]  ;;  %v7572_v44 = vmov 920167782   ;;  %v7573_v47 = vmov 1326507024  }
  0x1a   :  { %s7577_s17 = smov 64   ;;  %s7578_s18 = smov 96  }
  0x1b   :  { %124 = vperm.xlu1 %7137, %v5841_v4   ;;  %80 = vperm.xlu0 %7136, %v5835_v5   ;;  %s7579_s19 = smov 32  }
  0x96   :  { %v103_v7 = vpop.permute.xlu1 %102  ;;  %v59_v8 = vpop.permute.xlu0 %58 }
  0x97   :  { %v70_v9 = vmul.f32 %v5834_v6, %v59_v8  ;;  %v114_v18 = vmul.f32 %v5840_v12, %v103_v7 }
  0x99   :  { %v72_v14 = vadd.f32 %v70_v9, %v51_v10 }
  0x9a   :  { %v81_v13 = vpop.permute.xlu0 %80  ;;  %v125_v17 = vpop.permute.xlu1 %124 }
  0x9b   :  { %v92_v15 = vmul.f32 %v5837_v11, %v81_v13  ;;  %v136_v20 = vmul.f32 %v5843_v16, %v125_v17 }
  0x9d   :  { %v94_v19 = vadd.f32 %v92_v15, %v72_v14 }
  0x9f   :  { %v116_v21 = vadd.f32 %v114_v18, %v94_v19 }
  0xa1   :  { %v7677_v22 = vadd.f32 %v136_v20, %v116_v21 }
  0xa3   :  { %v146_v23 = vand.u32 2139095040, %v7677_v22  ;;  %v143_v27 = vand.u32 2147483647, %v7677_v22  ;;  %vm145_vm7 = vcmp.lt.s32.totalorder %v7677_v22, 0  ;;  %vm235_vm13 = vweird.f32 %v7677_v22 }
  0xa5   :  { %v147_v24 = vshrl.u32 %v146_v23, 23  ;;  %v150_v30 = vand.u32 8388607, %v143_v27  ;;  %vm144_vm8 = vcmp.le.f32.partialorder %v143_v27, 0.7853982 }
  0xa7   :  { %v5844_v25 = vadd.s32 4294967169, %v147_v24  ;;  %v151_v49 = vor.u32 8388608, %v150_v30 }
  0xa9   :  { %v153_v26 = vadd.s32 1, %v5844_v25  ;;  %v191_v63 = vshll.u32 %v151_v49, 8  ;;  %v140_v49 = vlaneseq }
  0xab   :  { %vm154_vm0 = vcmp.gt.s32.totalorder %v153_v26, 0 }
  0xac   :  { %v155_v28 = vsel %vm154_vm0, %v153_v26, 0  ;;  %vm510_vm0 = vcmask 253952  }
  0xad   :  { %v157_v29 = vand.u32 31, %v155_v28  ;;  %v156_v32 = vshrl.u32 %v155_v28, 5 }
  0xaf   :  { %v158_v31 = vsub.s32 32, %v157_v29  ;;  %v160_v34 = vshll.u32 %v7568_v33, %v157_v29  ;;  %v163_v36 = vshll.u32 %v7569_v35, %v157_v29  ;;  %v166_v40 = vshll.u32 %v7570_v38, %v157_v29 }
  0xb0   :  { %v169_v43 = vshll.u32 %v7571_v41, %v157_v29  ;;  %v172_v46 = vshll.u32 %v7572_v44, %v157_v29  ;;  %vm175_vm1 = vcmp.lt.s32.totalorder %v156_v32, 1  ;;  %vm178_vm2 = vcmp.lt.s32.totalorder %v156_v32, 4 }
  0xb1   :  { %v161_v37 = vshrl.u32 %v7569_v35, %v158_v31  ;;  %v164_v39 = vshrl.u32 %v7570_v38, %v158_v31  ;;  %v167_v42 = vshrl.u32 %v7571_v41, %v158_v31  ;;  %v170_v45 = vshrl.u32 %v7572_v44, %v158_v31 }
  0xb2   :  { %v173_v48 = vshrl.u32 %v7573_v47, %v158_v31  ;;  %v159_v58 = vshrl.u32 %v7568_v33, %v158_v31  ;;  %vm177_vm3 = vcmp.lt.s32.totalorder %v156_v32, 3  ;;  %vm176_vm4 = vcmp.lt.s32.totalorder %v156_v32, 2 }
  0xb3   :  { %v162_v50 = vor.u32 %v161_v37, %v160_v34  ;;  %v165_v51 = vor.u32 %v164_v39, %v163_v36  ;;  %v168_v52 = vor.u32 %v167_v42, %v166_v40  ;;  %v171_v53 = vor.u32 %v170_v45, %v169_v43 }
  0xb4   :  { %v174_v54 = vor.u32 %v173_v48, %v172_v46 }
  0xb5   :  { %v180_v55 = vsel %vm178_vm2, %v168_v52, 2102212464  ;;  %v183_v56 = vsel %vm175_vm1, %v162_v50, %v165_v51  ;;  %v187_v57 = vsel %vm175_vm1, %v165_v51, %v168_v52  ;;  %v184_v59 = vsel %vm178_vm2, %v171_v53, 920167782 }
  0xb6   :  { %v188_v60 = vsel %vm178_vm2, %v174_v54, 1326507024  ;;  %v185_v61 = vsel %vm177_vm3, %v168_v52, %v184_v59  ;;  %v179_v0 = vsel %vm175_vm1, %v159_v58, %v162_v50  ;;  %v181_v1 = vsel %vm177_vm3, %v165_v51, %v180_v55 }
  0xb7   :  { %v189_v62 = vsel %vm177_vm3, %v171_v53, %v188_v60  ;;  %v186_v2 = vsel %vm176_vm4, %v183_v56, %v185_v61  ;;  %v182_v8 = vsel %vm176_vm4, %v179_v0, %v181_v1  ;;  %v7708_v52 = vand.u32 127, %v140_v49 }
  0xb8   :  { %v190_v3 = vsel %vm176_vm4, %v187_v57, %v189_v62  ;;  %v7697_v6 = vmul.u32.u64.low %v191_v63, %v186_v2  ;;  %v7698_v7 = vmul.u32.u64.high %v191_v63, %v186_v2, %v7697_v6  ;;  %v198_v10 = vmul.u32 %v191_v63, %v182_v8  ;;  %v404_v2 = vld [vmem:[%s8712_s5] sm:$0xff] }
  0xb9   :  { %v7694_v4 = vmul.u32.u64.low %v191_v63, %v190_v3  ;;  %v7695_v5 = vmul.u32.u64.high %v191_v63, %v190_v3, %v7694_v4  ;;  %vm142_vm11 = vcmp.eq.s32.totalorder %v7708_v52, 0  ;;  %v405_v3 = vld [vmem:[%s8712_s5 + $0x8] sm:$0xff]  ;;  %vm625_vm1 = vcmask 254977  }
  0xba   :  { %v201_v9 = vadd.s32 1, %v7698_v7  ;;  %v7723_v4 = vpack.c.bf16 %v405_v3, %v404_v2  ;;  %v5860_v2 = vld [vmem:[%s8712_s5 + $0x28] sm:$0xff] }
  0xbb   :  { %vm200_vm5 = vc.u32 %v7695_v5, %v7697_v6  ;;  %v199_v23 = vadd.s32 %v7697_v6, %v7695_v5  ;;  %v407_v5 = vld [vmem:[%s8712_s5 + $0x18] sm:$0xff]  ;;  %v7574_v6 = vmov 0.0|0.0  }
  0xbc   :  { %v202_v11 = vsel %vm200_vm5, %v201_v9, %v7698_v7  ;;  %6824 = vmatprep.subr.bf16.mxu0 %v7574_v6  ;;  %v7576_v7 = vmov 0.0   ;;  %6830 = vmatprep.subr.bf16.mxu1 %v7574_v6 }
  0xbd   :  { %v203_v12 = vadd.s32 %v202_v11, %v198_v10  ;;  %6304 = vmatprep.mubr.msk.f32.mxu0 %vm7575_vm15, %v7576_v7  ;;  %6826 = vmatpush3.bf16.msra.mxu0 %v7723_v4 }
  0xbe   :  { %6827 = vmatprep.subr.bf16.mxu0 %v7574_v6  ;;  %6315 = vmatprep.mubr.msk.f32.mxu1 %vm7575_vm15, %v7576_v7 }
  0xbf   :  { %v204_v13 = vadd.s32 536870912, %v203_v12 }
  0xc1   :  { %v205_v14 = vshrl.u32 %v204_v13, 30  ;;  %v5852_v13 = vld [vmem:[%s8710_s3] ss:$0 sm:$0xff] }
  0xc3   :  { %v206_v15 = vshll.u32 %v205_v14, 30  ;;  %v229_v39 = vsub.s32 4, %v205_v14 }
  0xc5   :  { %v207_v16 = vsub.s32 %v203_v12, %v206_v15  ;;  %v230_v43 = vsel %vm145_vm7, %v229_v39, %v205_v14  ;;  %v5853_v15 = vld [vmem:[%s8711_s4] ss:$0 sm:$0xff]  ;;  %v515_v39 = vld [vmem:[#allocation5 + $0x18] sm:$0xff] }
  0xc6   :  { %v232_v46 = vsel %vm144_vm8, 0, %v230_v43 }
  0xc7   :  { %v209_v17 = vsub.s32 0, %v207_v16  ;;  %v236_v48 = vadd.s32 3, %v232_v46 }
  0xc9   :  { %v5845_v18 = vmin.u32 %v209_v17, %v207_v16  ;;  %v237_v50 = vand.u32 3, %v236_v48 }
  0xcb   :  { %v211_v19 = vclz %v5845_v18  ;;  %vm242_vm9 = vcmp.eq.s32.totalorder %v237_v50, 2  ;;  %vm239_vm10 = vcmp.eq.s32.totalorder %v237_v50, 0  ;;  %vm238_vm12 = vcmp.lt.s32.totalorder %v237_v50, 2 }
  0xcd   :  { %v5846_v20 = vadd.s32 4294967294, %v211_v19  ;;  %v7759_v19 = vld [vmem:[%s8714_s7] ss:$0 sm:$0xff] }
  0xcf   :  { %vm5847_vm6 = vcmp.lt.s32.totalorder %v5846_v20, 0 }
  0xd0   :  { %v214_v21 = vsel %vm5847_vm6, 0, %v5846_v20 }
  0xd1   :  { %v215_v24 = vsub.s32 32, %v214_v21  ;;  %v219_v25 = vsub.s32 4294967266, %v214_v21  ;;  %v216_v26 = vshll.u32 %v207_v16, %v214_v21 }
  0xd3   :  { %v217_v28 = vshrl.u32 %v199_v23, %v215_v24  ;;  %v220_v29 = vadd.s32 127, %v219_v25 }
  0xd5   :  { %v218_v30 = vor.u32 %v217_v28, %v216_v26  ;;  %v221_v31 = vshll.u32 %v220_v29, 23 }
  0xd7   :  { %v222_v32 = vor.u32 4788187, %v221_v31  ;;  %v225_v36 = vcvt.s32.f32 %v218_v30 }
  0xd9   :  { %v223_v34 = vand.u32 2147483647, %v222_v32  ;;  %v512_v32 = vld [vmem:[#allocation5] sm:$0xff] }
  0xdb   :  { %v226_v37 = vmul.f32 %v225_v36, %v223_v34  ;;  %v513_v34 = vld [vmem:[#allocation5 + $0x8] sm:$0xff]  ;;  %v514_v36 = vld [vmem:[#allocation5 + $0x10] sm:$0xff] }
  0xdd   :  { %v227_v40 = vxor.u32 2147483648, %v226_v37 }
  0xdf   :  { %v228_v42 = vsel %vm145_vm7, %v227_v40, %v226_v37  ;;  %v7763_v37 = vpack.c.bf16 %v513_v34, %v512_v32  ;;  %v7766_v40 = vpack.c.bf16 %v515_v39, %v514_v36  ;;  %v741_v34 = vld [vmem:[#allocation5 + $0x38] sm:$0xff] }
  0xe0   :  { %v231_v45 = vsel %vm144_vm8, %v7677_v22, %v228_v42 }
  0xe1   :  { %7138 = vcosq.f32 %v231_v45  ;;  %6832 = vmatpush3.bf16.msra.mxu1 %v7763_v37 }
  0xe2   :  { %7140 = vsinq.f32 %v231_v45  ;;  %6833 = vmatprep.subr.bf16.mxu1 %v7574_v6 }
  0xe5   :  { %6835 = vmatpush3.bf16.msra.mxu1 %v7766_v40 }
  0xe6   :  { %6842 = vmatprep.subr.bf16.mxu1 %v7574_v6 }
  0xeb   :  { %v7139_v51 = vpop.eup %7138 }
  0xec   :  { %v7141_v53 = vpop.eup %7140  ;;  %v243_v54 = vxor.u32 2147483648, %v7139_v51 }
  0xed   :  { %v240_v55 = vxor.u32 2147483648, %v7141_v53 }
  0xee   :  { %v244_v56 = vsel %vm242_vm9, %v243_v54, %v7141_v53 }
  0xef   :  { %v241_v27 = vsel %vm239_vm10, %v7139_v51, %v240_v55 }
  0xf0   :  { %v245_v57 = vsel %vm238_vm12, %v241_v27, %v244_v56 }
  0xf1   :  { %v246_v58 = vsel %vm235_vm13, nan, %v245_v57 }
  0xf2   :  { %v351_v59 = vsel %vm142_vm11, %v7677_v22, %v246_v58  ;;  %v406_v22 = vld [vmem:[%s8712_s5 + $0x10] sm:$0xff] }
  0xf3   :  { %v354_v60 = vsel %vm353_vm14, %v351_v59, 0.0  ;;  %v7735_v8 = vpack.c.bf16 %v407_v5, %v406_v22  ;;  %v5861_v22 = vld [vmem:[%s8712_s5 + $0x30] sm:$0xff]  ;;  %v5862_v5 = vld [vmem:[%s8712_s5 + $0x38] sm:$0xff] }
  0xf4   :  { %355 = vadd.xlane.f32.xlu0 %v354_v60 }
  0xf5   :  { %6829 = vmatpush3.bf16.msra.mxu0 %v7735_v8 }
  0xf6   :  { %6836 = vmatprep.subr.bf16.mxu0 %v7574_v6 }
 0x181   :  { %v356_v61 = vpop.xlane.xlu0 %355 }
 0x182   :  { %v361_v62 = vmul.f32 0.03125, %v356_v61 }
 0x184   :  { %v363_v63 = vsub.f32 %v351_v59, %v361_v62 }
 0x186   :  { %v365_v0 = vmul.f32 %v363_v63, %v363_v63 }
 0x188   :  { %v367_v1 = vsel %vm353_vm14, %v365_v0, 0.0 }
 0x189   :  { %368 = vadd.xlane.f32.xlu1 %v367_v1  ;;  %v5859_v1 = vld [vmem:[%s8712_s5 + $0x20] sm:$0xff] }
 0x18a   :  { %v7787_v3 = vpack.c.bf16 %v5860_v2, %v5859_v1  ;;  %v5870_v1 = vld [vmem:[%s8712_s5 + $0x48] sm:$0xff] }
 0x216   :  { %v369_v9 = vpop.xlane.xlu1 %368 }
 0x217   :  { %v373_v10 = vmul.f32 0.03125, %v369_v9  ;;  %v7797_v9 = vpack.c.bf16 %v5862_v5, %v5861_v22  ;;  %v5871_v22 = vld [vmem:[%s8712_s5 + $0x50] sm:$0xff]  ;;  %v5872_v5 = vld [vmem:[%s8712_s5 + $0x58] sm:$0xff] }
 0x219   :  { %v375_v11 = vadd.f32 1e-05, %v373_v10 }
 0x21b   :  { %7142 = vrsqrt.f32 %v375_v11 }
 0x225   :  { %v7143_v12 = vpop.eup %7142 }
 0x226   :  { %v379_v14 = vmul.f32 %v7143_v12, %v363_v63 }
 0x228   :  { %v388_v16 = vmul.f32 %v5852_v13, %v379_v14  ;;  %v7809_v14 = vld [vmem:[%s8714_s7 + $0x1] ss:$0 sm:$0xff] }
 0x22a   :  { %v397_v17 = vadd.f32 %v5853_v15, %v388_v16 }
 0x22c   :  { %399 = vst.msk [vmem:[#allocation2] sm:$0xff] %vm353_vm14, %v397_v17 }
 0x233   :  { %v7750_v18 = vld [vmem:[#allocation2] sm:$0x3] }
 0x234   :  { %6305 = vmatmul.mubr.msk.f32.vlgmr.msra.gmra.mrb[0].mxu0 %vm353_vm14, %v7750_v18 }
 0x235   :  { %6326 = vmatprep.mubr.msk.f32.mxu0 %vm7575_vm15, %v7576_v7  ;;  %6838 = vmatpush3.bf16.msra.mxu0 %v7787_v3 }
 0x236   :  { %6839 = vmatprep.subr.bf16.mxu0 %v7574_v6 }
 0x239   :  { %6841 = vmatpush3.bf16.msra.mxu0 %v7797_v9 }
 0x23a   :  { %6848 = vmatprep.subr.bf16.mxu0 %v7574_v6 }
 0x307   :  { %v484_v20 = vpop.f32.mrb[0].mxu0 }
 0x308   :  { %v485_v21 = vadd.f32 %v7759_v19, %v484_v20  ;;  %v6306_v23 = vpop.f32.mrb[1].mxu0 }
 0x30a   :  { %7144 = vtanh.f32 %v485_v21  ;;  %v5856_v25 = vmul.f32 -1.442695, %v485_v21 }
 0x30c   :  { %7146 = vpow2.f32 %v5856_v25 }
 0x314   :  { %v7145_v24 = vpop.eup %7144 }
 0x315   :  { %496 = vrot.lane.b32.xlu0 %v7145_v24, %s7577_s17 }
 0x316   :  { %v7147_v26 = vpop.eup %7146 }
 0x317   :  { %v491_v28 = vadd.f32 1.0, %v7147_v26 }
 0x319   :  { %7148 = vrcp.f32 %v491_v28 }
 0x323   :  { %v7149_v29 = vpop.eup %7148 }
 0x387   :  { %v497_v30 = vpop.permute.xlu0 %496 }
 0x388   :  { %v499_v31 = vmul.f32 %v7149_v29, %v497_v30  ;;  %v739_v30 = vld [vmem:[#allocation5 + $0x28] sm:$0xff] }
 0x38a   :  { %7150 = vtanh.f32 %v499_v31  ;;  %v600_v46 = vrot.slane %v499_v31, 7  ;;  %v740_v31 = vld [vmem:[#allocation5 + $0x30] sm:$0xff] }
 0x38b   :  { %v7816_v36 = vpack.c.bf16 %v741_v34, %v740_v31  ;;  %v963_v31 = vld [vmem:[#allocation5 + $0x40] sm:$0xff]  ;;  %v964_v34 = vld [vmem:[#allocation5 + $0x48] sm:$0xff] }
 0x394   :  { %v7151_v42 = vpop.eup %7150 }
 0x395   :  { %502 = vrot.lane.b32.xlu1 %v7151_v42, %s7578_s18 }
 0x407   :  { %v503_v43 = vpop.permute.xlu1 %502 }
 0x408   :  { %v505_v45 = vmul.f32 %v7149_v29, %v503_v43  ;;  %v738_v29 = vld [vmem:[#allocation5 + $0x20] sm:$0xff] }
 0x409   :  { %v7813_v32 = vpack.c.bf16 %v739_v30, %v738_v29 }
 0x40a   :  { %507 = vrot.lane.b32.xlu0 %v505_v45, %s7579_s19 }
 0x40e   :  { %601 = vrot.lane.b32.xlu0 %v600_v46, %s7579_s19 }
 0x47c   :  { %v508_v48 = vpop.permute.xlu0 %507 }
 0x47d   :  { %511 = vst.msk [vmem:[#allocation3] sm:$0x1] %vm510_vm0, %v508_v48  ;;  %6316 = vmatmul.mubr.msk.f32.vlgmr.msra.gmra.mrb[0].mxu1 %vm353_vm14, %v508_v48 }
 0x47e   :  { %6337 = vmatprep.mubr.msk.f32.mxu1 %vm7575_vm15, %v7576_v7  ;;  %6844 = vmatpush3.bf16.msra.mxu1 %v7813_v32 }
 0x47f   :  { %6845 = vmatprep.subr.bf16.mxu1 %v7574_v6 }
 0x480   :  { %v602_v60 = vpop.permute.xlu0 %601 }
 0x482   :  { %6847 = vmatpush3.bf16.msra.mxu1 %v7816_v36 }
 0x483   :  { %6854 = vmatprep.subr.bf16.mxu1 %v7574_v6 }
 0x550   :  { %v584_v49 = vpop.f32.mrb[0].mxu1 }
 0x551   :  { %v589_v50 = vrot.slane %v584_v49, 7  ;;  %v6317_v51 = vpop.f32.mrb[1].mxu1 }
 0x553   :  { %v591_v53 = vadd.f32 %v589_v50, %v485_v21 }
 0x555   :  { %7152 = vtanh.f32 %v591_v53  ;;  %v5858_v55 = vmul.f32 -1.442695, %v591_v53 }
 0x557   :  { %7154 = vpow2.f32 %v5858_v55 }
 0x55f   :  { %v7153_v54 = vpop.eup %7152 }
 0x560   :  { %606 = vrot.lane.b32.xlu1 %v7153_v54, %s7577_s17 }
 0x561   :  { %v7155_v56 = vpop.eup %7154 }
 0x562   :  { %v595_v27 = vadd.f32 1.0, %v7155_v56 }
 0x564   :  { %7156 = vrcp.f32 %v595_v27 }
 0x56e   :  { %v7157_v57 = vpop.eup %7156 }
 0x56f   :  { %v604_v61 = vmul.f32 %v7157_v57, %v602_v60 }
 0x5d2   :  { %v607_v58 = vpop.permute.xlu1 %606 }
 0x5d3   :  { %v609_v59 = vmul.f32 %v7157_v57, %v607_v58 }
 0x5d5   :  { %611 = vrot.lane.b32.xlu1 %v609_v59, %s7579_s19 }
 0x647   :  { %v612_v62 = vpop.permute.xlu1 %611 }
 0x648   :  { %v614_v63 = vadd.f32 %v612_v62, %v604_v61 }
 0x64a   :  { %7158 = vtanh.f32 %v614_v63 }
 0x654   :  { %v7159_v0 = vpop.eup %7158 }
 0x655   :  { %617 = vrot.lane.b32.xlu0 %v7159_v0, %s7577_s17  ;;  %v5869_v0 = vld [vmem:[%s8712_s5 + $0x40] sm:$0xff] }
 0x656   :  { %v7837_v2 = vpack.c.bf16 %v5870_v1, %v5869_v0 }
 0x6c7   :  { %v618_v10 = vpop.permute.xlu0 %617 }
 0x6c8   :  { %v620_v11 = vmul.f32 %v7157_v57, %v618_v10  ;;  %v7847_v10 = vpack.c.bf16 %v5872_v5, %v5871_v22 }
 0x6ca   :  { %622 = vrot.lane.b32.xlu1 %v620_v11, %s7579_s19 }
 0x73c   :  { %v623_v12 = vpop.permute.xlu1 %622 }
 0x73d   :  { %626 = vst.msk [vmem:[#allocation3] sm:$0x2] %vm625_vm1, %v623_v12 }
 0x744   :  { %v627_v13 = vld [vmem:[#allocation3] sm:$0x3] }
 0x745   :  { %6327 = vmatmul.mubr.msk.f32.vlgmr.msra.gmra.mrb[2].mxu0 %vm353_vm14, %v627_v13 }
 0x746   :  { %6348 = vmatprep.mubr.msk.f32.mxu0 %vm7575_vm15, %v7576_v7  ;;  %6850 = vmatpush3.bf16.msra.mxu0 %v7837_v2 }
 0x747   :  { %6851 = vmatprep.subr.bf16.mxu0 %v7574_v6 }
 0x74a   :  { %6853 = vmatpush3.bf16.msra.mxu0 %v7847_v10 }
 0x74b   :  { %6860 = vmatprep.subr.bf16.mxu0 %v7574_v6 }
 0x818   :  { %v710_v15 = vpop.f32.mrb[2].mxu0 }
 0x819   :  { %v711_v16 = vadd.f32 %v7809_v14, %v710_v15  ;;  %v6328_v17 = vpop.f32.mrb[3].mxu0 }
 0x81b   :  { %7160 = vtanh.f32 %v711_v16  ;;  %v5866_v21 = vmul.f32 -1.442695, %v711_v16 }
 0x81d   :  { %7162 = vpow2.f32 %v5866_v21 }
 0x825   :  { %v7161_v20 = vpop.eup %7160 }
 0x826   :  { %722 = vrot.lane.b32.xlu0 %v7161_v20, %s7577_s17 }
 0x827   :  { %v7163_v23 = vpop.eup %7162 }
 0x828   :  { %v717_v24 = vadd.f32 1.0, %v7163_v23 }
 0x82a   :  { %7164 = vrcp.f32 %v717_v24 }
 0x834   :  { %v7165_v25 = vpop.eup %7164 }
 0x898   :  { %v723_v26 = vpop.permute.xlu0 %722 }
 0x899   :  { %v725_v28 = vmul.f32 %v7165_v25, %v723_v26 }
 0x89b   :  { %7166 = vtanh.f32 %v725_v28  ;;  %v826_v45 = vrot.slane %v725_v28, 7 }
 0x8a5   :  { %v7167_v39 = vpop.eup %7166 }
 0x8a6   :  { %728 = vrot.lane.b32.xlu1 %v7167_v39, %s7578_s18  ;;  %v965_v39 = vld [vmem:[#allocation5 + $0x50] sm:$0xff] }
 0x918   :  { %v729_v42 = vpop.permute.xlu1 %728 }
 0x919   :  { %v731_v43 = vmul.f32 %v7165_v25, %v729_v42  ;;  %v7867_v42 = vpack.c.bf16 %v964_v34, %v963_v31 }
 0x91b   :  { %733 = vrot.lane.b32.xlu0 %v731_v43, %s7579_s19  ;;  %v966_v43 = vld [vmem:[#allocation5 + $0x58] sm:$0xff] }
 0x91f   :  { %827 = vrot.lane.b32.xlu0 %v826_v45, %s7579_s19  ;;  %v7870_v45 = vpack.c.bf16 %v966_v43, %v965_v39 }
 0x98d   :  { %v734_v46 = vpop.permute.xlu0 %733 }
 0x98e   :  { %736 = vst.msk [vmem:[#allocation3] sm:$0x1] %vm510_vm0, %v734_v46  ;;  %6338 = vmatmul.mubr.msk.f32.vlgmr.msra.gmra.mrb[2].mxu1 %vm353_vm14, %v734_v46 }
 0x98f   :  { %6359 = vmatprep.mubr.msk.f32.mxu1 %vm7575_vm15, %v7576_v7  ;;  %6856 = vmatpush3.bf16.msra.mxu1 %v7867_v42 }
 0x990   :  { %6857 = vmatprep.subr.bf16.mxu1 %v7574_v6 }
 0x991   :  { %v828_v59 = vpop.permute.xlu0 %827 }
 0x993   :  { %6859 = vmatpush3.bf16.msra.mxu1 %v7870_v45 }
 0x994   :  { %6866 = vmatprep.subr.bf16.mxu1 %v7574_v6 }
 0xa61   :  { %v810_v48 = vpop.f32.mrb[2].mxu1 }
 0xa62   :  { %v815_v49 = vrot.slane %v810_v48, 7  ;;  %v6339_v50 = vpop.f32.mrb[3].mxu1 }
 0xa64   :  { %v817_v51 = vadd.f32 %v815_v49, %v711_v16  ;;  %v7863_v16 = vld [vmem:[%s8714_s7 + $0x2] ss:$0 sm:$0xff] }
 0xa66   :  { %7168 = vtanh.f32 %v817_v51  ;;  %v5868_v54 = vmul.f32 -1.442695, %v817_v51 }
 0xa68   :  { %7170 = vpow2.f32 %v5868_v54 }
 0xa70   :  { %v7169_v53 = vpop.eup %7168 }
 0xa71   :  { %832 = vrot.lane.b32.xlu1 %v7169_v53, %s7577_s17 }
 0xa72   :  { %v7171_v55 = vpop.eup %7170 }
 0xa73   :  { %v821_v56 = vadd.f32 1.0, %v7171_v55 }
 0xa75   :  { %7172 = vrcp.f32 %v821_v56 }
 0xa7f   :  { %v7173_v27 = vpop.eup %7172 }
 0xa80   :  { %v830_v60 = vmul.f32 %v7173_v27, %v828_v59 }
 0xae3   :  { %v833_v57 = vpop.permute.xlu1 %832 }
 0xae4   :  { %v835_v58 = vmul.f32 %v7173_v27, %v833_v57 }
 0xae6   :  { %837 = vrot.lane.b32.xlu1 %v835_v58, %s7579_s19 }
 0xb58   :  { %v838_v61 = vpop.permute.xlu1 %837 }
 0xb59   :  { %v840_v62 = vadd.f32 %v838_v61, %v830_v60 }
 0xb5b   :  { %7174 = vtanh.f32 %v840_v62 }
 0xb65   :  { %v7175_v63 = vpop.eup %7174 }
 0xb66   :  { %843 = vrot.lane.b32.xlu0 %v7175_v63, %s7577_s17 }
 0xbd8   :  { %v844_v11 = vpop.permute.xlu0 %843 }
 0xbd9   :  { %v846_v12 = vmul.f32 %v7173_v27, %v844_v11 }
 0xbdb   :  { %848 = vrot.lane.b32.xlu1 %v846_v12, %s7579_s19 }
 0xc4d   :  { %v849_v13 = vpop.permute.xlu1 %848 }
 0xc4e   :  { %851 = vst.msk [vmem:[#allocation3] sm:$0x2] %vm625_vm1, %v849_v13 }
 0xc55   :  { %v852_v15 = vld [vmem:[#allocation3] sm:$0x3] }
 0xc56   :  { %6349 = vmatmul.mubr.msk.f32.vlgmr.msra.gmra.mrb[4].mxu0 %vm353_vm14, %v852_v15 }
 0xc57   :  { %6862 = vmatpush3.bf16.msra.mxu0 %v7723_v4  ;;  %6370 = vmatprep.mubr.msk.f32.mxu0 %vm7575_vm15, %v7576_v7 }
 0xc58   :  { %6863 = vmatprep.subr.bf16.mxu0 %v7574_v6 }
 0xc5b   :  { %6865 = vmatpush3.bf16.msra.mxu0 %v7735_v8 }
 0xc5c   :  { %6872 = vmatprep.subr.bf16.mxu0 %v7574_v6 }
 0xd29   :  { %v935_v17 = vpop.f32.mrb[4].mxu0 }
 0xd2a   :  { %v936_v20 = vadd.f32 %v7863_v16, %v935_v17  ;;  %v6350_v21 = vpop.f32.mrb[5].mxu0 }
 0xd2c   :  { %7176 = vtanh.f32 %v936_v20  ;;  %v5876_v24 = vmul.f32 -1.442695, %v936_v20 }
 0xd2e   :  { %7178 = vpow2.f32 %v5876_v24 }
 0xd36   :  { %v7177_v23 = vpop.eup %7176 }
 0xd37   :  { %947 = vrot.lane.b32.xlu0 %v7177_v23, %s7577_s17 }
 0xd38   :  { %v7179_v25 = vpop.eup %7178 }
 0xd39   :  { %v942_v26 = vadd.f32 1.0, %v7179_v25 }
 0xd3b   :  { %7180 = vrcp.f32 %v942_v26 }
 0xd45   :  { %v7181_v28 = vpop.eup %7180 }
 0xda9   :  { %v948_v29 = vpop.permute.xlu0 %947 }
 0xdaa   :  { %v950_v30 = vmul.f32 %v7181_v28, %v948_v29 }
 0xdac   :  { %7182 = vtanh.f32 %v950_v30  ;;  %v1051_v50 = vrot.slane %v950_v30, 7 }
 0xdb6   :  { %v7183_v46 = vpop.eup %7182 }
 0xdb7   :  { %953 = vrot.lane.b32.xlu1 %v7183_v46, %s7578_s18 }
 0xe29   :  { %v954_v48 = vpop.permute.xlu1 %953 }
 0xe2a   :  { %v956_v49 = vmul.f32 %v7181_v28, %v954_v48 }
 0xe2c   :  { %958 = vrot.lane.b32.xlu0 %v956_v49, %s7579_s19 }
 0xe30   :  { %1052 = vrot.lane.b32.xlu0 %v1051_v50, %s7579_s19 }
 0xe9e   :  { %v959_v51 = vpop.permute.xlu0 %958 }
 0xe9f   :  { %961 = vst.msk [vmem:[#allocation3] sm:$0x1] %vm510_vm0, %v959_v51  ;;  %6360 = vmatmul.mubr.msk.f32.vlgmr.msra.gmra.mrb[4].mxu1 %vm353_vm14, %v959_v51 }
 0xea0   :  { %6868 = vmatpush3.bf16.msra.mxu1 %v7763_v37  ;;  %6381 = vmatprep.mubr.msk.f32.mxu1 %vm7575_vm15, %v7576_v7 }
 0xea1   :  { %6869 = vmatprep.subr.bf16.mxu1 %v7574_v6 }
 0xea2   :  { %v1053_v63 = vpop.permute.xlu0 %1052 }
 0xea4   :  { %6871 = vmatpush3.bf16.msra.mxu1 %v7766_v40 }
 0xea5   :  { %6878 = vmatprep.subr.bf16.mxu1 %v7574_v6 }
 0xf72   :  { %v1035_v53 = vpop.f32.mrb[4].mxu1 }
 0xf73   :  { %v1040_v54 = vrot.slane %v1035_v53, 7  ;;  %v6361_v55 = vpop.f32.mrb[5].mxu1 }
 0xf75   :  { %v1042_v56 = vadd.f32 %v1040_v54, %v936_v20 }
 0xf77   :  { %7184 = vtanh.f32 %v1042_v56  ;;  %v5878_v57 = vmul.f32 -1.442695, %v1042_v56 }
 0xf79   :  { %7186 = vpow2.f32 %v5878_v57 }
 0xf81   :  { %v7185_v27 = vpop.eup %7184 }
 0xf82   :  { %1057 = vrot.lane.b32.xlu1 %v7185_v27, %s7577_s17 }
 0xf83   :  { %v7187_v58 = vpop.eup %7186 }
 0xf84   :  { %v1046_v59 = vadd.f32 1.0, %v7187_v58 }
 0xf86   :  { %7188 = vrcp.f32 %v1046_v59 }
 0xf90   :  { %v7189_v60 = vpop.eup %7188 }
 0xf91   :  { %v1055_v0 = vmul.f32 %v7189_v60, %v1053_v63 }
 0xff4   :  { %v1058_v61 = vpop.permute.xlu1 %1057 }
 0xff5   :  { %v1060_v62 = vmul.f32 %v7189_v60, %v1058_v61 }
 0xff7   :  { %1062 = vrot.lane.b32.xlu1 %v1060_v62, %s7579_s19 }
0x1069   :  { %v1063_v1 = vpop.permute.xlu1 %1062 }
0x106a   :  { %v1065_v22 = vadd.f32 %v1063_v1, %v1055_v0 }
0x106c   :  { %7190 = vtanh.f32 %v1065_v22 }
0x1076   :  { %v7191_v5 = vpop.eup %7190 }
0x1077   :  { %1068 = vrot.lane.b32.xlu0 %v7191_v5, %s7577_s17 }
0x10e9   :  { %v1069_v11 = vpop.permute.xlu0 %1068 }
0x10ea   :  { %v1071_v12 = vmul.f32 %v7189_v60, %v1069_v11 }
0x10ec   :  { %1073 = vrot.lane.b32.xlu1 %v1071_v12, %s7579_s19 }
0x115e   :  { %v1074_v13 = vpop.permute.xlu1 %1073 }
0x115f   :  { %1076 = vst.msk [vmem:[#allocation3] sm:$0x2] %vm625_vm1, %v1074_v13 }
0x1166   :  { %v7891_v15 = vld [vmem:[#allocation3] sm:$0x3] }
0x1167   :  { %v1098_v17 = vsub.f32 %v7750_v18, %v7891_v15 }
0x1169   :  { %v1099_v20 = vmul.f32 0.5, %v1098_v17 }
0x116b   :  { %v1100_v21 = vadd.f32 %v1099_v20, %v7891_v15 }
0x116d   :  { %6371 = vmatmul.mubr.msk.f32.vlgmr.msra.gmra.mrb[6].mxu0 %vm353_vm14, %v1100_v21 }
0x116e   :  { %6874 = vmatpush3.bf16.msra.mxu0 %v7787_v3  ;;  %6392 = vmatprep.mubr.msk.f32.mxu0 %vm7575_vm15, %v7576_v7 }
0x116f   :  { %6875 = vmatprep.subr.bf16.mxu0 %v7574_v6 }
0x1172   :  { %6877 = vmatpush3.bf16.msra.mxu0 %v7797_v9 }
0x1173   :  { %6884 = vmatprep.subr.bf16.mxu0 %v7574_v6 }
0x1240   :  { %v1182_v23 = vpop.f32.mrb[6].mxu0 }
0x1241   :  { %v1183_v24 = vadd.f32 %v7759_v19, %v1182_v23  ;;  %v6372_v18 = vpop.f32.mrb[7].mxu0 }
0x1243   :  { %7192 = vtanh.f32 %v1183_v24  ;;  %v5883_v26 = vmul.f32 -1.442695, %v1183_v24 }
0x1245   :  { %7194 = vpow2.f32 %v5883_v26 }
0x124d   :  { %v7193_v25 = vpop.eup %7192 }
0x124e   :  { %1194 = vrot.lane.b32.xlu0 %v7193_v25, %s7577_s17 }
0x124f   :  { %v7195_v28 = vpop.eup %7194 }
0x1250   :  { %v1189_v29 = vadd.f32 1.0, %v7195_v28 }
0x1252   :  { %7196 = vrcp.f32 %v1189_v29 }
0x125c   :  { %v7197_v30 = vpop.eup %7196 }
0x12c0   :  { %v1195_v31 = vpop.permute.xlu0 %1194 }
0x12c1   :  { %v1197_v34 = vmul.f32 %v7197_v30, %v1195_v31 }
0x12c3   :  { %7198 = vtanh.f32 %v1197_v34  ;;  %v1297_v48 = vrot.slane %v1197_v34, 7 }
0x12cd   :  { %v7199_v39 = vpop.eup %7198 }
0x12ce   :  { %1200 = vrot.lane.b32.xlu1 %v7199_v39, %s7578_s18 }
0x1340   :  { %v1201_v43 = vpop.permute.xlu1 %1200 }
0x1341   :  { %v1203_v46 = vmul.f32 %v7197_v30, %v1201_v43 }
0x1343   :  { %1205 = vrot.lane.b32.xlu0 %v1203_v46, %s7579_s19 }
0x1347   :  { %1298 = vrot.lane.b32.xlu0 %v1297_v48, %s7579_s19 }
0x13b5   :  { %v1206_v49 = vpop.permute.xlu0 %1205 }
0x13b6   :  { %1208 = vst.msk [vmem:[#allocation3] sm:$0x1] %vm510_vm0, %v1206_v49  ;;  %6382 = vmatmul.mubr.msk.f32.vlgmr.msra.gmra.mrb[6].mxu1 %vm353_vm14, %v1206_v49 }
0x13b7   :  { %6880 = vmatpush3.bf16.msra.mxu1 %v7813_v32  ;;  %6403 = vmatprep.mubr.msk.f32.mxu1 %vm7575_vm15, %v7576_v7 }
0x13b8   :  { %6881 = vmatprep.subr.bf16.mxu1 %v7574_v6 }
0x13b9   :  { %v1299_v61 = vpop.permute.xlu0 %1298 }
0x13bb   :  { %6883 = vmatpush3.bf16.msra.mxu1 %v7816_v36 }
0x13bc   :  { %6890 = vmatprep.subr.bf16.mxu1 %v7574_v6 }
0x1489   :  { %v1281_v50 = vpop.f32.mrb[6].mxu1 }
0x148a   :  { %v1286_v51 = vrot.slane %v1281_v50, 7  ;;  %v6383_v53 = vpop.f32.mrb[7].mxu1 }
0x148c   :  { %v1288_v54 = vadd.f32 %v1286_v51, %v1183_v24 }
0x148e   :  { %7200 = vtanh.f32 %v1288_v54  ;;  %v5885_v56 = vmul.f32 -1.442695, %v1288_v54 }
0x1490   :  { %7202 = vpow2.f32 %v5885_v56 }
0x1498   :  { %v7201_v55 = vpop.eup %7200 }
0x1499   :  { %1303 = vrot.lane.b32.xlu1 %v7201_v55, %s7577_s17 }
0x149a   :  { %v7203_v27 = vpop.eup %7202 }
0x149b   :  { %v1292_v57 = vadd.f32 1.0, %v7203_v27 }
0x149d   :  { %7204 = vrcp.f32 %v1292_v57 }
0x14a7   :  { %v7205_v58 = vpop.eup %7204 }
0x14a8   :  { %v1301_v62 = vmul.f32 %v7205_v58, %v1299_v61 }
0x150b   :  { %v1304_v59 = vpop.permute.xlu1 %1303 }
0x150c   :  { %v1306_v60 = vmul.f32 %v7205_v58, %v1304_v59 }
0x150e   :  { %1308 = vrot.lane.b32.xlu1 %v1306_v60, %s7579_s19 }
0x1580   :  { %v1309_v63 = vpop.permute.xlu1 %1308 }
0x1581   :  { %v1311_v0 = vadd.f32 %v1309_v63, %v1301_v62 }
0x1583   :  { %7206 = vtanh.f32 %v1311_v0 }
0x158d   :  { %v7207_v1 = vpop.eup %7206 }
0x158e   :  { %1314 = vrot.lane.b32.xlu0 %v7207_v1, %s7577_s17 }
0x1600   :  { %v1315_v22 = vpop.permute.xlu0 %1314 }
0x1601   :  { %v1317_v5 = vmul.f32 %v7205_v58, %v1315_v22 }
0x1603   :  { %1319 = vrot.lane.b32.xlu1 %v1317_v5, %s7579_s19 }
0x1675   :  { %v1320_v11 = vpop.permute.xlu1 %1319 }
0x1676   :  { %1322 = vst.msk [vmem:[#allocation3] sm:$0x2] %vm625_vm1, %v1320_v11 }
0x167d   :  { %v1323_v12 = vld [vmem:[#allocation3] sm:$0x3] }
0x167e   :  { %6393 = vmatmul.mubr.msk.f32.vlgmr.msra.gmra.mrb[8].mxu0 %vm353_vm14, %v1323_v12 }
0x167f   :  { %6886 = vmatpush3.bf16.msra.mxu0 %v7837_v2  ;;  %6414 = vmatprep.mubr.msk.f32.mxu0 %vm7575_vm15, %v7576_v7 }
0x1680   :  { %6887 = vmatprep.subr.bf16.mxu0 %v7574_v6 }
0x1683   :  { %6889 = vmatpush3.bf16.msra.mxu0 %v7847_v10 }
0x1684   :  { %6896 = vmatprep.subr.bf16.mxu0 %v7574_v6 }
0x1751   :  { %v1404_v13 = vpop.f32.mrb[8].mxu0 }
0x1752   :  { %v1405_v17 = vadd.f32 %v7809_v14, %v1404_v13  ;;  %v6394_v20 = vpop.f32.mrb[9].mxu0 }
0x1754   :  { %7208 = vtanh.f32 %v1405_v17  ;;  %v5893_v23 = vmul.f32 -1.442695, %v1405_v17 }
0x1756   :  { %7210 = vpow2.f32 %v5893_v23 }
0x175e   :  { %v7209_v21 = vpop.eup %7208 }
0x175f   :  { %1416 = vrot.lane.b32.xlu0 %v7209_v21, %s7577_s17 }
0x1760   :  { %v7211_v24 = vpop.eup %7210 }
0x1761   :  { %v1411_v18 = vadd.f32 1.0, %v7211_v24 }
0x1763   :  { %7212 = vrcp.f32 %v1411_v18 }
0x176d   :  { %v7213_v25 = vpop.eup %7212 }
0x17d1   :  { %v1417_v26 = vpop.permute.xlu0 %1416 }
0x17d2   :  { %v1419_v28 = vmul.f32 %v7213_v25, %v1417_v26 }
0x17d4   :  { %7214 = vtanh.f32 %v1419_v28  ;;  %v1519_v34 = vrot.slane %v1419_v28, 7 }
0x17de   :  { %v7215_v29 = vpop.eup %7214 }
0x17df   :  { %1422 = vrot.lane.b32.xlu1 %v7215_v29, %s7578_s18 }
0x1851   :  { %v1423_v30 = vpop.permute.xlu1 %1422 }
0x1852   :  { %v1425_v31 = vmul.f32 %v7213_v25, %v1423_v30 }
0x1854   :  { %1427 = vrot.lane.b32.xlu0 %v1425_v31, %s7579_s19 }
0x1858   :  { %1520 = vrot.lane.b32.xlu0 %v1519_v34, %s7579_s19 }
0x18c6   :  { %v1428_v39 = vpop.permute.xlu0 %1427 }
0x18c7   :  { %1430 = vst.msk [vmem:[#allocation3] sm:$0x1] %vm510_vm0, %v1428_v39  ;;  %6404 = vmatmul.mubr.msk.f32.vlgmr.msra.gmra.mrb[8].mxu1 %vm353_vm14, %v1428_v39 }
0x18c8   :  { %6892 = vmatpush3.bf16.msra.mxu1 %v7867_v42  ;;  %6425 = vmatprep.mubr.msk.f32.mxu1 %vm7575_vm15, %v7576_v7 }
0x18c9   :  { %6893 = vmatprep.subr.bf16.mxu1 %v7574_v6 }
0x18ca   :  { %v1521_v57 = vpop.permute.xlu0 %1520 }
0x18cc   :  { %6895 = vmatpush3.bf16.msra.mxu1 %v7870_v45 }
0x18cd   :  { %6902 = vmatprep.subr.bf16.mxu1 %v7574_v6 }
0x199a   :  { %v1503_v43 = vpop.f32.mrb[8].mxu1 }
0x199b   :  { %v1508_v46 = vrot.slane %v1503_v43, 7  ;;  %v6405_v48 = vpop.f32.mrb[9].mxu1 }
0x199d   :  { %v1510_v49 = vadd.f32 %v1508_v46, %v1405_v17 }
0x199f   :  { %7216 = vtanh.f32 %v1510_v49  ;;  %v5895_v51 = vmul.f32 -1.442695, %v1510_v49 }
0x19a1   :  { %7218 = vpow2.f32 %v5895_v51 }
0x19a9   :  { %v7217_v50 = vpop.eup %7216 }
0x19aa   :  { %1525 = vrot.lane.b32.xlu1 %v7217_v50, %s7577_s17 }
0x19ab   :  { %v7219_v53 = vpop.eup %7218 }
0x19ac   :  { %v1514_v54 = vadd.f32 1.0, %v7219_v53 }
0x19ae   :  { %7220 = vrcp.f32 %v1514_v54 }
0x19b8   :  { %v7221_v55 = vpop.eup %7220 }
0x19b9   :  { %v1523_v58 = vmul.f32 %v7221_v55, %v1521_v57 }
0x1a1c   :  { %v1526_v56 = vpop.permute.xlu1 %1525 }
0x1a1d   :  { %v1528_v27 = vmul.f32 %v7221_v55, %v1526_v56 }
0x1a1f   :  { %1530 = vrot.lane.b32.xlu1 %v1528_v27, %s7579_s19 }
0x1a91   :  { %v1531_v59 = vpop.permute.xlu1 %1530 }
0x1a92   :  { %v1533_v60 = vadd.f32 %v1531_v59, %v1523_v58  ;;  %v1101_v58 = vld [vmem:[#allocation2 + $0x2] sm:$0x3] }
0x1a94   :  { %7222 = vtanh.f32 %v1533_v60 }
0x1a9e   :  { %v7223_v61 = vpop.eup %7222 }
0x1a9f   :  { %1536 = vrot.lane.b32.xlu0 %v7223_v61, %s7577_s17 }
0x1b11   :  { %v1537_v62 = vpop.permute.xlu0 %1536 }
0x1b12   :  { %v1539_v63 = vmul.f32 %v7221_v55, %v1537_v62 }
0x1b14   :  { %1541 = vrot.lane.b32.xlu1 %v1539_v63, %s7579_s19 }
0x1b86   :  { %v1542_v0 = vpop.permute.xlu1 %1541 }
0x1b87   :  { %1544 = vst.msk [vmem:[#allocation3] sm:$0x2] %vm625_vm1, %v1542_v0 }
0x1b8e   :  { %v1545_v1 = vld [vmem:[#allocation3] sm:$0x3] }
0x1b8f   :  { %6415 = vmatmul.mubr.msk.f32.vlgmr.msra.gmra.mrb[10].mxu0 %vm353_vm14, %v1545_v1 }
0x1b90   :  { %6898 = vmatpush3.bf16.msra.mxu0 %v7723_v4  ;;  %6436 = vmatprep.mubr.msk.f32.mxu0 %vm7575_vm15, %v7576_v7 }
0x1b91   :  { %6899 = vmatprep.subr.bf16.mxu0 %v7574_v6 }
0x1b94   :  { %6901 = vmatpush3.bf16.msra.mxu0 %v7735_v8 }
0x1b95   :  { %6908 = vmatprep.subr.bf16.mxu0 %v7574_v6 }
0x1c62   :  { %v1626_v22 = vpop.f32.mrb[10].mxu0 }
0x1c63   :  { %v1627_v5 = vadd.f32 %v7863_v16, %v1626_v22  ;;  %v6416_v11 = vpop.f32.mrb[11].mxu0 }
0x1c65   :  { %7224 = vtanh.f32 %v1627_v5  ;;  %v5903_v13 = vmul.f32 -1.442695, %v1627_v5 }
0x1c67   :  { %7226 = vpow2.f32 %v5903_v13 }
0x1c6f   :  { %v7225_v12 = vpop.eup %7224 }
0x1c70   :  { %1638 = vrot.lane.b32.xlu0 %v7225_v12, %s7577_s17 }
0x1c71   :  { %v7227_v4 = vpop.eup %7226 }
0x1c72   :  { %v1633_v17 = vadd.f32 1.0, %v7227_v4 }
0x1c74   :  { %7228 = vrcp.f32 %v1633_v17 }
0x1c7e   :  { %v7229_v20 = vpop.eup %7228 }
0x1ce2   :  { %v1639_v21 = vpop.permute.xlu0 %1638 }
0x1ce3   :  { %v1641_v23 = vmul.f32 %v7229_v20, %v1639_v21 }
0x1ce5   :  { %7230 = vtanh.f32 %v1641_v23  ;;  %v1741_v25 = vrot.slane %v1641_v23, 7 }
0x1cef   :  { %v7231_v8 = vpop.eup %7230 }
0x1cf0   :  { %1644 = vrot.lane.b32.xlu1 %v7231_v8, %s7578_s18 }
0x1d62   :  { %v1645_v24 = vpop.permute.xlu1 %1644 }
0x1d63   :  { %v1647_v18 = vmul.f32 %v7229_v20, %v1645_v24 }
0x1d65   :  { %1649 = vrot.lane.b32.xlu0 %v1647_v18, %s7579_s19 }
0x1d69   :  { %1742 = vrot.lane.b32.xlu0 %v1741_v25, %s7579_s19 }
0x1dd7   :  { %v1650_v26 = vpop.permute.xlu0 %1649 }
0x1dd8   :  { %1652 = vst.msk [vmem:[#allocation3] sm:$0x1] %vm510_vm0, %v1650_v26  ;;  %6426 = vmatmul.mubr.msk.f32.vlgmr.msra.gmra.mrb[10].mxu1 %vm353_vm14, %v1650_v26 }
0x1dd9   :  { %6904 = vmatpush3.bf16.msra.mxu1 %v7763_v37  ;;  %6447 = vmatprep.mubr.msk.f32.mxu1 %vm7575_vm15, %v7576_v7 }
0x1dda   :  { %6905 = vmatprep.subr.bf16.mxu1 %v7574_v6 }
0x1ddd   :  { %6907 = vmatpush3.bf16.msra.mxu1 %v7766_v40  ;;  %v1743_v40 = vpop.permute.xlu0 %1742 }
0x1dde   :  { %6914 = vmatprep.subr.bf16.mxu1 %v7574_v6 }
0x1eab   :  { %v1725_v28 = vpop.f32.mrb[10].mxu1 }
0x1eac   :  { %v1730_v29 = vrot.slane %v1725_v28, 7  ;;  %v6427_v30 = vpop.f32.mrb[11].mxu1 }
0x1eae   :  { %v1732_v31 = vadd.f32 %v1730_v29, %v1627_v5 }
0x1eb0   :  { %7232 = vtanh.f32 %v1732_v31  ;;  %v5905_v39 = vmul.f32 -1.442695, %v1732_v31 }
0x1eb2   :  { %7234 = vpow2.f32 %v5905_v39 }
0x1eba   :  { %v7233_v34 = vpop.eup %7232 }
0x1ebb   :  { %1747 = vrot.lane.b32.xlu1 %v7233_v34, %s7577_s17 }
0x1ebc   :  { %v7235_v37 = vpop.eup %7234 }
0x1ebd   :  { %v1736_v43 = vadd.f32 1.0, %v7235_v37 }
0x1ebf   :  { %7236 = vrcp.f32 %v1736_v43 }
0x1ec9   :  { %v7237_v46 = vpop.eup %7236 }
0x1eca   :  { %v1745_v50 = vmul.f32 %v7237_v46, %v1743_v40 }
0x1f2d   :  { %v1748_v48 = vpop.permute.xlu1 %1747 }
0x1f2e   :  { %v1750_v49 = vmul.f32 %v7237_v46, %v1748_v48 }
0x1f30   :  { %1752 = vrot.lane.b32.xlu1 %v1750_v49, %s7579_s19 }
0x1fa2   :  { %v1753_v51 = vpop.permute.xlu1 %1752 }
0x1fa3   :  { %v1755_v53 = vadd.f32 %v1753_v51, %v1745_v50 }
0x1fa5   :  { %7238 = vtanh.f32 %v1755_v53 }
0x1faf   :  { %v7239_v54 = vpop.eup %7238 }
0x1fb0   :  { %1758 = vrot.lane.b32.xlu0 %v7239_v54, %s7577_s17 }
0x2022   :  { %v1759_v55 = vpop.permute.xlu0 %1758 }
0x2023   :  { %v1761_v56 = vmul.f32 %v7237_v46, %v1759_v55 }
0x2025   :  { %1763 = vrot.lane.b32.xlu1 %v1761_v56, %s7579_s19 }
0x2097   :  { %v1764_v27 = vpop.permute.xlu1 %1763 }
0x2098   :  { %1766 = vst.msk [vmem:[#allocation3] sm:$0x2] %vm625_vm1, %v1764_v27 }
0x209f   :  { %v7971_v57 = vld [vmem:[#allocation3] sm:$0x3] }
0x20a0   :  { %v1774_v59 = vsub.f32 %v1101_v58, %v7971_v57 }
0x20a2   :  { %v1775_v60 = vmul.f32 0.5, %v1774_v59 }
0x20a4   :  { %v1776_v61 = vadd.f32 %v1775_v60, %v7971_v57 }
0x20a6   :  { %6437 = vmatmul.mubr.msk.f32.vlgmr.msra.gmra.mrb[12].mxu0 %vm353_vm14, %v1776_v61 }
0x20a7   :  { %6910 = vmatpush3.bf16.msra.mxu0 %v7787_v3  ;;  %6458 = vmatprep.mubr.msk.f32.mxu0 %vm7575_vm15, %v7576_v7 }
0x20a8   :  { %6911 = vmatprep.subr.bf16.mxu0 %v7574_v6 }
0x20ab   :  { %6913 = vmatpush3.bf16.msra.mxu0 %v7797_v9 }
0x20ac   :  { %6920 = vmatprep.subr.bf16.mxu0 %v7574_v6 }
0x2179   :  { %v1858_v62 = vpop.f32.mrb[12].mxu0 }
0x217a   :  { %v1859_v63 = vadd.f32 %v7759_v19, %v1858_v62  ;;  %v6438_v0 = vpop.f32.mrb[13].mxu0 }
0x217c   :  { %7240 = vtanh.f32 %v1859_v63  ;;  %v5908_v22 = vmul.f32 -1.442695, %v1859_v63 }
0x217e   :  { %7242 = vpow2.f32 %v5908_v22 }
0x2186   :  { %v7241_v1 = vpop.eup %7240 }
0x2187   :  { %1870 = vrot.lane.b32.xlu0 %v7241_v1, %s7577_s17 }
0x2188   :  { %v7243_v3 = vpop.eup %7242 }
0x2189   :  { %v1865_v5 = vadd.f32 1.0, %v7243_v3 }
0x218b   :  { %7244 = vrcp.f32 %v1865_v5 }
0x2195   :  { %v7245_v11 = vpop.eup %7244 }
0x21f9   :  { %v1871_v12 = vpop.permute.xlu0 %1870 }
0x21fa   :  { %v1873_v13 = vmul.f32 %v7245_v11, %v1871_v12 }
0x21fc   :  { %7246 = vtanh.f32 %v1873_v13  ;;  %v1973_v19 = vrot.slane %v1873_v13, 7 }
0x2206   :  { %v7247_v9 = vpop.eup %7246 }
0x2207   :  { %1876 = vrot.lane.b32.xlu1 %v7247_v9, %s7578_s18 }
0x2279   :  { %v1877_v4 = vpop.permute.xlu1 %1876 }
0x227a   :  { %v1879_v17 = vmul.f32 %v7245_v11, %v1877_v4 }
0x227c   :  { %1881 = vrot.lane.b32.xlu0 %v1879_v17, %s7579_s19 }
0x2280   :  { %1974 = vrot.lane.b32.xlu0 %v1973_v19, %s7579_s19 }
0x22ee   :  { %v1882_v20 = vpop.permute.xlu0 %1881 }
0x22ef   :  { %1884 = vst.msk [vmem:[#allocation3] sm:$0x1] %vm510_vm0, %v1882_v20  ;;  %6448 = vmatmul.mubr.msk.f32.vlgmr.msra.gmra.mrb[12].mxu1 %vm353_vm14, %v1882_v20 }
0x22f0   :  { %6916 = vmatpush3.bf16.msra.mxu1 %v7813_v32  ;;  %6469 = vmatprep.mubr.msk.f32.mxu1 %vm7575_vm15, %v7576_v7 }
0x22f1   :  { %6917 = vmatprep.subr.bf16.mxu1 %v7574_v6 }
0x22f4   :  { %6919 = vmatpush3.bf16.msra.mxu1 %v7816_v36  ;;  %v1975_v36 = vpop.permute.xlu0 %1974 }
0x22f5   :  { %6926 = vmatprep.subr.bf16.mxu1 %v7574_v6 }
0x23c2   :  { %v1957_v21 = vpop.f32.mrb[12].mxu1 }
0x23c3   :  { %v1962_v23 = vrot.slane %v1957_v21, 7  ;;  %v6449_v8 = vpop.f32.mrb[13].mxu1 }
0x23c5   :  { %v1964_v24 = vadd.f32 %v1962_v23, %v1859_v63 }
0x23c7   :  { %7248 = vtanh.f32 %v1964_v24  ;;  %v5910_v25 = vmul.f32 -1.442695, %v1964_v24 }
0x23c9   :  { %7250 = vpow2.f32 %v5910_v25 }
0x23d1   :  { %v7249_v18 = vpop.eup %7248 }
0x23d2   :  { %1979 = vrot.lane.b32.xlu1 %v7249_v18, %s7577_s17 }
0x23d3   :  { %v7251_v32 = vpop.eup %7250 }
0x23d4   :  { %v1968_v26 = vadd.f32 1.0, %v7251_v32 }
0x23d6   :  { %7252 = vrcp.f32 %v1968_v26 }
0x23e0   :  { %v7253_v28 = vpop.eup %7252 }
0x23e1   :  { %v1977_v31 = vmul.f32 %v7253_v28, %v1975_v36 }
0x2444   :  { %v1980_v29 = vpop.permute.xlu1 %1979 }
0x2445   :  { %v1982_v30 = vmul.f32 %v7253_v28, %v1980_v29 }
0x2447   :  { %1984 = vrot.lane.b32.xlu1 %v1982_v30, %s7579_s19 }
0x24b9   :  { %v1985_v34 = vpop.permute.xlu1 %1984 }
0x24ba   :  { %v1987_v39 = vadd.f32 %v1985_v34, %v1977_v31 }
0x24bc   :  { %7254 = vtanh.f32 %v1987_v39 }
0x24c6   :  { %v7255_v37 = vpop.eup %7254 }
0x24c7   :  { %1990 = vrot.lane.b32.xlu0 %v7255_v37, %s7577_s17 }
0x2539   :  { %v1991_v43 = vpop.permute.xlu0 %1990 }
0x253a   :  { %v1993_v46 = vmul.f32 %v7253_v28, %v1991_v43 }
0x253c   :  { %1995 = vrot.lane.b32.xlu1 %v1993_v46, %s7579_s19 }
0x25ae   :  { %v1996_v48 = vpop.permute.xlu1 %1995 }
0x25af   :  { %1998 = vst.msk [vmem:[#allocation3] sm:$0x2] %vm625_vm1, %v1996_v48 }
0x25b6   :  { %v1999_v49 = vld [vmem:[#allocation3] sm:$0x3] }
0x25b7   :  { %6459 = vmatmul.mubr.msk.f32.vlgmr.msra.gmra.mrb[14].mxu0 %vm353_vm14, %v1999_v49 }
0x25b8   :  { %6922 = vmatpush3.bf16.msra.mxu0 %v7837_v2  ;;  %6480 = vmatprep.mubr.msk.f32.mxu0 %vm7575_vm15, %v7576_v7 }
0x25b9   :  { %6923 = vmatprep.subr.bf16.mxu0 %v7574_v6 }
0x25bc   :  { %6925 = vmatpush3.bf16.msra.mxu0 %v7847_v10 }
0x25bd   :  { %6932 = vmatprep.subr.bf16.mxu0 %v7574_v6 }
0x268a   :  { %v2080_v40 = vpop.f32.mrb[14].mxu0 }
0x268b   :  { %v2081_v50 = vadd.f32 %v7809_v14, %v2080_v40  ;;  %v6460_v51 = vpop.f32.mrb[15].mxu0 }
0x268d   :  { %7256 = vtanh.f32 %v2081_v50  ;;  %v5918_v54 = vmul.f32 -1.442695, %v2081_v50 }
0x268f   :  { %7258 = vpow2.f32 %v5918_v54 }
0x2697   :  { %v7257_v53 = vpop.eup %7256 }
0x2698   :  { %2092 = vrot.lane.b32.xlu0 %v7257_v53, %s7577_s17 }
0x2699   :  { %v7259_v2 = vpop.eup %7258 }
0x269a   :  { %v2087_v55 = vadd.f32 1.0, %v7259_v2 }
0x269c   :  { %7260 = vrcp.f32 %v2087_v55 }
0x26a6   :  { %v7261_v56 = vpop.eup %7260 }
0x270a   :  { %v2093_v27 = vpop.permute.xlu0 %2092 }
0x270b   :  { %v2095_v58 = vmul.f32 %v7261_v56, %v2093_v27 }
0x270d   :  { %7262 = vtanh.f32 %v2095_v58  ;;  %v2195_v14 = vrot.slane %v2095_v58, 7 }
0x2717   :  { %v7263_v10 = vpop.eup %7262 }
0x2718   :  { %2098 = vrot.lane.b32.xlu1 %v7263_v10, %s7578_s18 }
0x278a   :  { %v2099_v59 = vpop.permute.xlu1 %2098 }
0x278b   :  { %v2101_v60 = vmul.f32 %v7261_v56, %v2099_v59 }
0x278d   :  { %2103 = vrot.lane.b32.xlu0 %v2101_v60, %s7579_s19 }
0x2791   :  { %2196 = vrot.lane.b32.xlu0 %v2195_v14, %s7579_s19  ;;  %v2454_v14 = vld [vmem:[%s8712_s5] sm:$0xff] }
0x27ff   :  { %v2104_v61 = vpop.permute.xlu0 %2103 }
0x2800   :  { %2106 = vst.msk [vmem:[#allocation3] sm:$0x1] %vm510_vm0, %v2104_v61  ;;  %6470 = vmatmul.mubr.msk.f32.vlgmr.msra.gmra.mrb[14].mxu1 %vm353_vm14, %v2104_v61  ;;  %v2455_v61 = vld [vmem:[%s8712_s5 + $0x8] sm:$0xff] }
0x2801   :  { %6928 = vmatpush3.bf16.msra.mxu1 %v7867_v42  ;;  %6491 = vmatprep.mubr.msk.f32.mxu1 %vm7575_vm15, %v7576_v7 }
0x2802   :  { %6929 = vmatprep.subr.bf16.mxu1 %v7574_v6 }
0x2805   :  { %6931 = vmatpush3.bf16.msra.mxu1 %v7870_v45  ;;  %v2197_v45 = vpop.permute.xlu0 %2196 }
0x2806   :  { %6938 = vmatprep.subr.bf16.mxu1 %v7574_v6 }
0x28d3   :  { %v2179_v62 = vpop.f32.mrb[14].mxu1 }
0x28d4   :  { %v2184_v63 = vrot.slane %v2179_v62, 7  ;;  %v6471_v0 = vpop.f32.mrb[15].mxu1  ;;  %v8046_v62 = vpack.c.bf16 %v2455_v61, %v2454_v14  ;;  %v5937_v14 = vld [vmem:[%s8712_s5 + $0x28] sm:$0xff] }
0x28d5   :  { %v2457_v0 = vld [vmem:[%s8712_s5 + $0x18] sm:$0xff] }
0x28d6   :  { %v2186_v1 = vadd.f32 %v2184_v63, %v2081_v50  ;;  %v2456_v63 = vld [vmem:[%s8712_s5 + $0x10] sm:$0xff] }
0x28d8   :  { %7264 = vtanh.f32 %v2186_v1  ;;  %v5920_v3 = vmul.f32 -1.442695, %v2186_v1  ;;  %v8055_v1 = vpack.c.bf16 %v2457_v0, %v2456_v63  ;;  %v5938_v63 = vld [vmem:[%s8712_s5 + $0x30] sm:$0xff]  ;;  %v5939_v0 = vld [vmem:[%s8712_s5 + $0x38] sm:$0xff] }
0x28da   :  { %7266 = vpow2.f32 %v5920_v3 }
0x28e2   :  { %v7265_v22 = vpop.eup %7264 }
0x28e3   :  { %2201 = vrot.lane.b32.xlu1 %v7265_v22, %s7577_s17 }
0x28e4   :  { %v7267_v42 = vpop.eup %7266 }
0x28e5   :  { %v2190_v5 = vadd.f32 1.0, %v7267_v42 }
0x28e7   :  { %7268 = vrcp.f32 %v2190_v5 }
0x28f1   :  { %v7269_v11 = vpop.eup %7268 }
0x28f2   :  { %v2199_v9 = vmul.f32 %v7269_v11, %v2197_v45 }
0x2955   :  { %v2202_v12 = vpop.permute.xlu1 %2201 }
0x2956   :  { %v2204_v13 = vmul.f32 %v7269_v11, %v2202_v12 }
0x2958   :  { %2206 = vrot.lane.b32.xlu1 %v2204_v13, %s7579_s19 }
0x29ca   :  { %v2207_v4 = vpop.permute.xlu1 %2206 }
0x29cb   :  { %v2209_v17 = vadd.f32 %v2207_v4, %v2199_v9  ;;  %v8072_v9 = vld [vmem:[%s8714_s7] ss:$0 sm:$0xff] }
0x29cd   :  { %7270 = vtanh.f32 %v2209_v17 }
0x29d7   :  { %v7271_v19 = vpop.eup %7270 }
0x29d8   :  { %2212 = vrot.lane.b32.xlu0 %v7271_v19, %s7577_s17 }
0x2a4a   :  { %v2213_v20 = vpop.permute.xlu0 %2212 }
0x2a4b   :  { %v2215_v21 = vmul.f32 %v7269_v11, %v2213_v20  ;;  %v1777_v11 = vld [vmem:[#allocation2 + $0x4] sm:$0x3] }
0x2a4d   :  { %2217 = vrot.lane.b32.xlu1 %v2215_v21, %s7579_s19 }
0x2abf   :  { %v2218_v23 = vpop.permute.xlu1 %2217 }
0x2ac0   :  { %2220 = vst.msk [vmem:[#allocation3] sm:$0x2] %vm625_vm1, %v2218_v23 }
0x2ac7   :  { %v2221_v8 = vld [vmem:[#allocation3] sm:$0x3] }
0x2ac8   :  { %6481 = vmatmul.mubr.msk.f32.vlgmr.msra.gmra.mrb[16].mxu0 %vm353_vm14, %v2221_v8 }
0x2ac9   :  { %6502 = vmatprep.mubr.msk.f32.mxu0 %vm7575_vm15, %v7576_v7  ;;  %6934 = vmatpush3.bf16.msra.mxu0 %v8046_v62 }
0x2aca   :  { %6935 = vmatprep.subr.bf16.mxu0 %v7574_v6 }
0x2acd   :  { %6937 = vmatpush3.bf16.msra.mxu0 %v8055_v1 }
0x2ace   :  { %6944 = vmatprep.subr.bf16.mxu0 %v7574_v6 }
0x2b9b   :  { %v2302_v24 = vpop.f32.mrb[16].mxu0 }
0x2b9c   :  { %v2303_v18 = vadd.f32 %v7863_v16, %v2302_v24  ;;  %v6482_v25 = vpop.f32.mrb[17].mxu0 }
0x2b9e   :  { %7272 = vtanh.f32 %v2303_v18  ;;  %v5928_v26 = vmul.f32 -1.442695, %v2303_v18 }
0x2ba0   :  { %7274 = vpow2.f32 %v5928_v26  ;;  %v2562_v26 = vld [vmem:[#allocation5 + $0x8] sm:$0xff] }
0x2ba8   :  { %v7273_v32 = vpop.eup %7272 }
0x2ba9   :  { %2314 = vrot.lane.b32.xlu0 %v7273_v32, %s7577_s17  ;;  %v2561_v32 = vld [vmem:[#allocation5] sm:$0xff] }
0x2baa   :  { %v7275_v28 = vpop.eup %7274 }
0x2bab   :  { %v2309_v29 = vadd.f32 1.0, %v7275_v28  ;;  %v2563_v28 = vld [vmem:[#allocation5 + $0x10] sm:$0xff] }
0x2bad   :  { %7276 = vrcp.f32 %v2309_v29  ;;  %v8076_v29 = vpack.c.bf16 %v2562_v26, %v2561_v32  ;;  %v2784_v32 = vld [vmem:[#allocation5 + $0x28] sm:$0xff]  ;;  %v2785_v26 = vld [vmem:[#allocation5 + $0x30] sm:$0xff] }
0x2bb7   :  { %v7277_v30 = vpop.eup %7276 }
0x2c1b   :  { %v2315_v36 = vpop.permute.xlu0 %2314 }
0x2c1c   :  { %v2317_v31 = vmul.f32 %v7277_v30, %v2315_v36 }
0x2c1e   :  { %7278 = vtanh.f32 %v2317_v31  ;;  %v2417_v16 = vrot.slane %v2317_v31, 7 }
0x2c28   :  { %v7279_v34 = vpop.eup %7278 }
0x2c29   :  { %2320 = vrot.lane.b32.xlu1 %v7279_v34, %s7578_s18 }
0x2c9b   :  { %v2321_v39 = vpop.permute.xlu1 %2320 }
0x2c9c   :  { %v2323_v37 = vmul.f32 %v7277_v30, %v2321_v39  ;;  %v2564_v30 = vld [vmem:[#allocation5 + $0x18] sm:$0xff] }
0x2c9d   :  { %v8079_v36 = vpack.c.bf16 %v2564_v30, %v2563_v28  ;;  %v2786_v30 = vld [vmem:[#allocation5 + $0x38] sm:$0xff] }
0x2c9e   :  { %2325 = vrot.lane.b32.xlu0 %v2323_v37, %s7579_s19 }
0x2ca2   :  { %2418 = vrot.lane.b32.xlu0 %v2417_v16, %s7579_s19 }
0x2d10   :  { %v2326_v43 = vpop.permute.xlu0 %2325 }
0x2d11   :  { %2328 = vst.msk [vmem:[#allocation3] sm:$0x1] %vm510_vm0, %v2326_v43  ;;  %6492 = vmatmul.mubr.msk.f32.vlgmr.msra.gmra.mrb[16].mxu1 %vm353_vm14, %v2326_v43 }
0x2d12   :  { %6513 = vmatprep.mubr.msk.f32.mxu1 %vm7575_vm15, %v7576_v7  ;;  %6940 = vmatpush3.bf16.msra.mxu1 %v8076_v29 }
0x2d13   :  { %6941 = vmatprep.subr.bf16.mxu1 %v7574_v6 }
0x2d14   :  { %v2419_v27 = vpop.permute.xlu0 %2418 }
0x2d16   :  { %6943 = vmatpush3.bf16.msra.mxu1 %v8079_v36 }
0x2d17   :  { %6950 = vmatprep.subr.bf16.mxu1 %v7574_v6 }
0x2de4   :  { %v2401_v46 = vpop.f32.mrb[16].mxu1 }
0x2de5   :  { %v2406_v48 = vrot.slane %v2401_v46, 7  ;;  %v6493_v49 = vpop.f32.mrb[17].mxu1 }
0x2de7   :  { %v2408_v40 = vadd.f32 %v2406_v48, %v2303_v18 }
0x2de9   :  { %7280 = vtanh.f32 %v2408_v40  ;;  %v5930_v51 = vmul.f32 -1.442695, %v2408_v40 }
0x2deb   :  { %7282 = vpow2.f32 %v5930_v51 }
0x2df3   :  { %v7281_v50 = vpop.eup %7280 }
0x2df4   :  { %2423 = vrot.lane.b32.xlu1 %v7281_v50, %s7577_s17 }
0x2df5   :  { %v7283_v53 = vpop.eup %7282 }
0x2df6   :  { %v2412_v54 = vadd.f32 1.0, %v7283_v53 }
0x2df8   :  { %7284 = vrcp.f32 %v2412_v54 }
0x2e02   :  { %v7285_v2 = vpop.eup %7284 }
0x2e03   :  { %v2421_v58 = vmul.f32 %v7285_v2, %v2419_v27 }
0x2e66   :  { %v2424_v55 = vpop.permute.xlu1 %2423 }
0x2e67   :  { %v2426_v56 = vmul.f32 %v7285_v2, %v2424_v55 }
0x2e69   :  { %2428 = vrot.lane.b32.xlu1 %v2426_v56, %s7579_s19 }
0x2edb   :  { %v2429_v10 = vpop.permute.xlu1 %2428 }
0x2edc   :  { %v2431_v59 = vadd.f32 %v2429_v10, %v2421_v58 }
0x2ede   :  { %7286 = vtanh.f32 %v2431_v59 }
0x2ee8   :  { %v7287_v60 = vpop.eup %7286 }
0x2ee9   :  { %2434 = vrot.lane.b32.xlu0 %v7287_v60, %s7577_s17  ;;  %v5936_v60 = vld [vmem:[%s8712_s5 + $0x20] sm:$0xff] }
0x2eea   :  { %v8100_v61 = vpack.c.bf16 %v5937_v14, %v5936_v60  ;;  %v5946_v14 = vld [vmem:[%s8712_s5 + $0x40] sm:$0xff] }
0x2f5b   :  { %v2435_v22 = vpop.permute.xlu0 %2434 }
0x2f5c   :  { %v2437_v3 = vmul.f32 %v7285_v2, %v2435_v22  ;;  %v8110_v22 = vpack.c.bf16 %v5939_v0, %v5938_v63  ;;  %v5947_v63 = vld [vmem:[%s8712_s5 + $0x48] sm:$0xff] }
0x2f5d   :  { %v8150_v0 = vpack.c.bf16 %v5947_v63, %v5946_v14 }
0x2f5e   :  { %2439 = vrot.lane.b32.xlu1 %v2437_v3, %s7579_s19 }
0x2fd0   :  { %v2440_v42 = vpop.permute.xlu1 %2439 }
0x2fd1   :  { %2442 = vst.msk [vmem:[#allocation3] sm:$0x2] %vm625_vm1, %v2440_v42 }
0x2fd8   :  { %v8062_v5 = vld [vmem:[#allocation3] sm:$0x3] }
0x2fd9   :  { %v2450_v12 = vsub.f32 %v1777_v11, %v8062_v5 }
0x2fdb   :  { %v2451_v13 = vmul.f32 0.5, %v2450_v12 }
0x2fdd   :  { %v2452_v45 = vadd.f32 %v2451_v13, %v8062_v5  ;;  %v8122_v13 = vld [vmem:[%s8714_s7 + $0x1] ss:$0 sm:$0xff] }
0x2fdf   :  { %6503 = vmatmul.mubr.msk.f32.vlgmr.msra.gmra.mrb[18].mxu0 %vm353_vm14, %v2452_v45 }
0x2fe0   :  { %6524 = vmatprep.mubr.msk.f32.mxu0 %vm7575_vm15, %v7576_v7  ;;  %6946 = vmatpush3.bf16.msra.mxu0 %v8100_v61 }
0x2fe1   :  { %6947 = vmatprep.subr.bf16.mxu0 %v7574_v6 }
0x2fe4   :  { %6949 = vmatpush3.bf16.msra.mxu0 %v8110_v22 }
0x2fe5   :  { %6956 = vmatprep.subr.bf16.mxu0 %v7574_v6 }
0x30b2   :  { %v2534_v4 = vpop.f32.mrb[18].mxu0 }
0x30b3   :  { %v2535_v17 = vadd.f32 %v8072_v9, %v2534_v4  ;;  %v6504_v19 = vpop.f32.mrb[19].mxu0 }
0x30b5   :  { %7288 = vtanh.f32 %v2535_v17  ;;  %v5933_v21 = vmul.f32 -1.442695, %v2535_v17 }
0x30b7   :  { %7290 = vpow2.f32 %v5933_v21 }
0x30bf   :  { %v7289_v20 = vpop.eup %7288 }
0x30c0   :  { %2546 = vrot.lane.b32.xlu0 %v7289_v20, %s7577_s17 }
0x30c1   :  { %v7291_v23 = vpop.eup %7290 }
0x30c2   :  { %v2541_v8 = vadd.f32 1.0, %v7291_v23 }
0x30c4   :  { %7292 = vrcp.f32 %v2541_v8 }
0x30ce   :  { %v7293_v24 = vpop.eup %7292 }
0x3132   :  { %v2547_v18 = vpop.permute.xlu0 %2546 }
0x3133   :  { %v2549_v25 = vmul.f32 %v7293_v24, %v2547_v18 }
0x3135   :  { %7294 = vtanh.f32 %v2549_v25  ;;  %v2649_v37 = vrot.slane %v2549_v25, 7  ;;  %v2783_v25 = vld [vmem:[#allocation5 + $0x20] sm:$0xff] }
0x3136   :  { %v8126_v28 = vpack.c.bf16 %v2784_v32, %v2783_v25 }
0x313f   :  { %v7295_v31 = vpop.eup %7294 }
0x3140   :  { %2552 = vrot.lane.b32.xlu1 %v7295_v31, %s7578_s18  ;;  %v8129_v31 = vpack.c.bf16 %v2786_v30, %v2785_v26  ;;  %v3005_v26 = vld [vmem:[#allocation5 + $0x40] sm:$0xff]  ;;  %v3006_v30 = vld [vmem:[#allocation5 + $0x48] sm:$0xff] }
0x31b2   :  { %v2553_v34 = vpop.permute.xlu1 %2552 }
0x31b3   :  { %v2555_v39 = vmul.f32 %v7293_v24, %v2553_v34 }
0x31b5   :  { %2557 = vrot.lane.b32.xlu0 %v2555_v39, %s7579_s19 }
0x31b9   :  { %2650 = vrot.lane.b32.xlu0 %v2649_v37, %s7579_s19 }
0x3227   :  { %v2558_v16 = vpop.permute.xlu0 %2557 }
0x3228   :  { %2560 = vst.msk [vmem:[#allocation3] sm:$0x1] %vm510_vm0, %v2558_v16  ;;  %6514 = vmatmul.mubr.msk.f32.vlgmr.msra.gmra.mrb[18].mxu1 %vm353_vm14, %v2558_v16 }
0x3229   :  { %6535 = vmatprep.mubr.msk.f32.mxu1 %vm7575_vm15, %v7576_v7  ;;  %6952 = vmatpush3.bf16.msra.mxu1 %v8126_v28 }
0x322a   :  { %6953 = vmatprep.subr.bf16.mxu1 %v7574_v6 }
0x322b   :  { %v2651_v56 = vpop.permute.xlu0 %2650 }
0x322d   :  { %6955 = vmatpush3.bf16.msra.mxu1 %v8129_v31 }
0x322e   :  { %6962 = vmatprep.subr.bf16.mxu1 %v7574_v6 }
0x32fb   :  { %v2633_v43 = vpop.f32.mrb[18].mxu1 }
0x32fc   :  { %v2638_v46 = vrot.slane %v2633_v43, 7  ;;  %v6515_v48 = vpop.f32.mrb[19].mxu1 }
0x32fe   :  { %v2640_v49 = vadd.f32 %v2638_v46, %v2535_v17 }
0x3300   :  { %7296 = vtanh.f32 %v2640_v49  ;;  %v5935_v50 = vmul.f32 -1.442695, %v2640_v49 }
0x3302   :  { %7298 = vpow2.f32 %v5935_v50 }
0x330a   :  { %v7297_v40 = vpop.eup %7296 }
0x330b   :  { %2655 = vrot.lane.b32.xlu1 %v7297_v40, %s7577_s17 }
0x330c   :  { %v7299_v51 = vpop.eup %7298 }
0x330d   :  { %v2644_v53 = vadd.f32 1.0, %v7299_v51 }
0x330f   :  { %7300 = vrcp.f32 %v2644_v53 }
0x3319   :  { %v7301_v54 = vpop.eup %7300 }
0x331a   :  { %v2653_v27 = vmul.f32 %v7301_v54, %v2651_v56 }
0x337d   :  { %v2656_v2 = vpop.permute.xlu1 %2655 }
0x337e   :  { %v2658_v55 = vmul.f32 %v7301_v54, %v2656_v2 }
0x3380   :  { %2660 = vrot.lane.b32.xlu1 %v2658_v55, %s7579_s19 }
0x33f2   :  { %v2661_v58 = vpop.permute.xlu1 %2660 }
0x33f3   :  { %v2663_v10 = vadd.f32 %v2661_v58, %v2653_v27 }
0x33f5   :  { %7302 = vtanh.f32 %v2663_v10 }
0x33ff   :  { %v7303_v59 = vpop.eup %7302 }
0x3400   :  { %2666 = vrot.lane.b32.xlu0 %v7303_v59, %s7577_s17 }
0x3472   :  { %v2667_v3 = vpop.permute.xlu0 %2666 }
0x3473   :  { %v2669_v42 = vmul.f32 %v7301_v54, %v2667_v3  ;;  %v5948_v3 = vld [vmem:[%s8712_s5 + $0x50] sm:$0xff] }
0x3475   :  { %2671 = vrot.lane.b32.xlu1 %v2669_v42, %s7579_s19  ;;  %v5949_v42 = vld [vmem:[%s8712_s5 + $0x58] sm:$0xff] }
0x34e7   :  { %v2672_v11 = vpop.permute.xlu1 %2671 }
0x34e8   :  { %2674 = vst.msk [vmem:[#allocation3] sm:$0x2] %vm625_vm1, %v2672_v11  ;;  %v8160_v11 = vpack.c.bf16 %v5949_v42, %v5948_v3 }
0x34ef   :  { %v2675_v12 = vld [vmem:[#allocation3] sm:$0x3] }
0x34f0   :  { %6525 = vmatmul.mubr.msk.f32.vlgmr.msra.gmra.mrb[20].mxu0 %vm353_vm14, %v2675_v12 }
0x34f1   :  { %6546 = vmatprep.mubr.msk.f32.mxu0 %vm7575_vm15, %v7576_v7  ;;  %6958 = vmatpush3.bf16.msra.mxu0 %v8150_v0 }
0x34f2   :  { %6959 = vmatprep.subr.bf16.mxu0 %v7574_v6 }
0x34f5   :  { %6961 = vmatpush3.bf16.msra.mxu0 %v8160_v11 }
0x34f6   :  { %6968 = vmatprep.subr.bf16.mxu0 %v7574_v6 }
0x35c3   :  { %v2756_v45 = vpop.f32.mrb[20].mxu0 }
0x35c4   :  { %v2757_v4 = vadd.f32 %v8122_v13, %v2756_v45  ;;  %v6526_v17 = vpop.f32.mrb[21].mxu0 }
0x35c6   :  { %7304 = vtanh.f32 %v2757_v4  ;;  %v5943_v20 = vmul.f32 -1.442695, %v2757_v4 }
0x35c8   :  { %7306 = vpow2.f32 %v5943_v20 }
0x35d0   :  { %v7305_v19 = vpop.eup %7304 }
0x35d1   :  { %2768 = vrot.lane.b32.xlu0 %v7305_v19, %s7577_s17  ;;  %v8176_v19 = vld [vmem:[%s8714_s7 + $0x2] ss:$0 sm:$0xff] }
0x35d2   :  { %v7307_v21 = vpop.eup %7306 }
0x35d3   :  { %v2763_v23 = vadd.f32 1.0, %v7307_v21 }
0x35d5   :  { %7308 = vrcp.f32 %v2763_v23 }
0x35df   :  { %v7309_v8 = vpop.eup %7308 }
0x3643   :  { %v2769_v24 = vpop.permute.xlu0 %2768 }
0x3644   :  { %v2771_v18 = vmul.f32 %v7309_v8, %v2769_v24 }
0x3646   :  { %7310 = vtanh.f32 %v2771_v18  ;;  %v2871_v16 = vrot.slane %v2771_v18, 7 }
0x3650   :  { %v7311_v34 = vpop.eup %7310 }
0x3651   :  { %2774 = vrot.lane.b32.xlu1 %v7311_v34, %s7578_s18  ;;  %v3007_v34 = vld [vmem:[#allocation5 + $0x50] sm:$0xff] }
0x36c3   :  { %v2775_v39 = vpop.permute.xlu1 %2774 }
0x36c4   :  { %v2777_v37 = vmul.f32 %v7309_v8, %v2775_v39  ;;  %v8180_v39 = vpack.c.bf16 %v3006_v30, %v3005_v26 }
0x36c6   :  { %2779 = vrot.lane.b32.xlu0 %v2777_v37, %s7579_s19  ;;  %v3008_v37 = vld [vmem:[#allocation5 + $0x58] sm:$0xff] }
0x36ca   :  { %2872 = vrot.lane.b32.xlu0 %v2871_v16, %s7579_s19  ;;  %v8183_v16 = vpack.c.bf16 %v3008_v37, %v3007_v34 }
0x3738   :  { %v2780_v43 = vpop.permute.xlu0 %2779 }
0x3739   :  { %2782 = vst.msk [vmem:[#allocation3] sm:$0x1] %vm510_vm0, %v2780_v43  ;;  %6536 = vmatmul.mubr.msk.f32.vlgmr.msra.gmra.mrb[20].mxu1 %vm353_vm14, %v2780_v43 }
0x373a   :  { %6557 = vmatprep.mubr.msk.f32.mxu1 %vm7575_vm15, %v7576_v7  ;;  %6964 = vmatpush3.bf16.msra.mxu1 %v8180_v39 }
0x373b   :  { %6965 = vmatprep.subr.bf16.mxu1 %v7574_v6 }
0x373c   :  { %v2873_v27 = vpop.permute.xlu0 %2872 }
0x373e   :  { %6967 = vmatpush3.bf16.msra.mxu1 %v8183_v16 }
0x373f   :  { %6974 = vmatprep.subr.bf16.mxu1 %v7574_v6 }
0x380c   :  { %v2855_v46 = vpop.f32.mrb[20].mxu1 }
0x380d   :  { %v2860_v48 = vrot.slane %v2855_v46, 7  ;;  %v6537_v49 = vpop.f32.mrb[21].mxu1 }
0x380f   :  { %v2862_v40 = vadd.f32 %v2860_v48, %v2757_v4 }
0x3811   :  { %7312 = vtanh.f32 %v2862_v40  ;;  %v5945_v51 = vmul.f32 -1.442695, %v2862_v40 }
0x3813   :  { %7314 = vpow2.f32 %v5945_v51 }
0x381b   :  { %v7313_v50 = vpop.eup %7312 }
0x381c   :  { %2877 = vrot.lane.b32.xlu1 %v7313_v50, %s7577_s17 }
0x381d   :  { %v7315_v53 = vpop.eup %7314 }
0x381e   :  { %v2866_v54 = vadd.f32 1.0, %v7315_v53 }
0x3820   :  { %7316 = vrcp.f32 %v2866_v54 }
0x382a   :  { %v7317_v2 = vpop.eup %7316 }
0x382b   :  { %v2875_v58 = vmul.f32 %v7317_v2, %v2873_v27 }
0x388e   :  { %v2878_v55 = vpop.permute.xlu1 %2877 }
0x388f   :  { %v2880_v56 = vmul.f32 %v7317_v2, %v2878_v55 }
0x3891   :  { %2882 = vrot.lane.b32.xlu1 %v2880_v56, %s7579_s19 }
0x3903   :  { %v2883_v10 = vpop.permute.xlu1 %2882 }
0x3904   :  { %v2885_v59 = vadd.f32 %v2883_v10, %v2875_v58 }
0x3906   :  { %7318 = vtanh.f32 %v2885_v59 }
0x3910   :  { %v7319_v60 = vpop.eup %7318 }
0x3911   :  { %2888 = vrot.lane.b32.xlu0 %v7319_v60, %s7577_s17 }
0x3983   :  { %v2889_v12 = vpop.permute.xlu0 %2888 }
0x3984   :  { %v2891_v45 = vmul.f32 %v7317_v2, %v2889_v12 }
0x3986   :  { %2893 = vrot.lane.b32.xlu1 %v2891_v45, %s7579_s19 }
0x39f8   :  { %v2894_v4 = vpop.permute.xlu1 %2893 }
0x39f9   :  { %2896 = vst.msk [vmem:[#allocation3] sm:$0x2] %vm625_vm1, %v2894_v4  ;;  %v2453_v4 = vld [vmem:[#allocation2 + $0x6] sm:$0x3] }
0x3a00   :  { %v2897_v17 = vld [vmem:[#allocation3] sm:$0x3] }
0x3a01   :  { %6547 = vmatmul.mubr.msk.f32.vlgmr.msra.gmra.mrb[22].mxu0 %vm353_vm14, %v2897_v17 }
0x3a02   :  { %6970 = vmatpush3.bf16.msra.mxu0 %v8046_v62  ;;  %6568 = vmatprep.mubr.msk.f32.mxu0 %vm7575_vm15, %v7576_v7 }
0x3a03   :  { %6971 = vmatprep.subr.bf16.mxu0 %v7574_v6 }
0x3a06   :  { %6973 = vmatpush3.bf16.msra.mxu0 %v8055_v1 }
0x3a07   :  { %6980 = vmatprep.subr.bf16.mxu0 %v7574_v6 }
0x3ad4   :  { %v2978_v20 = vpop.f32.mrb[22].mxu0 }
0x3ad5   :  { %v2979_v21 = vadd.f32 %v8176_v19, %v2978_v20  ;;  %v6548_v23 = vpop.f32.mrb[23].mxu0 }
0x3ad7   :  { %7320 = vtanh.f32 %v2979_v21  ;;  %v5953_v8 = vmul.f32 -1.442695, %v2979_v21 }
0x3ad9   :  { %7322 = vpow2.f32 %v5953_v8 }
0x3ae1   :  { %v7321_v62 = vpop.eup %7320 }
0x3ae2   :  { %2990 = vrot.lane.b32.xlu0 %v7321_v62, %s7577_s17 }
0x3ae3   :  { %v7323_v24 = vpop.eup %7322 }
0x3ae4   :  { %v2985_v18 = vadd.f32 1.0, %v7323_v24 }
0x3ae6   :  { %7324 = vrcp.f32 %v2985_v18 }
0x3af0   :  { %v7325_v1 = vpop.eup %7324 }
0x3b54   :  { %v2991_v25 = vpop.permute.xlu0 %2990 }
0x3b55   :  { %v2993_v32 = vmul.f32 %v7325_v1, %v2991_v25 }
0x3b57   :  { %7326 = vtanh.f32 %v2993_v32  ;;  %v3093_v49 = vrot.slane %v2993_v32, 7 }
0x3b61   :  { %v7327_v43 = vpop.eup %7326 }
0x3b62   :  { %2996 = vrot.lane.b32.xlu1 %v7327_v43, %s7578_s18 }
0x3bd4   :  { %v2997_v46 = vpop.permute.xlu1 %2996 }
0x3bd5   :  { %v2999_v48 = vmul.f32 %v7325_v1, %v2997_v46 }
0x3bd7   :  { %3001 = vrot.lane.b32.xlu0 %v2999_v48, %s7579_s19 }
0x3bdb   :  { %3094 = vrot.lane.b32.xlu0 %v3093_v49, %s7579_s19 }
0x3c49   :  { %v3002_v40 = vpop.permute.xlu0 %3001 }
0x3c4a   :  { %3004 = vst.msk [vmem:[#allocation3] sm:$0x1] %vm510_vm0, %v3002_v40  ;;  %6558 = vmatmul.mubr.msk.f32.vlgmr.msra.gmra.mrb[22].mxu1 %vm353_vm14, %v3002_v40 }
0x3c4b   :  { %6976 = vmatpush3.bf16.msra.mxu1 %v8076_v29  ;;  %6579 = vmatprep.mubr.msk.f32.mxu1 %vm7575_vm15, %v7576_v7 }
0x3c4c   :  { %6977 = vmatprep.subr.bf16.mxu1 %v7574_v6 }
0x3c4f   :  { %6979 = vmatpush3.bf16.msra.mxu1 %v8079_v36  ;;  %v3095_v36 = vpop.permute.xlu0 %3094 }
0x3c50   :  { %6986 = vmatprep.subr.bf16.mxu1 %v7574_v6 }
0x3d1d   :  { %v3077_v50 = vpop.f32.mrb[22].mxu1 }
0x3d1e   :  { %v3082_v51 = vrot.slane %v3077_v50, 7  ;;  %v6559_v53 = vpop.f32.mrb[23].mxu1 }
0x3d20   :  { %v3084_v54 = vadd.f32 %v3082_v51, %v2979_v21 }
0x3d22   :  { %7328 = vtanh.f32 %v3084_v54  ;;  %v5955_v55 = vmul.f32 -1.442695, %v3084_v54 }
0x3d24   :  { %7330 = vpow2.f32 %v5955_v55 }
0x3d2c   :  { %v7329_v2 = vpop.eup %7328 }
0x3d2d   :  { %3099 = vrot.lane.b32.xlu1 %v7329_v2, %s7577_s17 }
0x3d2e   :  { %v7331_v29 = vpop.eup %7330 }
0x3d2f   :  { %v3088_v56 = vadd.f32 1.0, %v7331_v29 }
0x3d31   :  { %7332 = vrcp.f32 %v3088_v56 }
0x3d3b   :  { %v7333_v27 = vpop.eup %7332 }
0x3d3c   :  { %v3097_v59 = vmul.f32 %v7333_v27, %v3095_v36 }
0x3d9f   :  { %v3100_v58 = vpop.permute.xlu1 %3099 }
0x3da0   :  { %v3102_v10 = vmul.f32 %v7333_v27, %v3100_v58 }
0x3da2   :  { %3104 = vrot.lane.b32.xlu1 %v3102_v10, %s7579_s19 }
0x3e14   :  { %v3105_v60 = vpop.permute.xlu1 %3104 }
0x3e15   :  { %v3107_v14 = vadd.f32 %v3105_v60, %v3097_v59 }
0x3e17   :  { %7334 = vtanh.f32 %v3107_v14 }
0x3e21   :  { %v7335_v63 = vpop.eup %7334 }
0x3e22   :  { %3110 = vrot.lane.b32.xlu0 %v7335_v63, %s7577_s17 }
0x3e94   :  { %v3111_v3 = vpop.permute.xlu0 %3110 }
0x3e95   :  { %v3113_v42 = vmul.f32 %v7333_v27, %v3111_v3 }
0x3e97   :  { %3115 = vrot.lane.b32.xlu1 %v3113_v42, %s7579_s19 }
0x3f09   :  { %v3116_v12 = vpop.permute.xlu1 %3115 }
0x3f0a   :  { %3118 = vst.msk [vmem:[#allocation3] sm:$0x2] %vm625_vm1, %v3116_v12 }
0x3f11   :  { %v8204_v45 = vld [vmem:[#allocation3] sm:$0x3] }
0x3f12   :  { %v3126_v17 = vsub.f32 %v2453_v4, %v8204_v45 }
0x3f14   :  { %v3127_v20 = vmul.f32 0.5, %v3126_v17 }
0x3f16   :  { %v3128_v21 = vadd.f32 %v3127_v20, %v8204_v45 }
0x3f18   :  { %6569 = vmatmul.mubr.msk.f32.vlgmr.msra.gmra.mrb[24].mxu0 %vm353_vm14, %v3128_v21 }
0x3f19   :  { %6982 = vmatpush3.bf16.msra.mxu0 %v8100_v61  ;;  %6590 = vmatprep.mubr.msk.f32.mxu0 %vm7575_vm15, %v7576_v7 }
0x3f1a   :  { %6983 = vmatprep.subr.bf16.mxu0 %v7574_v6 }
0x3f1d   :  { %6985 = vmatpush3.bf16.msra.mxu0 %v8110_v22 }
0x3f1e   :  { %6992 = vmatprep.subr.bf16.mxu0 %v7574_v6 }
0x3feb   :  { %v3210_v23 = vpop.f32.mrb[24].mxu0 }
0x3fec   :  { %v3211_v62 = vadd.f32 %v8072_v9, %v3210_v23  ;;  %v6570_v8 = vpop.f32.mrb[25].mxu0 }
0x3fee   :  { %7336 = vtanh.f32 %v3211_v62  ;;  %v5958_v18 = vmul.f32 -1.442695, %v3211_v62 }
0x3ff0   :  { %7338 = vpow2.f32 %v5958_v18 }
0x3ff8   :  { %v7337_v24 = vpop.eup %7336 }
0x3ff9   :  { %3222 = vrot.lane.b32.xlu0 %v7337_v24, %s7577_s17 }
0x3ffa   :  { %v7339_v61 = vpop.eup %7338 }
0x3ffb   :  { %v3217_v1 = vadd.f32 1.0, %v7339_v61 }
0x3ffd   :  { %7340 = vrcp.f32 %v3217_v1 }
0x4007   :  { %v7341_v25 = vpop.eup %7340 }
0x406b   :  { %v3223_v32 = vpop.permute.xlu0 %3222 }
0x406c   :  { %v3225_v26 = vmul.f32 %v7341_v25, %v3223_v32 }
0x406e   :  { %7342 = vtanh.f32 %v3225_v26  ;;  %v3325_v9 = vrot.slane %v3225_v26, 7 }
0x4078   :  { %v7343_v22 = vpop.eup %7342 }
0x4079   :  { %3228 = vrot.lane.b32.xlu1 %v7343_v22, %s7578_s18 }
0x40eb   :  { %v3229_v30 = vpop.permute.xlu1 %3228 }
0x40ec   :  { %v3231_v34 = vmul.f32 %v7341_v25, %v3229_v30 }
0x40ee   :  { %3233 = vrot.lane.b32.xlu0 %v3231_v34, %s7579_s19 }
0x40f2   :  { %3326 = vrot.lane.b32.xlu0 %v3325_v9, %s7579_s19 }
0x4160   :  { %v3234_v37 = vpop.permute.xlu0 %3233 }
0x4161   :  { %3236 = vst.msk [vmem:[#allocation3] sm:$0x1] %vm510_vm0, %v3234_v37  ;;  %6580 = vmatmul.mubr.msk.f32.vlgmr.msra.gmra.mrb[24].mxu1 %vm353_vm14, %v3234_v37 }
0x4162   :  { %6988 = vmatpush3.bf16.msra.mxu1 %v8126_v28  ;;  %6601 = vmatprep.mubr.msk.f32.mxu1 %vm7575_vm15, %v7576_v7 }
0x4163   :  { %6989 = vmatprep.subr.bf16.mxu1 %v7574_v6 }
0x4166   :  { %6991 = vmatpush3.bf16.msra.mxu1 %v8129_v31  ;;  %v3327_v31 = vpop.permute.xlu0 %3326 }
0x4167   :  { %6998 = vmatprep.subr.bf16.mxu1 %v7574_v6 }
0x4234   :  { %v3309_v43 = vpop.f32.mrb[24].mxu1 }
0x4235   :  { %v3314_v46 = vrot.slane %v3309_v43, 7  ;;  %v6581_v48 = vpop.f32.mrb[25].mxu1 }
0x4237   :  { %v3316_v49 = vadd.f32 %v3314_v46, %v3211_v62 }
0x4239   :  { %7344 = vtanh.f32 %v3316_v49  ;;  %v5960_v50 = vmul.f32 -1.442695, %v3316_v49 }
0x423b   :  { %7346 = vpow2.f32 %v5960_v50 }
0x4243   :  { %v7345_v40 = vpop.eup %7344 }
0x4244   :  { %3331 = vrot.lane.b32.xlu1 %v7345_v40, %s7577_s17 }
0x4245   :  { %v7347_v28 = vpop.eup %7346 }
0x4246   :  { %v3320_v51 = vadd.f32 1.0, %v7347_v28 }
0x4248   :  { %7348 = vrcp.f32 %v3320_v51 }
0x4252   :  { %v7349_v53 = vpop.eup %7348 }
0x4253   :  { %v3329_v55 = vmul.f32 %v7349_v53, %v3327_v31 }
0x42b6   :  { %v3332_v54 = vpop.permute.xlu1 %3331 }
0x42b7   :  { %v3334_v2 = vmul.f32 %v7349_v53, %v3332_v54 }
0x42b9   :  { %3336 = vrot.lane.b32.xlu1 %v3334_v2, %s7579_s19 }
0x432b   :  { %v3337_v29 = vpop.permute.xlu1 %3336 }
0x432c   :  { %v3339_v56 = vadd.f32 %v3337_v29, %v3329_v55 }
0x432e   :  { %7350 = vtanh.f32 %v3339_v56 }
0x4338   :  { %v7351_v27 = vpop.eup %7350 }
0x4339   :  { %3342 = vrot.lane.b32.xlu0 %v7351_v27, %s7577_s17 }
0x43ab   :  { %v3343_v58 = vpop.permute.xlu0 %3342 }
0x43ac   :  { %v3345_v10 = vmul.f32 %v7349_v53, %v3343_v58  ;;  %v5839_v58 = vld [vmem:[%s8707_s0 + $0x28] sm:$0xff] }
0x43ae   :  { %3347 = vrot.lane.b32.xlu1 %v3345_v10, %s7579_s19 }
0x4420   :  { %v3348_v36 = vpop.permute.xlu1 %3347 }
0x4421   :  { %3350 = vst.msk [vmem:[#allocation3] sm:$0x2] %vm625_vm1, %v3348_v36 }
0x4428   :  { %v3351_v59 = vld [vmem:[#allocation3] sm:$0x3] }
0x4429   :  { %6591 = vmatmul.mubr.msk.f32.vlgmr.msra.gmra.mrb[26].mxu0 %vm353_vm14, %v3351_v59  ;;  %v5836_v59 = vld [vmem:[%s8707_s0 + $0x18] sm:$0xff] }
0x442a   :  { %6994 = vmatpush3.bf16.msra.mxu0 %v8150_v0  ;;  %6612 = vmatprep.mubr.msk.f32.mxu0 %vm7575_vm15, %v7576_v7 }
0x442b   :  { %6995 = vmatprep.subr.bf16.mxu0 %v7574_v6 }
0x442e   :  { %6997 = vmatpush3.bf16.msra.mxu0 %v8160_v11 }
0x442f   :  { %7004 = vmatprep.subr.bf16.mxu0 %v7574_v6 }
0x44fc   :  { %v3432_v60 = vpop.f32.mrb[26].mxu0 }
0x44fd   :  { %v3433_v14 = vadd.f32 %v8122_v13, %v3432_v60  ;;  %v6592_v63 = vpop.f32.mrb[27].mxu0  ;;  %v5842_v60 = vld [vmem:[%s8707_s0 + $0x38] sm:$0xff] }
0x44ff   :  { %7352 = vtanh.f32 %v3433_v14  ;;  %v5968_v42 = vmul.f32 -1.442695, %v3433_v14 }
0x4501   :  { %7354 = vpow2.f32 %v5968_v42  ;;  %v7534_v42 = vld [vmem:[%s8708_s1] ss:$0 sm:$0xff] }
0x4509   :  { %v7353_v3 = vpop.eup %7352 }
0x450a   :  { %3444 = vrot.lane.b32.xlu0 %v7353_v3, %s7577_s17 }
0x450b   :  { %v7355_v0 = vpop.eup %7354 }
0x450c   :  { %v3439_v12 = vadd.f32 1.0, %v7355_v0 }
0x450e   :  { %7356 = vrcp.f32 %v3439_v12  ;;  %v52_v12 = vld [vmem:[%s8709_s2 + $0x8] sm:$0xff] }
0x4518   :  { %v7357_v4 = vpop.eup %7356 }
0x457c   :  { %v3445_v17 = vpop.permute.xlu0 %3444 }
0x457d   :  { %v3447_v20 = vmul.f32 %v7357_v4, %v3445_v17 }
0x457f   :  { %7358 = vtanh.f32 %v3447_v20  ;;  %v3547_v13 = vrot.slane %v3447_v20, 7 }
0x4589   :  { %v7359_v11 = vpop.eup %7358 }
0x458a   :  { %3450 = vrot.lane.b32.xlu1 %v7359_v11, %s7578_s18  ;;  %v7535_v11 = vld [vmem:[%s8708_s1 + $0x1] ss:$0 sm:$0xff] }
0x45fc   :  { %v3451_v21 = vpop.permute.xlu1 %3450 }
0x45fd   :  { %v3453_v23 = vmul.f32 %v7357_v4, %v3451_v21 }
0x45ff   :  { %3455 = vrot.lane.b32.xlu0 %v3453_v23, %s7579_s19  ;;  %v7536_v23 = vld [vmem:[%s8708_s1 + $0x2] ss:$0 sm:$0xff] }
0x4603   :  { %3548 = vrot.lane.b32.xlu0 %v3547_v13, %s7579_s19 }
0x4671   :  { %v3456_v62 = vpop.permute.xlu0 %3455 }
0x4672   :  { %3458 = vst.msk [vmem:[#allocation3] sm:$0x1] %vm510_vm0, %v3456_v62  ;;  %6602 = vmatmul.mubr.msk.f32.vlgmr.msra.gmra.mrb[26].mxu1 %vm353_vm14, %v3456_v62 }
0x4673   :  { %7000 = vmatpush3.bf16.msra.mxu1 %v8180_v39  ;;  %6623 = vmatprep.mubr.msk.f32.mxu1 %vm7575_vm15, %v7576_v7 }
0x4674   :  { %7001 = vmatprep.subr.bf16.mxu1 %v7574_v6 }
0x4677   :  { %7003 = vmatpush3.bf16.msra.mxu1 %v8183_v16  ;;  %v3549_v16 = vpop.permute.xlu0 %3548 }
0x4678   :  { %7010 = vmatprep.subr.bf16.mxu1 %v7574_v6 }
0x4745   :  { %v3531_v8 = vpop.f32.mrb[26].mxu1 }
0x4746   :  { %v3536_v24 = vrot.slane %v3531_v8, 7  ;;  %v6603_v18 = vpop.f32.mrb[27].mxu1 }
0x4747   :  { %v7537_v18 = vld [vmem:[%s8708_s1 + $0x3] ss:$0 sm:$0xff] }
0x4748   :  { %v3538_v61 = vadd.f32 %v3536_v24, %v3433_v14 }
0x474a   :  { %7360 = vtanh.f32 %v3538_v61  ;;  %v5970_v25 = vmul.f32 -1.442695, %v3538_v61 }
0x474c   :  { %7362 = vpow2.f32 %v5970_v25 }
0x4754   :  { %v7361_v1 = vpop.eup %7360 }
0x4755   :  { %3553 = vrot.lane.b32.xlu1 %v7361_v1, %s7577_s17 }
0x4756   :  { %v7363_v39 = vpop.eup %7362 }
0x4757   :  { %v3542_v32 = vadd.f32 1.0, %v7363_v39 }
0x4759   :  { %7364 = vrcp.f32 %v3542_v32 }
0x4763   :  { %v7365_v26 = vpop.eup %7364 }
0x4764   :  { %v3551_v34 = vmul.f32 %v7365_v26, %v3549_v16 }
0x47c7   :  { %v3554_v22 = vpop.permute.xlu1 %3553 }
0x47c8   :  { %v3556_v30 = vmul.f32 %v7365_v26, %v3554_v22 }
0x47ca   :  { %3558 = vrot.lane.b32.xlu1 %v3556_v30, %s7579_s19 }
0x483c   :  { %v3559_v9 = vpop.permute.xlu1 %3558 }
0x483d   :  { %v3561_v37 = vadd.f32 %v3559_v9, %v3551_v34 }
0x483f   :  { %7366 = vtanh.f32 %v3561_v37 }
0x4849   :  { %v7367_v43 = vpop.eup %7366 }
0x484a   :  { %3564 = vrot.lane.b32.xlu0 %v7367_v43, %s7577_s17 }
0x48bc   :  { %v3565_v46 = vpop.permute.xlu0 %3564 }
0x48bd   :  { %v3567_v48 = vmul.f32 %v7365_v26, %v3565_v46 }
0x48bf   :  { %3569 = vrot.lane.b32.xlu1 %v3567_v48, %s7579_s19 }
0x4931   :  { %v3570_v49 = vpop.permute.xlu1 %3569 }
0x4932   :  { %3572 = vst.msk [vmem:[#allocation3] sm:$0x2] %vm625_vm1, %v3570_v49 }
0x4939   :  { %v3573_v40 = vld [vmem:[#allocation3] sm:$0x3] }
0x493a   :  { %6613 = vmatmul.mubr.msk.f32.vlgmr.msra.gmra.mrb[28].mxu0 %vm353_vm14, %v3573_v40 }
0x493b   :  { %6634 = vmatprep.mubr.msk.f32.mxu0 %vm7575_vm15, %v7576_v7 }
0x4a0d   :  { %v3654_v50 = vpop.f32.mrb[28].mxu0 }
0x4a0e   :  { %v8262_v28 = vadd.f32 %v8176_v19, %v3654_v50  ;;  %v6614_v51 = vpop.f32.mrb[29].mxu0  ;;  %v54_v19 = vld [vmem:[%s8707_s0 + $0x8] sm:$0xff] }
0x4a10   :  { %7368 = vtanh.f32 %v8262_v28  ;;  %v5978_v54 = vmul.f32 -1.442695, %v8262_v28 }
0x4a12   :  { %7370 = vpow2.f32 %v5978_v54 }
0x4a1a   :  { %v7369_v53 = vpop.eup %7368 }
0x4a1b   :  { %3666 = vrot.lane.b32.xlu0 %v7369_v53, %s7577_s17 }
0x4a1c   :  { %v7371_v2 = vpop.eup %7370 }
0x4a1d   :  { %v3661_v31 = vadd.f32 1.0, %v7371_v2 }
0x4a1f   :  { %7372 = vrcp.f32 %v3661_v31 }
0x4a29   :  { %v7373_v55 = vpop.eup %7372 }
0x4a8d   :  { %v3667_v29 = vpop.permute.xlu0 %3666 }
0x4a8e   :  { %v3669_v56 = vmul.f32 %v7373_v55, %v3667_v29 }
0x4a90   :  { %7374 = vtanh.f32 %v3669_v56  ;;  %v3769_v14 = vrot.slane %v3669_v56, 7 }
0x4a9a   :  { %v7375_v27 = vpop.eup %7374 }
0x4a9b   :  { %3672 = vrot.lane.b32.xlu1 %v7375_v27, %s7578_s18 }
0x4a9f   :  { %63 = vperm.xlu1 %7137, %v54_v19  }
0x4aa3   :  { %107 = vperm.xlu1 %7137, %v5839_v58  }
0x4b0d   :  { %v3673_v10 = vpop.permute.xlu1 %3672 }
0x4b0e   :  { %v3675_v36 = vmul.f32 %v7373_v55, %v3673_v10 }
0x4b10   :  { %3677 = vrot.lane.b32.xlu0 %v3675_v36, %s7579_s19 }
0x4b14   :  { %85 = vperm.xlu0 %7136, %v5836_v59  }
0x4b18   :  { %129 = vperm.xlu0 %7136, %v5842_v60  }
0x4b1c   :  { %3770 = vrot.lane.b32.xlu0 %v3769_v14, %s7579_s19 }
0x4b1e   :  { %v64_v3 = vpop.permute.xlu1 %63 }
0x4b1f   :  { %v71_v0 = vmul.f32 %v7534_v42, %v64_v3 }
0x4b21   :  { %v73_v20 = vadd.f32 %v71_v0, %v52_v12 }
0x4b22   :  { %v108_v4 = vpop.permute.xlu1 %107 }
0x4b23   :  { %v115_v13 = vmul.f32 %v7536_v23, %v108_v4 }
0x4b82   :  { %v3678_v63 = vpop.permute.xlu0 %3677 }
0x4b83   :  { %3680 = vst.msk [vmem:[#allocation3] sm:$0x1] %vm510_vm0, %v3678_v63  ;;  %6624 = vmatmul.mubr.msk.f32.vlgmr.msra.gmra.mrb[28].mxu1 %vm353_vm14, %v3678_v63 }
0x4b84   :  { %6645 = vmatprep.mubr.msk.f32.mxu1 %vm7575_vm15, %v7576_v7 }
0x4b93   :  { %v86_v17 = vpop.permute.xlu0 %85 }
0x4b94   :  { %v93_v21 = vmul.f32 %v7535_v11, %v86_v17 }
0x4b96   :  { %v95_v62 = vadd.f32 %v93_v21, %v73_v20 }
0x4b97   :  { %v130_v8 = vpop.permute.xlu0 %129 }
0x4b98   :  { %v117_v24 = vadd.f32 %v115_v13, %v95_v62  ;;  %v137_v61 = vmul.f32 %v7537_v18, %v130_v8 }
0x4b9a   :  { %v8301_v1 = vadd.f32 %v137_v61, %v117_v24 }
0x4b9c   :  { %v250_v25 = vand.u32 2139095040, %v8301_v1  ;;  %v247_v22 = vand.u32 2147483647, %v8301_v1  ;;  %vm249_vm9 = vcmp.lt.s32.totalorder %v8301_v1, 0 }
0x4b9e   :  { %v251_v39 = vshrl.u32 %v250_v25, 23  ;;  %v254_v9 = vand.u32 8388607, %v247_v22  ;;  %vm248_vm10 = vcmp.le.f32.partialorder %v247_v22, 0.7853982 }
0x4ba0   :  { %v5848_v32 = vadd.s32 4294967169, %v251_v39  ;;  %v255_v31 = vor.u32 8388608, %v254_v9 }
0x4ba2   :  { %v257_v26 = vadd.s32 1, %v5848_v32 }
0x4ba4   :  { %vm258_vm2 = vcmp.gt.s32.totalorder %v257_v26, 0 }
0x4ba5   :  { %v259_v30 = vsel %vm258_vm2, %v257_v26, 0 }
0x4ba6   :  { %v261_v16 = vand.u32 31, %v259_v30  ;;  %v260_v37 = vshrl.u32 %v259_v30, 5 }
0x4ba8   :  { %v262_v34 = vsub.s32 32, %v261_v16  ;;  %v264_v43 = vshll.u32 %v7568_v33, %v261_v16  ;;  %v267_v46 = vshll.u32 %v7569_v35, %v261_v16  ;;  %v270_v40 = vshll.u32 %v7570_v38, %v261_v16 }
0x4ba9   :  { %v273_v51 = vshll.u32 %v7571_v41, %v261_v16  ;;  %v276_v54 = vshll.u32 %v7572_v44, %v261_v16  ;;  %vm279_vm3 = vcmp.lt.s32.totalorder %v260_v37, 1  ;;  %vm282_vm4 = vcmp.lt.s32.totalorder %v260_v37, 4 }
0x4baa   :  { %v265_v48 = vshrl.u32 %v7569_v35, %v262_v34  ;;  %v268_v49 = vshrl.u32 %v7570_v38, %v262_v34  ;;  %v271_v50 = vshrl.u32 %v7571_v41, %v262_v34  ;;  %v274_v53 = vshrl.u32 %v7572_v44, %v262_v34 }
0x4bab   :  { %v277_v2 = vshrl.u32 %v7573_v47, %v262_v34  ;;  %v263_v10 = vshrl.u32 %v7568_v33, %v262_v34  ;;  %vm281_vm5 = vcmp.lt.s32.totalorder %v260_v37, 3  ;;  %vm280_vm6 = vcmp.lt.s32.totalorder %v260_v37, 2 }
0x4bac   :  { %v266_v55 = vor.u32 %v265_v48, %v264_v43  ;;  %v269_v29 = vor.u32 %v268_v49, %v267_v46  ;;  %v272_v56 = vor.u32 %v271_v50, %v270_v40  ;;  %v275_v27 = vor.u32 %v274_v53, %v273_v51 }
0x4bad   :  { %v278_v35 = vor.u32 %v277_v2, %v276_v54  ;;  %v295_v47 = vshll.u32 %v255_v31, 8 }
0x4bae   :  { %v284_v19 = vsel %vm282_vm4, %v272_v56, 2102212464  ;;  %v287_v38 = vsel %vm279_vm3, %v266_v55, %v269_v29  ;;  %v291_v58 = vsel %vm279_vm3, %v269_v29, %v272_v56  ;;  %v288_v41 = vsel %vm282_vm4, %v275_v27, 920167782 }
0x4baf   :  { %v292_v36 = vsel %vm282_vm4, %v278_v35, 1326507024  ;;  %v289_v44 = vsel %vm281_vm5, %v272_v56, %v288_v41  ;;  %v283_v60 = vsel %vm279_vm3, %v263_v10, %v266_v55  ;;  %v285_v14 = vsel %vm281_vm5, %v269_v29, %v284_v19 }
0x4bb0   :  { %v293_v59 = vsel %vm281_vm5, %v275_v27, %v292_v36  ;;  %v290_v63 = vsel %vm280_vm6, %v287_v38, %v289_v44  ;;  %v286_v17 = vsel %vm280_vm6, %v283_v60, %v285_v14  ;;  %vm339_vm3 = vweird.f32 %v8301_v1 }
0x4bb1   :  { %v294_v3 = vsel %vm280_vm6, %v291_v58, %v293_v59  ;;  %v8321_v12 = vmul.u32.u64.low %v295_v47, %v290_v63  ;;  %v8322_v4 = vmul.u32.u64.high %v295_v47, %v290_v63, %v8321_v12  ;;  %v302_v20 = vmul.u32 %v295_v47, %v286_v17 }
0x4bb2   :  { %v8318_v42 = vmul.u32.u64.low %v295_v47, %v294_v3  ;;  %v8319_v0 = vmul.u32.u64.high %v295_v47, %v294_v3, %v8318_v42 }
0x4bb3   :  { %v305_v33 = vadd.s32 1, %v8322_v4 }
0x4bb4   :  { %vm304_vm7 = vc.u32 %v8319_v0, %v8321_v12  ;;  %v303_v32 = vadd.s32 %v8321_v12, %v8319_v0  ;;  %v3771_v12 = vpop.permute.xlu0 %3770 }
0x4bb5   :  { %v306_v11 = vsel %vm304_vm7, %v305_v33, %v8322_v4 }
0x4bb6   :  { %v307_v21 = vadd.s32 %v306_v11, %v302_v20 }
0x4bb8   :  { %v308_v23 = vadd.s32 536870912, %v307_v21 }
0x4bba   :  { %v309_v13 = vshrl.u32 %v308_v23, 30 }
0x4bbc   :  { %v310_v62 = vshll.u32 %v309_v13, 30  ;;  %v333_v50 = vsub.s32 4, %v309_v13 }
0x4bbe   :  { %v311_v8 = vsub.s32 %v307_v21, %v310_v62  ;;  %v334_v54 = vsel %vm249_vm9, %v333_v50, %v309_v13  ;;  %v3806_v62 = vld [vmem:[%s8712_s5] sm:$0xff] }
0x4bbf   :  { %v336_v31 = vsel %vm248_vm10, 0, %v334_v54 }
0x4bc0   :  { %v313_v24 = vsub.s32 0, %v311_v8  ;;  %v340_v55 = vadd.s32 3, %v336_v31 }
0x4bc2   :  { %v5849_v18 = vmin.u32 %v313_v24, %v311_v8  ;;  %v341_v29 = vand.u32 3, %v340_v55  ;;  %v3808_v24 = vld [vmem:[%s8712_s5 + $0x10] sm:$0xff] }
0x4bc4   :  { %v315_v61 = vclz %v5849_v18  ;;  %vm346_vm12 = vcmp.eq.s32.totalorder %v341_v29, 2  ;;  %vm343_vm13 = vcmp.eq.s32.totalorder %v341_v29, 0  ;;  %vm342_vm2 = vcmp.lt.s32.totalorder %v341_v29, 2 }
0x4bc6   :  { %v5850_v25 = vadd.s32 4294967294, %v315_v61  ;;  %v3809_v61 = vld [vmem:[%s8712_s5 + $0x18] sm:$0xff] }
0x4bc8   :  { %vm5851_vm8 = vcmp.lt.s32.totalorder %v5850_v25, 0 }
0x4bc9   :  { %v318_v39 = vsel %vm5851_vm8, 0, %v5850_v25 }
0x4bca   :  { %v319_v26 = vsub.s32 32, %v318_v39  ;;  %v323_v30 = vsub.s32 4294967266, %v318_v39  ;;  %v320_v16 = vshll.u32 %v311_v8, %v318_v39  ;;  %v3807_v8 = vld [vmem:[%s8712_s5 + $0x8] sm:$0xff]  ;;  %v8357_v39 = vpack.c.bf16 %v3809_v61, %v3808_v24  ;;  %v5986_v61 = vld [vmem:[%s8712_s5 + $0x20] sm:$0xff] }
0x4bcb   :  { %v8351_v18 = vpack.c.bf16 %v3807_v8, %v3806_v62 }
0x4bcc   :  { %v321_v34 = vshrl.u32 %v303_v32, %v319_v26  ;;  %v324_v9 = vadd.s32 127, %v323_v30 }
0x4bcd   :  { %7006 = vmatpush3.bf16.msra.mxu0 %v8351_v18 }
0x4bce   :  { %v322_v37 = vor.u32 %v321_v34, %v320_v16  ;;  %v325_v43 = vshll.u32 %v324_v9, 23  ;;  %7007 = vmatprep.subr.bf16.mxu0 %v7574_v6 }
0x4bd0   :  { %v326_v46 = vor.u32 4788187, %v325_v43  ;;  %v329_v49 = vcvt.s32.f32 %v322_v37  ;;  %v7538_v37 = vld [vmem:[%s8710_s3] ss:$0 sm:$0xff] }
0x4bd1   :  { %7009 = vmatpush3.bf16.msra.mxu0 %v8357_v39 }
0x4bd2   :  { %v327_v48 = vand.u32 2147483647, %v326_v46  ;;  %7016 = vmatprep.subr.bf16.mxu0 %v7574_v6  ;;  %v7539_v46 = vld [vmem:[%s8711_s4] ss:$0 sm:$0xff] }
0x4bd4   :  { %v330_v40 = vmul.f32 %v329_v49, %v327_v48 }
0x4bd6   :  { %v331_v51 = vxor.u32 2147483648, %v330_v40 }
0x4bd8   :  { %v332_v53 = vsel %vm249_vm9, %v331_v51, %v330_v40 }
0x4bd9   :  { %v335_v2 = vsel %vm248_vm10, %v8301_v1, %v332_v53 }
0x4bda   :  { %7376 = vcosq.f32 %v335_v2 }
0x4bdb   :  { %7378 = vsinq.f32 %v335_v2  ;;  %v8381_v2 = vld [vmem:[%s8714_s7] ss:$0 sm:$0xff] }
0x4be4   :  { %v7377_v56 = vpop.eup %7376 }
0x4be5   :  { %v7379_v27 = vpop.eup %7378  ;;  %v347_v35 = vxor.u32 2147483648, %v7377_v56 }
0x4be6   :  { %v344_v19 = vxor.u32 2147483648, %v7379_v27 }
0x4be7   :  { %v348_v38 = vsel %vm346_vm12, %v347_v35, %v7379_v27 }
0x4be8   :  { %v345_v58 = vsel %vm343_vm13, %v7377_v56, %v344_v19 }
0x4be9   :  { %v349_v22 = vsel %vm342_vm2, %v345_v58, %v348_v38 }
0x4bea   :  { %v350_v10 = vsel %vm339_vm3, nan, %v349_v22 }
0x4beb   :  { %v352_v41 = vsel %vm142_vm11, %v8301_v1, %v350_v10  ;;  %v3913_v10 = vld [vmem:[#allocation5] sm:$0xff]  ;;  %vm1085_vm11 = vcmask 254976  }
0x4bec   :  { %v357_v36 = vsel %vm353_vm14, %v352_v41, 0.0 }
0x4bed   :  { %358 = vadd.xlane.f32.xlu0 %v357_v36  ;;  %v3915_v36 = vld [vmem:[#allocation5 + $0x10] sm:$0xff] }
0x4c56   :  { %v3753_v44 = vpop.f32.mrb[28].mxu1 }
0x4c57   :  { %v3758_v59 = vrot.slane %v3753_v44, 7  ;;  %v6625_v47 = vpop.f32.mrb[29].mxu1 }
0x4c59   :  { %v3760_v60 = vadd.f32 %v3758_v59, %v8262_v28  ;;  %v3916_v59 = vld [vmem:[#allocation5 + $0x18] sm:$0xff] }
0x4c5a   :  { %v8388_v47 = vpack.c.bf16 %v3916_v59, %v3915_v36 }
0x4c5b   :  { %7380 = vtanh.f32 %v3760_v60  ;;  %v5980_v63 = vmul.f32 -1.442695, %v3760_v60 }
0x4c5d   :  { %7382 = vpow2.f32 %v5980_v63 }
0x4c65   :  { %v7381_v14 = vpop.eup %7380 }
0x4c66   :  { %3775 = vrot.lane.b32.xlu1 %v7381_v14, %s7577_s17 }
0x4c67   :  { %v7383_v3 = vpop.eup %7382 }
0x4c68   :  { %v3764_v42 = vadd.f32 1.0, %v7383_v3 }
0x4c6a   :  { %7384 = vrcp.f32 %v3764_v42 }
0x4c74   :  { %v7385_v0 = vpop.eup %7384 }
0x4c75   :  { %v3773_v4 = vmul.f32 %v7385_v0, %v3771_v12 }
0x4c7a   :  { %v359_v20 = vpop.xlane.xlu0 %358 }
0x4c7b   :  { %v362_v11 = vmul.f32 0.03125, %v359_v20 }
0x4c7d   :  { %v364_v21 = vsub.f32 %v352_v41, %v362_v11  ;;  %v3914_v41 = vld [vmem:[#allocation5 + $0x8] sm:$0xff] }
0x4c7e   :  { %v8385_v44 = vpack.c.bf16 %v3914_v41, %v3913_v10 }
0x4c7f   :  { %v366_v23 = vmul.f32 %v364_v21, %v364_v21 }
0x4c80   :  { %7012 = vmatpush3.bf16.msra.mxu1 %v8385_v44 }
0x4c81   :  { %v370_v13 = vsel %vm353_vm14, %v366_v23, 0.0  ;;  %7013 = vmatprep.subr.bf16.mxu1 %v7574_v6 }
0x4c84   :  { %7015 = vmatpush3.bf16.msra.mxu1 %v8388_v47 }
0x4c85   :  { %7022 = vmatprep.subr.bf16.mxu1 %v7574_v6 }
0x4cd8   :  { %v3776_v52 = vpop.permute.xlu1 %3775 }
0x4cd9   :  { %v3778_v1 = vmul.f32 %v7385_v0, %v3776_v52 }
0x4cdb   :  { %3780 = vrot.lane.b32.xlu1 %v3778_v1, %s7579_s19 }
0x4d4d   :  { %v3781_v17 = vpop.permute.xlu1 %3780 }
0x4d4e   :  { %v3783_v33 = vadd.f32 %v3781_v17, %v3773_v4 }
0x4d50   :  { %7386 = vtanh.f32 %v3783_v33 }
0x4d5a   :  { %v7387_v28 = vpop.eup %7386 }
0x4d5b   :  { %3786 = vrot.lane.b32.xlu1 %v7387_v28, %s7577_s17 }
0x4d7f   :  { %371 = vadd.xlane.f32.xlu1 %v370_v13 }
0x4dcd   :  { %v3787_v25 = vpop.permute.xlu1 %3786 }
0x4dce   :  { %v3789_v32 = vmul.f32 %v7385_v0, %v3787_v25  ;;  %v5987_v25 = vld [vmem:[%s8712_s5 + $0x28] sm:$0xff] }
0x4dd0   :  { %3791 = vrot.lane.b32.xlu0 %v3789_v32, %s7579_s19  ;;  %v5988_v32 = vld [vmem:[%s8712_s5 + $0x30] sm:$0xff] }
0x4e0c   :  { %v372_v26 = vpop.xlane.xlu1 %371 }
0x4e0d   :  { %v374_v30 = vmul.f32 0.03125, %v372_v26  ;;  %v8412_v26 = vpack.c.bf16 %v5987_v25, %v5986_v61  ;;  %v5999_v61 = vld [vmem:[%s8712_s5 + $0x58] sm:$0xff] }
0x4e0f   :  { %v376_v16 = vadd.f32 1e-05, %v374_v30  ;;  %v5989_v30 = vld [vmem:[%s8712_s5 + $0x38] sm:$0xff] }
0x4e11   :  { %7388 = vrsqrt.f32 %v376_v16  ;;  %v8418_v16 = vpack.c.bf16 %v5989_v30, %v5988_v32 }
0x4e1b   :  { %v7389_v34 = vpop.eup %7388 }
0x4e1c   :  { %v380_v9 = vmul.f32 %v7389_v34, %v364_v21 }
0x4e1e   :  { %v389_v43 = vmul.f32 %v7538_v37, %v380_v9 }
0x4e20   :  { %v398_v48 = vadd.f32 %v7539_v46, %v389_v43  ;;  %v8431_v46 = vld [vmem:[%s8714_s7 + $0x1] ss:$0 sm:$0xff] }
0x4e22   :  { %400 = vst.msk [vmem:[#allocation2 + $0x8] sm:$0xff] %vm353_vm14, %v398_v48 }
0x4e29   :  { %v3129_v50 = vld [vmem:[#allocation2 + $0x8] sm:$0x3] }
0x4e42   :  { %v3792_v49 = vpop.permute.xlu0 %3791 }
0x4e43   :  { %3794 = vst.msk [vmem:[#allocation3] sm:$0x2] %vm625_vm1, %v3792_v49 }
0x4e4a   :  { %v8371_v40 = vld [vmem:[#allocation3] sm:$0x3] }
0x4e4b   :  { %v3802_v51 = vsub.f32 %v3129_v50, %v8371_v40 }
0x4e4d   :  { %v3803_v53 = vmul.f32 0.5, %v3802_v51 }
0x4e4f   :  { %v3804_v54 = vadd.f32 %v3803_v53, %v8371_v40 }
0x4e51   :  { %6635 = vmatmul.mubr.msk.f32.vlgmr.msra.gmra.mrb[30].mxu0 %vm353_vm14, %v3804_v54 }
0x4e52   :  { %6656 = vmatprep.mubr.msk.f32.mxu0 %vm7575_vm15, %v7576_v7  ;;  %7018 = vmatpush3.bf16.msra.mxu0 %v8412_v26 }
0x4e53   :  { %7019 = vmatprep.subr.bf16.mxu0 %v7574_v6 }
0x4e56   :  { %7021 = vmatpush3.bf16.msra.mxu0 %v8418_v16 }
0x4e57   :  { %7028 = vmatprep.subr.bf16.mxu0 %v7574_v6 }
0x4f24   :  { %v3886_v31 = vpop.f32.mrb[30].mxu0 }
0x4f25   :  { %v3887_v55 = vadd.f32 %v8381_v2, %v3886_v31  ;;  %v6636_v29 = vpop.f32.mrb[31].mxu0 }
0x4f27   :  { %7390 = vtanh.f32 %v3887_v55  ;;  %v5983_v27 = vmul.f32 -1.442695, %v3887_v55 }
0x4f29   :  { %7392 = vpow2.f32 %v5983_v27  ;;  %v4135_v27 = vld [vmem:[#allocation5 + $0x20] sm:$0xff] }
0x4f31   :  { %v7391_v56 = vpop.eup %7390 }
0x4f32   :  { %3898 = vrot.lane.b32.xlu1 %v7391_v56, %s7577_s17 }
0x4f33   :  { %v7393_v35 = vpop.eup %7392 }
0x4f34   :  { %v3893_v19 = vadd.f32 1.0, %v7393_v35  ;;  %v4136_v35 = vld [vmem:[#allocation5 + $0x28] sm:$0xff] }
0x4f36   :  { %7394 = vrcp.f32 %v3893_v19  ;;  %v4137_v19 = vld [vmem:[#allocation5 + $0x30] sm:$0xff] }
0x4f40   :  { %v7395_v38 = vpop.eup %7394 }
0x4fa4   :  { %v3899_v58 = vpop.permute.xlu1 %3898 }
0x4fa5   :  { %v3901_v22 = vmul.f32 %v7395_v38, %v3899_v58  ;;  %v4138_v58 = vld [vmem:[#allocation5 + $0x38] sm:$0xff] }
0x4fa7   :  { %7396 = vtanh.f32 %v3901_v22  ;;  %v4001_v3 = vrot.slane %v3901_v22, 7  ;;  %v8438_v22 = vpack.c.bf16 %v4138_v58, %v4137_v19  ;;  %v4360_v58 = vld [vmem:[#allocation5 + $0x58] sm:$0xff] }
0x4fb1   :  { %v7397_v60 = vpop.eup %7396 }
0x4fb2   :  { %3904 = vrot.lane.b32.xlu0 %v7397_v60, %s7578_s18 }
0x5024   :  { %v3905_v14 = vpop.permute.xlu0 %3904 }
0x5025   :  { %v3907_v63 = vmul.f32 %v7395_v38, %v3905_v14  ;;  %v8435_v38 = vpack.c.bf16 %v4136_v35, %v4135_v27  ;;  %v4358_v27 = vld [vmem:[#allocation5 + $0x48] sm:$0xff]  ;;  %v4359_v35 = vld [vmem:[#allocation5 + $0x50] sm:$0xff] }
0x5027   :  { %3909 = vrot.lane.b32.xlu0 %v3907_v63, %s7579_s19 }
0x502b   :  { %4002 = vrot.lane.b32.xlu0 %v4001_v3, %s7579_s19 }
0x5099   :  { %v3910_v42 = vpop.permute.xlu0 %3909 }
0x509a   :  { %3912 = vst.msk [vmem:[#allocation3] sm:$0x1] %vm510_vm0, %v3910_v42  ;;  %6646 = vmatmul.mubr.msk.f32.vlgmr.msra.gmra.mrb[30].mxu1 %vm353_vm14, %v3910_v42 }
0x509b   :  { %6667 = vmatprep.mubr.msk.f32.mxu1 %vm7575_vm15, %v7576_v7  ;;  %7024 = vmatpush3.bf16.msra.mxu1 %v8435_v38 }
0x509c   :  { %7025 = vmatprep.subr.bf16.mxu1 %v7574_v6 }
0x509d   :  { %v4003_v23 = vpop.permute.xlu0 %4002 }
0x509f   :  { %7027 = vmatpush3.bf16.msra.mxu1 %v8438_v22 }
0x50a0   :  { %7034 = vmatprep.subr.bf16.mxu1 %v7574_v6 }
0x516d   :  { %v3985_v0 = vpop.f32.mrb[30].mxu1 }
0x516e   :  { %v3990_v52 = vrot.slane %v3985_v0, 7  ;;  %v6647_v1 = vpop.f32.mrb[31].mxu1 }
0x5170   :  { %v3992_v12 = vadd.f32 %v3990_v52, %v3887_v55 }
0x5172   :  { %7398 = vtanh.f32 %v3992_v12  ;;  %v5985_v17 = vmul.f32 -1.442695, %v3992_v12 }
0x5174   :  { %7400 = vpow2.f32 %v5985_v17 }
0x517c   :  { %v7399_v4 = vpop.eup %7398 }
0x517d   :  { %4007 = vrot.lane.b32.xlu1 %v7399_v4, %s7577_s17 }
0x517e   :  { %v7401_v33 = vpop.eup %7400 }
0x517f   :  { %v3996_v28 = vadd.f32 1.0, %v7401_v33 }
0x5181   :  { %7402 = vrcp.f32 %v3996_v28 }
0x518b   :  { %v7403_v20 = vpop.eup %7402 }
0x518c   :  { %v4005_v13 = vmul.f32 %v7403_v20, %v4003_v23 }
0x51ef   :  { %v4008_v11 = vpop.permute.xlu1 %4007 }
0x51f0   :  { %v4010_v21 = vmul.f32 %v7403_v20, %v4008_v11 }
0x51f2   :  { %4012 = vrot.lane.b32.xlu1 %v4010_v21, %s7579_s19 }
0x5264   :  { %v4013_v62 = vpop.permute.xlu1 %4012 }
0x5265   :  { %v4015_v8 = vadd.f32 %v4013_v62, %v4005_v13  ;;  %v5996_v13 = vld [vmem:[%s8712_s5 + $0x40] sm:$0xff]  ;;  %v5997_v62 = vld [vmem:[%s8712_s5 + $0x48] sm:$0xff] }
0x5267   :  { %7404 = vtanh.f32 %v4015_v8  ;;  %v5998_v8 = vld [vmem:[%s8712_s5 + $0x50] sm:$0xff] }
0x5268   :  { %v8468_v25 = vpack.c.bf16 %v5999_v61, %v5998_v8 }
0x5271   :  { %v7405_v24 = vpop.eup %7404 }
0x5272   :  { %4018 = vrot.lane.b32.xlu0 %v7405_v24, %s7577_s17  ;;  %v8462_v24 = vpack.c.bf16 %v5997_v62, %v5996_v13 }
0x52e4   :  { %v4019_v34 = vpop.permute.xlu0 %4018 }
0x52e5   :  { %v4021_v9 = vmul.f32 %v7403_v20, %v4019_v34 }
0x52e7   :  { %4023 = vrot.lane.b32.xlu1 %v4021_v9, %s7579_s19 }
0x5359   :  { %v4024_v37 = vpop.permute.xlu1 %4023 }
0x535a   :  { %4026 = vst.msk [vmem:[#allocation3] sm:$0x2] %vm625_vm1, %v4024_v37  ;;  %v8485_v37 = vld [vmem:[%s8714_s7 + $0x2] ss:$0 sm:$0xff] }
0x5361   :  { %v4027_v43 = vld [vmem:[#allocation3] sm:$0x3] }
0x5362   :  { %6657 = vmatmul.mubr.msk.f32.vlgmr.msra.gmra.mrb[32].mxu0 %vm353_vm14, %v4027_v43 }
0x5363   :  { %6678 = vmatprep.mubr.msk.f32.mxu0 %vm7575_vm15, %v7576_v7  ;;  %7030 = vmatpush3.bf16.msra.mxu0 %v8462_v24 }
0x5364   :  { %7031 = vmatprep.subr.bf16.mxu0 %v7574_v6 }
0x5367   :  { %7033 = vmatpush3.bf16.msra.mxu0 %v8468_v25 }
0x5368   :  { %7040 = vmatprep.subr.bf16.mxu0 %v7574_v6 }
0x5435   :  { %v4108_v48 = vpop.f32.mrb[32].mxu0 }
0x5436   :  { %v4109_v49 = vadd.f32 %v8431_v46, %v4108_v48  ;;  %v6658_v50 = vpop.f32.mrb[33].mxu0 }
0x5438   :  { %7406 = vtanh.f32 %v4109_v49  ;;  %v5993_v53 = vmul.f32 -1.442695, %v4109_v49 }
0x543a   :  { %7408 = vpow2.f32 %v5993_v53 }
0x5442   :  { %v7407_v51 = vpop.eup %7406 }
0x5443   :  { %4120 = vrot.lane.b32.xlu0 %v7407_v51, %s7577_s17 }
0x5444   :  { %v7409_v54 = vpop.eup %7408 }
0x5445   :  { %v4115_v31 = vadd.f32 1.0, %v7409_v54 }
0x5447   :  { %7410 = vrcp.f32 %v4115_v31 }
0x5451   :  { %v7411_v55 = vpop.eup %7410 }
0x54b5   :  { %v4121_v29 = vpop.permute.xlu0 %4120 }
0x54b6   :  { %v4123_v56 = vmul.f32 %v7411_v55, %v4121_v29 }
0x54b8   :  { %7412 = vtanh.f32 %v4123_v56  ;;  %v4223_v59 = vrot.slane %v4123_v56, 7  ;;  %v4357_v56 = vld [vmem:[#allocation5 + $0x40] sm:$0xff] }
0x54b9   :  { %v8489_v19 = vpack.c.bf16 %v4358_v27, %v4357_v56 }
0x54c2   :  { %v7413_v10 = vpop.eup %7412 }
0x54c3   :  { %4126 = vrot.lane.b32.xlu1 %v7413_v10, %s7578_s18  ;;  %v8492_v10 = vpack.c.bf16 %v4360_v58, %v4359_v35 }
0x5535   :  { %v4127_v41 = vpop.permute.xlu1 %4126 }
0x5536   :  { %v4129_v36 = vmul.f32 %v7411_v55, %v4127_v41 }
0x5538   :  { %4131 = vrot.lane.b32.xlu0 %v4129_v36, %s7579_s19 }
0x553c   :  { %4224 = vrot.lane.b32.xlu0 %v4223_v59, %s7579_s19 }
0x55aa   :  { %v4132_v60 = vpop.permute.xlu0 %4131 }
0x55ab   :  { %4134 = vst.msk [vmem:[#allocation3] sm:$0x1] %vm510_vm0, %v4132_v60  ;;  %6668 = vmatmul.mubr.msk.f32.vlgmr.msra.gmra.mrb[32].mxu1 %vm353_vm14, %v4132_v60 }
0x55ac   :  { %6689 = vmatprep.mubr.msk.f32.mxu1 %vm7575_vm15, %v7576_v7  ;;  %7036 = vmatpush3.bf16.msra.mxu1 %v8489_v19 }
0x55ad   :  { %7037 = vmatprep.subr.bf16.mxu1 %v7574_v6 }
0x55ae   :  { %v4225_v28 = vpop.permute.xlu0 %4224 }
0x55b0   :  { %7039 = vmatpush3.bf16.msra.mxu1 %v8492_v10 }
0x55b1   :  { %7046 = vmatprep.subr.bf16.mxu1 %v7574_v6 }
0x567e   :  { %v4207_v14 = vpop.f32.mrb[32].mxu1 }
0x567f   :  { %v4212_v63 = vrot.slane %v4207_v14, 7  ;;  %v6669_v3 = vpop.f32.mrb[33].mxu1 }
0x5681   :  { %v4214_v42 = vadd.f32 %v4212_v63, %v4109_v49 }
0x5683   :  { %7414 = vtanh.f32 %v4214_v42  ;;  %v5995_v52 = vmul.f32 -1.442695, %v4214_v42 }
0x5685   :  { %7416 = vpow2.f32 %v5995_v52 }
0x568d   :  { %v7415_v0 = vpop.eup %7414 }
0x568e   :  { %4229 = vrot.lane.b32.xlu1 %v7415_v0, %s7577_s17 }
0x568f   :  { %v7417_v1 = vpop.eup %7416 }
0x5690   :  { %v4218_v12 = vadd.f32 1.0, %v7417_v1 }
0x5692   :  { %7418 = vrcp.f32 %v4218_v12 }
0x569c   :  { %v7419_v4 = vpop.eup %7418 }
0x569d   :  { %v4227_v20 = vmul.f32 %v7419_v4, %v4225_v28 }
0x5700   :  { %v4230_v17 = vpop.permute.xlu1 %4229 }
0x5701   :  { %v4232_v33 = vmul.f32 %v7419_v4, %v4230_v17 }
0x5703   :  { %4234 = vrot.lane.b32.xlu1 %v4232_v33, %s7579_s19 }
0x5775   :  { %v4235_v11 = vpop.permute.xlu1 %4234 }
0x5776   :  { %v4237_v21 = vadd.f32 %v4235_v11, %v4227_v20 }
0x5778   :  { %7420 = vtanh.f32 %v4237_v21 }
0x5782   :  { %v7421_v23 = vpop.eup %7420 }
0x5783   :  { %4240 = vrot.lane.b32.xlu0 %v7421_v23, %s7577_s17 }
0x57f5   :  { %v4241_v32 = vpop.permute.xlu0 %4240 }
0x57f6   :  { %v4243_v30 = vmul.f32 %v7419_v4, %v4241_v32  ;;  %v3805_v32 = vld [vmem:[#allocation2 + $0xa] sm:$0x3] }
0x57f8   :  { %4245 = vrot.lane.b32.xlu1 %v4243_v30, %s7579_s19 }
0x586a   :  { %v4246_v34 = vpop.permute.xlu1 %4245 }
0x586b   :  { %4248 = vst.msk [vmem:[#allocation3] sm:$0x2] %vm625_vm1, %v4246_v34 }
0x5872   :  { %v4249_v9 = vld [vmem:[#allocation3] sm:$0x3] }
0x5873   :  { %6679 = vmatmul.mubr.msk.f32.vlgmr.msra.gmra.mrb[34].mxu0 %vm353_vm14, %v4249_v9 }
0x5874   :  { %7042 = vmatpush3.bf16.msra.mxu0 %v8351_v18  ;;  %6700 = vmatprep.mubr.msk.f32.mxu0 %vm7575_vm15, %v7576_v7 }
0x5875   :  { %7043 = vmatprep.subr.bf16.mxu0 %v7574_v6 }
0x5878   :  { %7045 = vmatpush3.bf16.msra.mxu0 %v8357_v39 }
0x5879   :  { %7052 = vmatprep.subr.bf16.mxu0 %v7574_v6 }
0x5946   :  { %v4330_v43 = vpop.f32.mrb[34].mxu0 }
0x5947   :  { %v4331_v48 = vadd.f32 %v8485_v37, %v4330_v43  ;;  %v6680_v49 = vpop.f32.mrb[35].mxu0 }
0x5949   :  { %7422 = vtanh.f32 %v4331_v48  ;;  %v6003_v51 = vmul.f32 -1.442695, %v4331_v48 }
0x594b   :  { %7424 = vpow2.f32 %v6003_v51 }
0x5953   :  { %v7423_v50 = vpop.eup %7422 }
0x5954   :  { %4342 = vrot.lane.b32.xlu0 %v7423_v50, %s7577_s17 }
0x5955   :  { %v7425_v53 = vpop.eup %7424 }
0x5956   :  { %v4337_v54 = vadd.f32 1.0, %v7425_v53 }
0x5958   :  { %7426 = vrcp.f32 %v4337_v54 }
0x5962   :  { %v7427_v31 = vpop.eup %7426 }
0x59c6   :  { %v4343_v55 = vpop.permute.xlu0 %4342 }
0x59c7   :  { %v4345_v29 = vmul.f32 %v7427_v31, %v4343_v55 }
0x59c9   :  { %7428 = vtanh.f32 %v4345_v29  ;;  %v4445_v60 = vrot.slane %v4345_v29, 7 }
0x59d3   :  { %v7429_v41 = vpop.eup %7428 }
0x59d4   :  { %4348 = vrot.lane.b32.xlu1 %v7429_v41, %s7578_s18 }
0x5a46   :  { %v4349_v36 = vpop.permute.xlu1 %4348 }
0x5a47   :  { %v4351_v59 = vmul.f32 %v7427_v31, %v4349_v36 }
0x5a49   :  { %4353 = vrot.lane.b32.xlu0 %v4351_v59, %s7579_s19 }
0x5a4d   :  { %4446 = vrot.lane.b32.xlu0 %v4445_v60, %s7579_s19 }
0x5abb   :  { %v4354_v14 = vpop.permute.xlu0 %4353 }
0x5abc   :  { %4356 = vst.msk [vmem:[#allocation3] sm:$0x1] %vm510_vm0, %v4354_v14  ;;  %6690 = vmatmul.mubr.msk.f32.vlgmr.msra.gmra.mrb[34].mxu1 %vm353_vm14, %v4354_v14 }
0x5abd   :  { %7048 = vmatpush3.bf16.msra.mxu1 %v8385_v44  ;;  %6711 = vmatprep.mubr.msk.f32.mxu1 %vm7575_vm15, %v7576_v7 }
0x5abe   :  { %7049 = vmatprep.subr.bf16.mxu1 %v7574_v6 }
0x5abf   :  { %v4447_v20 = vpop.permute.xlu0 %4446 }
0x5ac1   :  { %7051 = vmatpush3.bf16.msra.mxu1 %v8388_v47 }
0x5ac2   :  { %7058 = vmatprep.subr.bf16.mxu1 %v7574_v6 }
0x5b8f   :  { %v4429_v63 = vpop.f32.mrb[34].mxu1 }
0x5b90   :  { %v4434_v3 = vrot.slane %v4429_v63, 7  ;;  %v6691_v42 = vpop.f32.mrb[35].mxu1 }
0x5b92   :  { %v4436_v0 = vadd.f32 %v4434_v3, %v4331_v48 }
0x5b94   :  { %7430 = vtanh.f32 %v4436_v0  ;;  %v6005_v1 = vmul.f32 -1.442695, %v4436_v0 }
0x5b96   :  { %7432 = vpow2.f32 %v6005_v1 }
0x5b9e   :  { %v7431_v52 = vpop.eup %7430 }
0x5b9f   :  { %4451 = vrot.lane.b32.xlu1 %v7431_v52, %s7577_s17 }
0x5ba0   :  { %v7433_v12 = vpop.eup %7432 }
0x5ba1   :  { %v4440_v4 = vadd.f32 1.0, %v7433_v12 }
0x5ba3   :  { %7434 = vrcp.f32 %v4440_v4 }
0x5bad   :  { %v7435_v17 = vpop.eup %7434 }
0x5bae   :  { %v4449_v11 = vmul.f32 %v7435_v17, %v4447_v20 }
0x5c11   :  { %v4452_v33 = vpop.permute.xlu1 %4451 }
0x5c12   :  { %v4454_v28 = vmul.f32 %v7435_v17, %v4452_v33 }
0x5c14   :  { %4456 = vrot.lane.b32.xlu1 %v4454_v28, %s7579_s19 }
0x5c86   :  { %v4457_v21 = vpop.permute.xlu1 %4456 }
0x5c87   :  { %v4459_v23 = vadd.f32 %v4457_v21, %v4449_v11 }
0x5c89   :  { %7436 = vtanh.f32 %v4459_v23 }
0x5c93   :  { %v7437_v13 = vpop.eup %7436 }
0x5c94   :  { %4462 = vrot.lane.b32.xlu0 %v7437_v13, %s7577_s17 }
0x5d06   :  { %v4463_v62 = vpop.permute.xlu0 %4462 }
0x5d07   :  { %v4465_v8 = vmul.f32 %v7435_v17, %v4463_v62 }
0x5d09   :  { %4467 = vrot.lane.b32.xlu1 %v4465_v8, %s7579_s19 }
0x5d7b   :  { %v4468_v61 = vpop.permute.xlu1 %4467 }
0x5d7c   :  { %4470 = vst.msk [vmem:[#allocation3] sm:$0x2] %vm625_vm1, %v4468_v61 }
0x5d83   :  { %v8513_v30 = vld [vmem:[#allocation3] sm:$0x3] }
0x5d84   :  { %v4478_v34 = vsub.f32 %v3805_v32, %v8513_v30 }
0x5d86   :  { %v4479_v9 = vmul.f32 0.5, %v4478_v34 }
0x5d88   :  { %v4480_v43 = vadd.f32 %v4479_v9, %v8513_v30 }
0x5d8a   :  { %6701 = vmatmul.mubr.msk.f32.vlgmr.msra.gmra.mrb[36].mxu0 %vm353_vm14, %v4480_v43 }
0x5d8b   :  { %7054 = vmatpush3.bf16.msra.mxu0 %v8412_v26  ;;  %6722 = vmatprep.mubr.msk.f32.mxu0 %vm7575_vm15, %v7576_v7 }
0x5d8c   :  { %7055 = vmatprep.subr.bf16.mxu0 %v7574_v6 }
0x5d8f   :  { %7057 = vmatpush3.bf16.msra.mxu0 %v8418_v16 }
0x5d90   :  { %7064 = vmatprep.subr.bf16.mxu0 %v7574_v6 }
0x5e5d   :  { %v4562_v48 = vpop.f32.mrb[36].mxu0 }
0x5e5e   :  { %v4563_v49 = vadd.f32 %v8381_v2, %v4562_v48  ;;  %v6702_v50 = vpop.f32.mrb[37].mxu0 }
0x5e60   :  { %7438 = vtanh.f32 %v4563_v49  ;;  %v6008_v53 = vmul.f32 -1.442695, %v4563_v49 }
0x5e62   :  { %7440 = vpow2.f32 %v6008_v53 }
0x5e6a   :  { %v7439_v51 = vpop.eup %7438 }
0x5e6b   :  { %4574 = vrot.lane.b32.xlu0 %v7439_v51, %s7577_s17 }
0x5e6c   :  { %v7441_v54 = vpop.eup %7440 }
0x5e6d   :  { %v4569_v31 = vadd.f32 1.0, %v7441_v54 }
0x5e6f   :  { %7442 = vrcp.f32 %v4569_v31 }
0x5e79   :  { %v7443_v55 = vpop.eup %7442 }
0x5edd   :  { %v4575_v29 = vpop.permute.xlu0 %4574 }
0x5ede   :  { %v4577_v56 = vmul.f32 %v7443_v55, %v4575_v29 }
0x5ee0   :  { %7444 = vtanh.f32 %v4577_v56  ;;  %v4677_v41 = vrot.slane %v4577_v56, 7 }
0x5eea   :  { %v7445_v27 = vpop.eup %7444 }
0x5eeb   :  { %4580 = vrot.lane.b32.xlu1 %v7445_v27, %s7578_s18 }
0x5f5d   :  { %v4581_v35 = vpop.permute.xlu1 %4580 }
0x5f5e   :  { %v4583_v58 = vmul.f32 %v7443_v55, %v4581_v35 }
0x5f60   :  { %4585 = vrot.lane.b32.xlu0 %v4583_v58, %s7579_s19 }
0x5f64   :  { %4678 = vrot.lane.b32.xlu0 %v4677_v41, %s7579_s19 }
0x5fd2   :  { %v4586_v36 = vpop.permute.xlu0 %4585 }
0x5fd3   :  { %4588 = vst.msk [vmem:[#allocation3] sm:$0x1] %vm510_vm0, %v4586_v36  ;;  %6712 = vmatmul.mubr.msk.f32.vlgmr.msra.gmra.mrb[36].mxu1 %vm353_vm14, %v4586_v36 }
0x5fd4   :  { %7060 = vmatpush3.bf16.msra.mxu1 %v8435_v38  ;;  %6733 = vmatprep.mubr.msk.f32.mxu1 %vm7575_vm15, %v7576_v7 }
0x5fd5   :  { %7061 = vmatprep.subr.bf16.mxu1 %v7574_v6 }
0x5fd6   :  { %v4679_v17 = vpop.permute.xlu0 %4678 }
0x5fd8   :  { %7063 = vmatpush3.bf16.msra.mxu1 %v8438_v22 }
0x5fd9   :  { %7070 = vmatprep.subr.bf16.mxu1 %v7574_v6 }
0x60a6   :  { %v4661_v59 = vpop.f32.mrb[36].mxu1 }
0x60a7   :  { %v4666_v60 = vrot.slane %v4661_v59, 7  ;;  %v6713_v14 = vpop.f32.mrb[37].mxu1 }
0x60a9   :  { %v4668_v63 = vadd.f32 %v4666_v60, %v4563_v49 }
0x60ab   :  { %7446 = vtanh.f32 %v4668_v63  ;;  %v6010_v42 = vmul.f32 -1.442695, %v4668_v63 }
0x60ad   :  { %7448 = vpow2.f32 %v6010_v42 }
0x60b5   :  { %v7447_v3 = vpop.eup %7446 }
0x60b6   :  { %4683 = vrot.lane.b32.xlu1 %v7447_v3, %s7577_s17 }
0x60b7   :  { %v7449_v0 = vpop.eup %7448 }
0x60b8   :  { %v4672_v52 = vadd.f32 1.0, %v7449_v0 }
0x60ba   :  { %7450 = vrcp.f32 %v4672_v52 }
0x60c4   :  { %v7451_v1 = vpop.eup %7450 }
0x60c5   :  { %v4681_v33 = vmul.f32 %v7451_v1, %v4679_v17 }
0x6128   :  { %v4684_v12 = vpop.permute.xlu1 %4683 }
0x6129   :  { %v4686_v4 = vmul.f32 %v7451_v1, %v4684_v12 }
0x612b   :  { %4688 = vrot.lane.b32.xlu1 %v4686_v4, %s7579_s19 }
0x619d   :  { %v4689_v28 = vpop.permute.xlu1 %4688 }
0x619e   :  { %v4691_v20 = vadd.f32 %v4689_v28, %v4681_v33 }
0x61a0   :  { %7452 = vtanh.f32 %v4691_v20 }
0x61aa   :  { %v7453_v11 = vpop.eup %7452 }
0x61ab   :  { %4694 = vrot.lane.b32.xlu0 %v7453_v11, %s7577_s17 }
0x621d   :  { %v4695_v21 = vpop.permute.xlu0 %4694 }
0x621e   :  { %v4697_v23 = vmul.f32 %v7451_v1, %v4695_v21 }
0x6220   :  { %4699 = vrot.lane.b32.xlu1 %v4697_v23, %s7579_s19 }
0x6292   :  { %v4700_v13 = vpop.permute.xlu1 %4699 }
0x6293   :  { %4702 = vst.msk [vmem:[#allocation3] sm:$0x2] %vm625_vm1, %v4700_v13 }
0x629a   :  { %v4703_v62 = vld [vmem:[#allocation3] sm:$0x3] }
0x629b   :  { %6723 = vmatmul.mubr.msk.f32.vlgmr.msra.gmra.mrb[38].mxu0 %vm353_vm14, %v4703_v62 }
0x629c   :  { %7066 = vmatpush3.bf16.msra.mxu0 %v8462_v24  ;;  %6744 = vmatprep.mubr.msk.f32.mxu0 %vm7575_vm15, %v7576_v7 }
0x629d   :  { %7067 = vmatprep.subr.bf16.mxu0 %v7574_v6 }
0x62a0   :  { %7069 = vmatpush3.bf16.msra.mxu0 %v8468_v25 }
0x62a1   :  { %7076 = vmatprep.subr.bf16.mxu0 %v7574_v6 }
0x636e   :  { %v4784_v8 = vpop.f32.mrb[38].mxu0 }
0x636f   :  { %v4785_v61 = vadd.f32 %v8431_v46, %v4784_v8  ;;  %v6724_v32 = vpop.f32.mrb[39].mxu0 }
0x6371   :  { %7454 = vtanh.f32 %v4785_v61  ;;  %v6018_v9 = vmul.f32 -1.442695, %v4785_v61 }
0x6373   :  { %7456 = vpow2.f32 %v6018_v9 }
0x637b   :  { %v7455_v34 = vpop.eup %7454 }
0x637c   :  { %4796 = vrot.lane.b32.xlu0 %v7455_v34, %s7577_s17 }
0x637d   :  { %v7457_v43 = vpop.eup %7456 }
0x637e   :  { %v4791_v48 = vadd.f32 1.0, %v7457_v43 }
0x6380   :  { %7458 = vrcp.f32 %v4791_v48 }
0x638a   :  { %v7459_v49 = vpop.eup %7458 }
0x63ee   :  { %v4797_v50 = vpop.permute.xlu0 %4796 }
0x63ef   :  { %v4799_v51 = vmul.f32 %v7459_v49, %v4797_v50 }
0x63f1   :  { %7460 = vtanh.f32 %v4799_v51  ;;  %v4899_v55 = vrot.slane %v4799_v51, 7 }
0x63fb   :  { %v7461_v53 = vpop.eup %7460 }
0x63fc   :  { %4802 = vrot.lane.b32.xlu1 %v7461_v53, %s7578_s18 }
0x646e   :  { %v4803_v54 = vpop.permute.xlu1 %4802 }
0x646f   :  { %v4805_v31 = vmul.f32 %v7459_v49, %v4803_v54 }
0x6471   :  { %4807 = vrot.lane.b32.xlu0 %v4805_v31, %s7579_s19 }
0x6475   :  { %4900 = vrot.lane.b32.xlu0 %v4899_v55, %s7579_s19 }
0x64e3   :  { %v4808_v29 = vpop.permute.xlu0 %4807 }
0x64e4   :  { %4810 = vst.msk [vmem:[#allocation3] sm:$0x1] %vm510_vm0, %v4808_v29  ;;  %6734 = vmatmul.mubr.msk.f32.vlgmr.msra.gmra.mrb[38].mxu1 %vm353_vm14, %v4808_v29 }
0x64e5   :  { %7072 = vmatpush3.bf16.msra.mxu1 %v8489_v19  ;;  %6755 = vmatprep.mubr.msk.f32.mxu1 %vm7575_vm15, %v7576_v7 }
0x64e6   :  { %7073 = vmatprep.subr.bf16.mxu1 %v7574_v6 }
0x64e7   :  { %v4901_v42 = vpop.permute.xlu0 %4900 }
0x64e9   :  { %7075 = vmatpush3.bf16.msra.mxu1 %v8492_v10 }
0x64ea   :  { %7082 = vmatprep.subr.bf16.mxu1 %v7574_v6 }
0x65b7   :  { %v4883_v56 = vpop.f32.mrb[38].mxu1 }
0x65b8   :  { %v4888_v27 = vrot.slane %v4883_v56, 7  ;;  %v6735_v35 = vpop.f32.mrb[39].mxu1 }
0x65ba   :  { %v4890_v58 = vadd.f32 %v4888_v27, %v4785_v61 }
0x65bc   :  { %7462 = vtanh.f32 %v4890_v58  ;;  %v6020_v36 = vmul.f32 -1.442695, %v4890_v58 }
0x65be   :  { %7464 = vpow2.f32 %v6020_v36 }
0x65c6   :  { %v7463_v41 = vpop.eup %7462 }
0x65c7   :  { %4905 = vrot.lane.b32.xlu1 %v7463_v41, %s7577_s17 }
0x65c8   :  { %v7465_v59 = vpop.eup %7464 }
0x65c9   :  { %v4894_v60 = vadd.f32 1.0, %v7465_v59 }
0x65cb   :  { %7466 = vrcp.f32 %v4894_v60 }
0x65d5   :  { %v7467_v14 = vpop.eup %7466 }
0x65d6   :  { %v4903_v0 = vmul.f32 %v7467_v14, %v4901_v42 }
0x6639   :  { %v4906_v63 = vpop.permute.xlu1 %4905 }
0x663a   :  { %v4908_v3 = vmul.f32 %v7467_v14, %v4906_v63  ;;  %v4481_v63 = vld [vmem:[#allocation2 + $0xc] sm:$0x3] }
0x663c   :  { %4910 = vrot.lane.b32.xlu1 %v4908_v3, %s7579_s19 }
0x66ae   :  { %v4911_v52 = vpop.permute.xlu1 %4910 }
0x66af   :  { %v4913_v1 = vadd.f32 %v4911_v52, %v4903_v0 }
0x66b1   :  { %7468 = vtanh.f32 %v4913_v1 }
0x66bb   :  { %v7469_v12 = vpop.eup %7468 }
0x66bc   :  { %4916 = vrot.lane.b32.xlu0 %v7469_v12, %s7577_s17 }
0x672e   :  { %v4917_v4 = vpop.permute.xlu0 %4916 }
0x672f   :  { %v4919_v17 = vmul.f32 %v7467_v14, %v4917_v4 }
0x6731   :  { %4921 = vrot.lane.b32.xlu1 %v4919_v17, %s7579_s19 }
0x67a3   :  { %v4922_v33 = vpop.permute.xlu1 %4921 }
0x67a4   :  { %4924 = vst.msk [vmem:[#allocation3] sm:$0x2] %vm625_vm1, %v4922_v33 }
0x67ab   :  { %v4925_v28 = vld [vmem:[#allocation3] sm:$0x3] }
0x67ac   :  { %6745 = vmatmul.mubr.msk.f32.vlgmr.msra.gmra.mrb[40].mxu0 %vm353_vm14, %v4925_v28 }
0x67ad   :  { %7078 = vmatpush3.bf16.msra.mxu0 %v8351_v18  ;;  %6766 = vmatprep.mubr.msk.f32.mxu0 %vm7575_vm15, %v7576_v7 }
0x67ae   :  { %7079 = vmatprep.subr.bf16.mxu0 %v7574_v6 }
0x67b1   :  { %7081 = vmatpush3.bf16.msra.mxu0 %v8357_v39 }
0x67b2   :  { %7088 = vmatprep.subr.bf16.mxu0 %v7574_v6 }
0x687f   :  { %v5006_v20 = vpop.f32.mrb[40].mxu0 }
0x6880   :  { %v5007_v11 = vadd.f32 %v8485_v37, %v5006_v20  ;;  %v6746_v21 = vpop.f32.mrb[41].mxu0 }
0x6882   :  { %7470 = vtanh.f32 %v5007_v11  ;;  %v6028_v13 = vmul.f32 -1.442695, %v5007_v11 }
0x6884   :  { %7472 = vpow2.f32 %v6028_v13 }
0x688c   :  { %v7471_v23 = vpop.eup %7470 }
0x688d   :  { %5018 = vrot.lane.b32.xlu0 %v7471_v23, %s7577_s17 }
0x688e   :  { %v7473_v18 = vpop.eup %7472 }
0x688f   :  { %v5013_v62 = vadd.f32 1.0, %v7473_v18 }
0x6891   :  { %7474 = vrcp.f32 %v5013_v62 }
0x689b   :  { %v7475_v8 = vpop.eup %7474 }
0x68ff   :  { %v5019_v61 = vpop.permute.xlu0 %5018 }
0x6900   :  { %v5021_v32 = vmul.f32 %v7475_v8, %v5019_v61 }
0x6902   :  { %7476 = vtanh.f32 %v5021_v32  ;;  %v5121_v43 = vrot.slane %v5021_v32, 7 }
0x690c   :  { %v7477_v39 = vpop.eup %7476 }
0x690d   :  { %5024 = vrot.lane.b32.xlu1 %v7477_v39, %s7578_s18 }
0x697f   :  { %v5025_v34 = vpop.permute.xlu1 %5024 }
0x6980   :  { %v5027_v9 = vmul.f32 %v7475_v8, %v5025_v34 }
0x6982   :  { %5029 = vrot.lane.b32.xlu0 %v5027_v9, %s7579_s19 }
0x6986   :  { %5122 = vrot.lane.b32.xlu0 %v5121_v43, %s7579_s19 }
0x69f4   :  { %v5030_v48 = vpop.permute.xlu0 %5029 }
0x69f5   :  { %5032 = vst.msk [vmem:[#allocation3] sm:$0x1] %vm510_vm0, %v5030_v48  ;;  %6756 = vmatmul.mubr.msk.f32.vlgmr.msra.gmra.mrb[40].mxu1 %vm353_vm14, %v5030_v48 }
0x69f6   :  { %7084 = vmatpush3.bf16.msra.mxu1 %v8385_v44  ;;  %6777 = vmatprep.mubr.msk.f32.mxu1 %vm7575_vm15, %v7576_v7 }
0x69f7   :  { %7085 = vmatprep.subr.bf16.mxu1 %v7574_v6 }
0x69fa   :  { %7087 = vmatpush3.bf16.msra.mxu1 %v8388_v47  ;;  %v5123_v47 = vpop.permute.xlu0 %5122 }
0x69fb   :  { %7094 = vmatprep.subr.bf16.mxu1 %v7574_v6 }
0x6ac8   :  { %v5105_v49 = vpop.f32.mrb[40].mxu1 }
0x6ac9   :  { %v5110_v50 = vrot.slane %v5105_v49, 7  ;;  %v6757_v51 = vpop.f32.mrb[41].mxu1 }
0x6acb   :  { %v5112_v53 = vadd.f32 %v5110_v50, %v5007_v11 }
0x6acd   :  { %7478 = vtanh.f32 %v5112_v53  ;;  %v6030_v31 = vmul.f32 -1.442695, %v5112_v53 }
0x6acf   :  { %7480 = vpow2.f32 %v6030_v31 }
0x6ad7   :  { %v7479_v54 = vpop.eup %7478 }
0x6ad8   :  { %5127 = vrot.lane.b32.xlu1 %v7479_v54, %s7577_s17 }
0x6ad9   :  { %v7481_v44 = vpop.eup %7480 }
0x6ada   :  { %v5116_v55 = vadd.f32 1.0, %v7481_v44 }
0x6adc   :  { %7482 = vrcp.f32 %v5116_v55 }
0x6ae6   :  { %v7483_v29 = vpop.eup %7482 }
0x6ae7   :  { %v5125_v35 = vmul.f32 %v7483_v29, %v5123_v47 }
0x6b4a   :  { %v5128_v56 = vpop.permute.xlu1 %5127 }
0x6b4b   :  { %v5130_v27 = vmul.f32 %v7483_v29, %v5128_v56 }
0x6b4d   :  { %5132 = vrot.lane.b32.xlu1 %v5130_v27, %s7579_s19 }
0x6bbf   :  { %v5133_v58 = vpop.permute.xlu1 %5132 }
0x6bc0   :  { %v5135_v41 = vadd.f32 %v5133_v58, %v5125_v35 }
0x6bc2   :  { %7484 = vtanh.f32 %v5135_v41 }
0x6bcc   :  { %v7485_v36 = vpop.eup %7484 }
0x6bcd   :  { %5138 = vrot.lane.b32.xlu0 %v7485_v36, %s7577_s17 }
0x6c3f   :  { %v5139_v59 = vpop.permute.xlu0 %5138 }
0x6c40   :  { %v5141_v60 = vmul.f32 %v7483_v29, %v5139_v59 }
0x6c42   :  { %5143 = vrot.lane.b32.xlu1 %v5141_v60, %s7579_s19 }
0x6cb4   :  { %v5144_v14 = vpop.permute.xlu1 %5143 }
0x6cb5   :  { %5146 = vst.msk [vmem:[#allocation3] sm:$0x2] %vm625_vm1, %v5144_v14 }
0x6cbc   :  { %v8592_v3 = vld [vmem:[#allocation3] sm:$0x3] }
0x6cbd   :  { %v5154_v42 = vsub.f32 %v4481_v63, %v8592_v3 }
0x6cbf   :  { %v5155_v0 = vmul.f32 0.5, %v5154_v42 }
0x6cc1   :  { %v5156_v52 = vadd.f32 %v5155_v0, %v8592_v3 }
0x6cc3   :  { %6767 = vmatmul.mubr.msk.f32.vlgmr.msra.gmra.mrb[42].mxu0 %vm353_vm14, %v5156_v52 }
0x6cc4   :  { %7090 = vmatpush3.bf16.msra.mxu0 %v8412_v26  ;;  %6788 = vmatprep.mubr.msk.f32.mxu0 %vm7575_vm15, %v7576_v7 }
0x6cc5   :  { %7091 = vmatprep.subr.bf16.mxu0 %v7574_v6 }
0x6cc8   :  { %7093 = vmatpush3.bf16.msra.mxu0 %v8418_v16 }
0x6cc9   :  { %7100 = vmatprep.subr.bf16.mxu0 %v7574_v6 }
0x6d96   :  { %v5237_v1 = vpop.f32.mrb[42].mxu0 }
0x6d97   :  { %v5238_v12 = vadd.f32 %v8381_v2, %v5237_v1  ;;  %v6768_v4 = vpop.f32.mrb[43].mxu0 }
0x6d99   :  { %7486 = vtanh.f32 %v5238_v12  ;;  %v6033_v33 = vmul.f32 -1.442695, %v5238_v12 }
0x6d9b   :  { %7488 = vpow2.f32 %v6033_v33 }
0x6da3   :  { %v7487_v17 = vpop.eup %7486 }
0x6da4   :  { %5249 = vrot.lane.b32.xlu0 %v7487_v17, %s7577_s17 }
0x6da5   :  { %v7489_v26 = vpop.eup %7488 }
0x6da6   :  { %v5244_v28 = vadd.f32 1.0, %v7489_v26 }
0x6da8   :  { %7490 = vrcp.f32 %v5244_v28 }
0x6db2   :  { %v7491_v20 = vpop.eup %7490 }
0x6e16   :  { %v5250_v11 = vpop.permute.xlu0 %5249 }
0x6e17   :  { %v5252_v21 = vmul.f32 %v7491_v20, %v5250_v11 }
0x6e19   :  { %7492 = vtanh.f32 %v5252_v21  ;;  %v5352_v2 = vrot.slane %v5252_v21, 7 }
0x6e23   :  { %v7493_v16 = vpop.eup %7492 }
0x6e24   :  { %5255 = vrot.lane.b32.xlu1 %v7493_v16, %s7578_s18 }
0x6e96   :  { %v5256_v23 = vpop.permute.xlu1 %5255 }
0x6e97   :  { %v5258_v13 = vmul.f32 %v7491_v20, %v5256_v23 }
0x6e99   :  { %5260 = vrot.lane.b32.xlu0 %v5258_v13, %s7579_s19 }
0x6e9d   :  { %5353 = vrot.lane.b32.xlu0 %v5352_v2, %s7579_s19 }
0x6f0b   :  { %v5261_v18 = vpop.permute.xlu0 %5260 }
0x6f0c   :  { %5263 = vst.msk [vmem:[#allocation3] sm:$0x1] %vm510_vm0, %v5261_v18  ;;  %6778 = vmatmul.mubr.msk.f32.vlgmr.msra.gmra.mrb[42].mxu1 %vm353_vm14, %v5261_v18 }
0x6f0d   :  { %7096 = vmatpush3.bf16.msra.mxu1 %v8435_v38  ;;  %6799 = vmatprep.mubr.msk.f32.mxu1 %vm7575_vm15, %v7576_v7 }
0x6f0e   :  { %7097 = vmatprep.subr.bf16.mxu1 %v7574_v6 }
0x6f11   :  { %7099 = vmatpush3.bf16.msra.mxu1 %v8438_v22  ;;  %v5354_v22 = vpop.permute.xlu0 %5353 }
0x6f12   :  { %7106 = vmatprep.subr.bf16.mxu1 %v7574_v6 }
0x6fdf   :  { %v5336_v62 = vpop.f32.mrb[42].mxu1 }
0x6fe0   :  { %v5341_v8 = vrot.slane %v5336_v62, 7  ;;  %v6779_v61 = vpop.f32.mrb[43].mxu1 }
0x6fe2   :  { %v5343_v32 = vadd.f32 %v5341_v8, %v5238_v12 }
0x6fe4   :  { %7494 = vtanh.f32 %v5343_v32  ;;  %v6035_v34 = vmul.f32 -1.442695, %v5343_v32 }
0x6fe6   :  { %7496 = vpow2.f32 %v6035_v34 }
0x6fee   :  { %v7495_v39 = vpop.eup %7494 }
0x6fef   :  { %5358 = vrot.lane.b32.xlu1 %v7495_v39, %s7577_s17 }
0x6ff0   :  { %v7497_v38 = vpop.eup %7496 }
0x6ff1   :  { %v5347_v9 = vadd.f32 1.0, %v7497_v38 }
0x6ff3   :  { %7498 = vrcp.f32 %v5347_v9 }
0x6ffd   :  { %v7499_v43 = vpop.eup %7498 }
0x6ffe   :  { %v5356_v50 = vmul.f32 %v7499_v43, %v5354_v22 }
0x7061   :  { %v5359_v48 = vpop.permute.xlu1 %5358 }
0x7062   :  { %v5361_v49 = vmul.f32 %v7499_v43, %v5359_v48 }
0x7064   :  { %5363 = vrot.lane.b32.xlu1 %v5361_v49, %s7579_s19 }
0x70d6   :  { %v5364_v51 = vpop.permute.xlu1 %5363 }
0x70d7   :  { %v5366_v53 = vadd.f32 %v5364_v51, %v5356_v50 }
0x70d9   :  { %7500 = vtanh.f32 %v5366_v53 }
0x70e3   :  { %v7501_v54 = vpop.eup %7500 }
0x70e4   :  { %5369 = vrot.lane.b32.xlu0 %v7501_v54, %s7577_s17 }
0x7156   :  { %v5370_v31 = vpop.permute.xlu0 %5369 }
0x7157   :  { %v5372_v44 = vmul.f32 %v7499_v43, %v5370_v31 }
0x7159   :  { %5374 = vrot.lane.b32.xlu1 %v5372_v44, %s7579_s19 }
0x71cb   :  { %v5375_v55 = vpop.permute.xlu1 %5374 }
0x71cc   :  { %5377 = vst.msk [vmem:[#allocation3] sm:$0x2] %vm625_vm1, %v5375_v55 }
0x71d3   :  { %v5378_v29 = vld [vmem:[#allocation3] sm:$0x3] }
0x71d4   :  { %6789 = vmatmul.mubr.msk.f32.vlgmr.msra.gmra.mrb[44].mxu0 %vm353_vm14, %v5378_v29 }
0x71d5   :  { %7102 = vmatpush3.bf16.msra.mxu0 %v8462_v24  ;;  %6810 = vmatprep.mubr.msk.f32.mxu0 %vm7575_vm15, %v7576_v7 }
0x71d6   :  { %7103 = vmatprep.subr.bf16.mxu0 %v7574_v6 }
0x71d9   :  { %7105 = vmatpush3.bf16.msra.mxu0 %v8468_v25 }
0x72a7   :  { %v5459_v56 = vpop.f32.mrb[44].mxu0 }
0x72a8   :  { %v5460_v27 = vadd.f32 %v8431_v46, %v5459_v56  ;;  %v6790_v47 = vpop.f32.mrb[45].mxu0 }
0x72aa   :  { %7502 = vtanh.f32 %v5460_v27  ;;  %v6043_v58 = vmul.f32 -1.442695, %v5460_v27 }
0x72ac   :  { %7504 = vpow2.f32 %v6043_v58  ;;  %v5879_v58 = vld [vmem:[%s8715_s8] ss:$0 sm:$0xff] }
0x72b4   :  { %v7503_v35 = vpop.eup %7502 }
0x72b5   :  { %5471 = vrot.lane.b32.xlu0 %v7503_v35, %s7577_s17 }
0x72b6   :  { %v7505_v41 = vpop.eup %7504 }
0x72b7   :  { %v5466_v36 = vadd.f32 1.0, %v7505_v41  ;;  %v1084_v41 = vmul.f32 %v5879_v58, %v7891_v15 }
0x72b9   :  { %7506 = vrcp.f32 %v5466_v36  ;;  %v1086_v36 = vsel %vm1085_vm11, %v1084_v41, 0.0 }
0x72c3   :  { %v7507_v24 = vpop.eup %7506 }
0x7327   :  { %v5472_v59 = vpop.permute.xlu0 %5471 }
0x7328   :  { %v5474_v60 = vmul.f32 %v7507_v24, %v5472_v59 }
0x732a   :  { %7508 = vtanh.f32 %v5474_v60  ;;  %v5574_v46 = vrot.slane %v5474_v60, 7  ;;  %v3796_v60 = vmul.f32 %v5879_v58, %v8371_v40 }
0x7334   :  { %v7509_v14 = vpop.eup %7508 }
0x7335   :  { %5477 = vrot.lane.b32.xlu1 %v7509_v14, %s7578_s18  ;;  %v3797_v14 = vsel %vm1085_vm11, %v3796_v60, 0.0 }
0x73a7   :  { %v5478_v25 = vpop.permute.xlu1 %5477 }
0x73a8   :  { %v5480_v63 = vmul.f32 %v7507_v24, %v5478_v25  ;;  %v2444_v24 = vmul.f32 %v5879_v58, %v8062_v5  ;;  %v5148_v25 = vmul.f32 %v5879_v58, %v8592_v3 }
0x73aa   :  { %5482 = vrot.lane.b32.xlu0 %v5480_v63, %s7579_s19  ;;  %v2445_v59 = vsel %vm1085_vm11, %v2444_v24, 0.0  ;;  %v5149_v63 = vsel %vm1085_vm11, %v5148_v25, 0.0 }
0x73ae   :  { %5575 = vrot.lane.b32.xlu0 %v5574_v46, %s7579_s19 }
0x741c   :  { %v5483_v42 = vpop.permute.xlu0 %5482 }
0x741d   :  { %5485 = vst.msk [vmem:[#allocation3] sm:$0x1] %vm510_vm0, %v5483_v42  ;;  %6800 = vmatmul.mubr.msk.f32.vlgmr.msra.gmra.mrb[44].mxu1 %vm353_vm14, %v5483_v42 }
0x741e   :  { %7108 = vmatpush3.bf16.msra.mxu1 %v8489_v19  ;;  %6821 = vmatprep.mubr.msk.f32.mxu1 %vm7575_vm15, %v7576_v7 }
0x741f   :  { %7109 = vmatprep.subr.bf16.mxu1 %v7574_v6 }
0x7420   :  { %v5576_v6 = vpop.permute.xlu0 %5575 }
0x7422   :  { %7111 = vmatpush3.bf16.msra.mxu1 %v8492_v10 }
0x74f0   :  { %v5558_v0 = vpop.f32.mrb[44].mxu1 }
0x74f1   :  { %v5563_v52 = vrot.slane %v5558_v0, 7  ;;  %v6801_v1 = vpop.f32.mrb[45].mxu1 }
0x74f3   :  { %v5565_v12 = vadd.f32 %v5563_v52, %v5460_v27  ;;  %v5880_v52 = vld [vmem:[#allocation4] ss:$0 sm:$0xff] }
0x74f5   :  { %7510 = vtanh.f32 %v5565_v12  ;;  %v6045_v17 = vmul.f32 -1.442695, %v5565_v12 }
0x74f7   :  { %7512 = vpow2.f32 %v6045_v17 }
0x74ff   :  { %v7511_v4 = vpop.eup %7510 }
0x7500   :  { %5580 = vrot.lane.b32.xlu1 %v7511_v4, %s7577_s17 }
0x7501   :  { %v7513_v33 = vpop.eup %7512 }
0x7502   :  { %v5569_v26 = vadd.f32 1.0, %v7513_v33 }
0x7504   :  { %7514 = vrcp.f32 %v5569_v26 }
0x750e   :  { %v7515_v19 = vpop.eup %7514 }
0x750f   :  { %v5578_v10 = vmul.f32 %v7515_v19, %v5576_v6 }
0x7572   :  { %v5581_v28 = vpop.permute.xlu1 %5580 }
0x7573   :  { %v5583_v7 = vmul.f32 %v7515_v19, %v5581_v28 }
0x7575   :  { %5585 = vrot.lane.b32.xlu1 %v5583_v7, %s7579_s19  ;;  %v1768_v7 = vmul.f32 %v5879_v58, %v7971_v57 }
0x7577   :  { %v1769_v6 = vsel %vm1085_vm11, %v1768_v7, 0.0 }
0x75e7   :  { %v5586_v20 = vpop.permute.xlu1 %5585 }
0x75e8   :  { %v5588_v11 = vadd.f32 %v5586_v20, %v5578_v10  ;;  %v3120_v10 = vmul.f32 %v5879_v58, %v8204_v45 }
0x75ea   :  { %7516 = vtanh.f32 %v5588_v11  ;;  %v3121_v20 = vsel %vm1085_vm11, %v3120_v10, 0.0  ;;  %v4472_v11 = vmul.f32 %v5879_v58, %v8513_v30 }
0x75f4   :  { %v7517_v21 = vpop.eup %7516 }
0x75f5   :  { %5591 = vrot.lane.b32.xlu0 %v7517_v21, %s7577_s17  ;;  %v4473_v21 = vsel %vm1085_vm11, %v4472_v11, 0.0 }
0x7667   :  { %v5592_v16 = vpop.permute.xlu0 %5591 }
0x7668   :  { %v5594_v23 = vmul.f32 %v7515_v19, %v5592_v16 }
0x766a   :  { %5596 = vrot.lane.b32.xlu1 %v5594_v23, %s7579_s19 }
0x76dc   :  { %v5597_v13 = vpop.permute.xlu1 %5596 }
0x76dd   :  { %5599 = vst.msk [vmem:[#allocation3] sm:$0x2] %vm625_vm1, %v5597_v13 }
0x76e4   :  { %v5600_v2 = vld [vmem:[#allocation3] sm:$0x3] }
0x76e5   :  { %6811 = vmatmul.mubr.msk.f32.vlgmr.msra.gmra.mrb[46].mxu0 %vm353_vm14, %v5600_v2 }
0x77b8   :  { %v5681_v18 = vpop.f32.mrb[46].mxu0 }
0x77b9   :  { %v5682_v62 = vadd.f32 %v8485_v37, %v5681_v18  ;;  %v6812_v8 = vpop.f32.mrb[47].mxu0 }
0x77bb   :  { %7518 = vtanh.f32 %v5682_v62  ;;  %v6053_v32 = vmul.f32 -1.442695, %v5682_v62 }
0x77bd   :  { %7520 = vpow2.f32 %v6053_v32 }
0x77c5   :  { %v7519_v61 = vpop.eup %7518 }
0x77c6   :  { %5693 = vrot.lane.b32.xlu0 %v7519_v61, %s7577_s17 }
0x77c7   :  { %v7521_v39 = vpop.eup %7520 }
0x77c8   :  { %v5688_v34 = vadd.f32 1.0, %v7521_v39 }
0x77ca   :  { %7522 = vrcp.f32 %v5688_v34 }
0x77d4   :  { %v7523_v38 = vpop.eup %7522 }
0x7838   :  { %v5694_v9 = vpop.permute.xlu0 %5693 }
0x7839   :  { %v5696_v43 = vmul.f32 %v7523_v38, %v5694_v9 }
0x783b   :  { %7524 = vtanh.f32 %v5696_v43  ;;  %v5796_v37 = vrot.slane %v5696_v43, 7 }
0x7845   :  { %v7525_v48 = vpop.eup %7524 }
0x7846   :  { %5699 = vrot.lane.b32.xlu1 %v7525_v48, %s7578_s18 }
0x78b8   :  { %v5700_v49 = vpop.permute.xlu1 %5699 }
0x78b9   :  { %v5702_v22 = vmul.f32 %v7523_v38, %v5700_v49 }
0x78bb   :  { %5704 = vrot.lane.b32.xlu0 %v5702_v22, %s7579_s19 }
0x78bf   :  { %5797 = vrot.lane.b32.xlu0 %v5796_v37, %s7579_s19 }
0x792d   :  { %v5705_v50 = vpop.permute.xlu0 %5704 }
0x792e   :  { %5707 = vst.msk [vmem:[#allocation3] sm:$0x1] %vm510_vm0, %v5705_v50  ;;  %6822 = vmatmul.mubr.msk.f32.vlgmr.msra.gmra.mrb[46].mxu1 %vm353_vm14, %v5705_v50  ;;  %vm1096_vm14 = vcmask 1024  }
0x7931   :  { %v5798_v15 = vpop.permute.xlu0 %5797 }
0x7a01   :  { %v5780_v51 = vpop.f32.mrb[46].mxu1 }
0x7a02   :  { %v5785_v53 = vrot.slane %v5780_v51, 7  ;;  %v6823_v54 = vpop.f32.mrb[47].mxu1 }
0x7a04   :  { %v5787_v31 = vadd.f32 %v5785_v53, %v5682_v62 }
0x7a06   :  { %7526 = vtanh.f32 %v5787_v31  ;;  %v6055_v55 = vmul.f32 -1.442695, %v5787_v31 }
0x7a08   :  { %7528 = vpow2.f32 %v6055_v55 }
0x7a10   :  { %v7527_v44 = vpop.eup %7526 }
0x7a11   :  { %5802 = vrot.lane.b32.xlu1 %v7527_v44, %s7577_s17 }
0x7a12   :  { %v7529_v29 = vpop.eup %7528 }
0x7a13   :  { %v5791_v56 = vadd.f32 1.0, %v7529_v29 }
0x7a15   :  { %7530 = vrcp.f32 %v5791_v56 }
0x7a1f   :  { %v7531_v27 = vpop.eup %7530 }
0x7a20   :  { %v5800_v46 = vmul.f32 %v7531_v27, %v5798_v15 }
0x7a83   :  { %v5803_v47 = vpop.permute.xlu1 %5802 }
0x7a84   :  { %v5805_v35 = vmul.f32 %v7531_v27, %v5803_v47 }
0x7a86   :  { %5807 = vrot.lane.b32.xlu1 %v5805_v35, %s7579_s19 }
0x7aaa   :  { %1087 = vadd.xlane.f32.xlu1 %v1086_v36 }
0x7aae   :  { %2446 = vadd.xlane.f32.xlu1 %v2445_v59 }
0x7ab2   :  { %3798 = vadd.xlane.f32.xlu1 %v3797_v14 }
0x7ab6   :  { %5150 = vadd.xlane.f32.xlu1 %v5149_v63 }
0x7af8   :  { %v5808_v42 = vpop.permute.xlu1 %5807 }
0x7af9   :  { %v5810_v0 = vadd.f32 %v5808_v42, %v5800_v46 }
0x7afb   :  { %7532 = vtanh.f32 %v5810_v0 }
0x7b05   :  { %v7533_v5 = vpop.eup %7532 }
0x7b06   :  { %5813 = vrot.lane.b32.xlu0 %v7533_v5, %s7577_s17 }
0x7b37   :  { %v1088_v40 = vpop.xlane.xlu1 %1087 }
0x7b38   :  { %v1095_v1 = vadd.f32 %v5880_v52, %v1088_v40 }
0x7b3a   :  { %1097 = vst.msk [vmem:[%s8717_s10] sm:$0x3] %vm1096_vm14, %v1095_v1 }
0x7b3b   :  { %v2447_v3 = vpop.xlane.xlu1 %2446 }
0x7b3c   :  { %v2448_v12 = vadd.f32 %v5880_v52, %v2447_v3 }
0x7b3e   :  { %2449 = vst.msk [vmem:[%s8717_s10 + $0x4] sm:$0x3] %vm1096_vm14, %v2448_v12 }
0x7b3f   :  { %v3799_v4 = vpop.xlane.xlu1 %3798 }
0x7b40   :  { %v3800_v17 = vadd.f32 %v5880_v52, %v3799_v4 }
0x7b42   :  { %3801 = vst.msk [vmem:[%s8717_s10 + $0x8] sm:$0x3] %vm1096_vm14, %v3800_v17 }
0x7b43   :  { %v5151_v33 = vpop.xlane.xlu1 %5150 }
0x7b44   :  { %v5152_v26 = vadd.f32 %v5880_v52, %v5151_v33 }
0x7b46   :  { %5153 = vst.msk [vmem:[%s8717_s10 + $0xc] sm:$0x3] %vm1096_vm14, %v5152_v26 }
0x7b78   :  { %v5814_v19 = vpop.permute.xlu0 %5813 }
0x7b79   :  { %v5816_v28 = vmul.f32 %v7531_v27, %v5814_v19 }
0x7b7b   :  { %5818 = vrot.lane.b32.xlu0 %v5816_v28, %s7579_s19 }
0x7b9a   :  { %1770 = vadd.xlane.f32.xlu0 %v1769_v6 }
0x7b9e   :  { %3122 = vadd.xlane.f32.xlu0 %v3121_v20 }
0x7ba2   :  { %4474 = vadd.xlane.f32.xlu0 %v4473_v21 }
0x7bed   :  { %v5819_v16 = vpop.permute.xlu0 %5818 }
0x7bee   :  { %5821 = vst.msk [vmem:[#allocation3] sm:$0x2] %vm625_vm1, %v5819_v16 }
0x7bf5   :  { %v5822_v23 = vld [vmem:[#allocation3] sm:$0x3] }
0x7bf6   :  { %v5823_v13 = vmul.f32 %v5879_v58, %v5822_v23 }
0x7bf8   :  { %v5824_v57 = vsel %vm1085_vm11, %v5823_v13, 0.0 }
0x7bf9   :  { %5825 = vadd.xlane.f32.xlu0 %v5824_v57 }
0x7c27   :  { %v1771_v2 = vpop.xlane.xlu0 %1770 }
0x7c28   :  { %v1772_v18 = vadd.f32 %v5880_v52, %v1771_v2 }
0x7c2a   :  { %1773 = vst.msk [vmem:[%s8717_s10 + $0x2] sm:$0x3] %vm1096_vm14, %v1772_v18 }
0x7c2b   :  { %v3123_v45 = vpop.xlane.xlu0 %3122 }
0x7c2c   :  { %v3124_v30 = vadd.f32 %v5880_v52, %v3123_v45 }
0x7c2e   :  { %3125 = vst.msk [vmem:[%s8717_s10 + $0x6] sm:$0x3] %vm1096_vm14, %v3124_v30 }
0x7c2f   :  { %v4475_v62 = vpop.xlane.xlu0 %4474 }
0x7c30   :  { %v4476_v8 = vadd.f32 %v5880_v52, %v4475_v62 }
0x7c32   :  { %4477 = vst.msk [vmem:[%s8717_s10 + $0xa] sm:$0x3] %vm1096_vm14, %v4476_v8 }
0x7c86   :  { %v5826_v61 = vpop.xlane.xlu0 %5825 }
0x7c87   :  { %v5827_v32 = vadd.f32 %v5880_v52, %v5826_v61 }
0x7c89   :  { %5828 = vst.msk [vmem:[%s8717_s10 + $0xe] sm:$0x3] %vm1096_vm14, %v5827_v32 }
0x7c8a   :  { %5833 = vsyncpa [#allocation6], 1 }

</bundles_post_ra>
